<compile_context>
chip_gen: v5e
topology: v5e:2x2
jax: 0.10.0
libtpu: 0.0.40
codegen_flags: <defaults>
</compile_context>

<pallas_src>
import functools

import jax
import jax.numpy as jnp
from jax import lax
from jax.experimental import pallas as pl
from jax.experimental.pallas import tpu as pltpu


# ------------------------------ fused kernel ---------------------------------

def _lstm_gates(gates, c_prev, H):
    """PyTorch gate ordering: i, f, g, o. gates: (B, 4H), c_prev: (B, H)."""
    i = jax.nn.sigmoid(gates[:, 0 * H:1 * H])
    f = jax.nn.sigmoid(gates[:, 1 * H:2 * H])
    g = jnp.tanh(gates[:, 2 * H:3 * H])
    o = jax.nn.sigmoid(gates[:, 3 * H:4 * H])
    c = f * c_prev + i * g
    h = o * jnp.tanh(c)
    return h, c


def _fused_rnn_kernel(*refs, n_layer, T, B, H):
    """Whole Rnn forward in a single kernel invocation (grid=()).

    refs layout (inputs, then output, then scratch):
      [0]                          x_flat   (T*B, D)   time-major, flattened
      [1], [2], [3]                layer 0: W_ih^T (D,4H), W_hh^T (H,4H), bias (1,4H)
      [4+2(k-1)], [5+2(k-1)]       layer k>0: [W_ih^T; W_hh^T] (2H,4H), bias (1,4H)
      [1+n_w], [2+n_w]             fc: W^T (H,C), b (1,C)
      [3+n_w]                      out_ref (B, C)
      [4+n_w], [5+n_w]             gx_sc (T*B,4H) f32, hseq_sc (T,B,H) f32
    """
    n_w = 3 + 2 * (n_layer - 1)
    x_ref = refs[0]
    w_refs = refs[1:1 + n_w]
    fc_w_ref = refs[1 + n_w]
    fc_b_ref = refs[2 + n_w]
    out_ref = refs[3 + n_w]
    gx_sc = refs[4 + n_w]
    hseq_sc = refs[5 + n_w]

    dot = functools.partial(jnp.dot, preferred_element_type=jnp.float32,
                            precision=jax.lax.Precision.HIGHEST)

    h0 = jnp.zeros((B, H), jnp.float32)
    c0 = jnp.zeros((B, H), jnp.float32)

    # ------------------------------ layer 0 ----------------------------------
    # Hoisted input projection: all T timesteps in one MXU matmul.
    w_hh0 = w_refs[1][...]                                          # (H, 4H)
    gx_sc[...] = dot(x_ref[...], w_refs[0][...]) + w_refs[2][...]   # (T*B, 4H)

    write_seq0 = n_layer > 1

    def step0(t, carry):
        h_prev, c_prev = carry
        gates = gx_sc[pl.ds(t * B, B), :] + dot(h_prev, w_hh0)      # (B, 4H)
        h, c = _lstm_gates(gates, c_prev, H)
        if write_seq0:
            hseq_sc[t] = h          # VMEM-resident hidden sequence for layer 1
        return (h, c)

    h_last, _ = lax.fori_loop(0, T, step0, (h0, c0), unroll=True)

    # -------------------------- layers 1 .. L-1 -------------------------------
    for layer in range(1, n_layer):
        w_cat = w_refs[3 + 2 * (layer - 1)][...]                    # (2H, 4H)
        b_l = w_refs[4 + 2 * (layer - 1)][...]                      # (1, 4H)
        is_last = layer == n_layer - 1

        def step(t, carry, *, w_cat=w_cat, b_l=b_l, is_last=is_last):
            h_prev, c_prev = carry
            h_below = hseq_sc[t]                                    # (B, H)
            # One MXU matmul per step: [x_t, h_{t-1}] @ [W_ih^T; W_hh^T]
            xh = jnp.concatenate([h_below, h_prev], axis=-1)        # (B, 2H)
            gates = dot(xh, w_cat) + b_l                            # (B, 4H)
            h, c = _lstm_gates(gates, c_prev, H)
            if not is_last:
                hseq_sc[t] = h      # overwrite in place for the next layer
            return (h, c)

        h_last, _ = lax.fori_loop(0, T, step, (h0, c0), unroll=True)

    # ------------------------ fused classifier --------------------------------
    out_ref[...] = (dot(h_last, fc_w_ref[...]) + fc_b_ref[...]).astype(out_ref.dtype)


# ------------------------------ wrapper ---------------------------------------

def _flatten_layer_inputs(params):
    flat = []
    for k, lp in enumerate(params["lstm"]):
        if k == 0:
            flat += [lp["w_ih_t"], lp["w_hh_t"], lp["bias"]]
        else:
            flat += [lp["w_cat_t"], lp["bias"]]
    flat += [params["fc"]["w_t"], params["fc"]["b"]]
    return flat


@jax.jit
def rnn_forward(params, x):
    """x: (B, T, in_dim) batch-first, like the PyTorch module. Returns (B, n_class)."""
    B, T, _ = x.shape
    H = params["lstm"][0]["w_hh_t"].shape[0]
    C = params["fc"]["w_t"].shape[1]
    n_layer = len(params["lstm"])

    # Time-major flattened input so the layer-0 input projection is one big
    # (T*B, D) x (D, 4H) matmul inside the kernel (hoisted out of the recurrence).
    x_flat = jnp.transpose(x, (1, 0, 2)).reshape(T * B, -1).astype(jnp.float32)

    kernel = functools.partial(_fused_rnn_kernel, n_layer=n_layer, T=T, B=B, H=H)
    vmem = pl.BlockSpec(memory_space=pltpu.MemorySpace.VMEM)
    inputs = [x_flat] + _flatten_layer_inputs(params)

    return pl.pallas_call(
        kernel,
        out_shape=jax.ShapeDtypeStruct((B, C), jnp.float32),
        in_specs=[vmem] * len(inputs),
        out_specs=vmem,
        scratch_shapes=[
            pltpu.VMEM((T * B, 4 * H), jnp.float32),   # hoisted layer-0 gates
            pltpu.VMEM((T, B, H), jnp.float32),        # inter-layer hidden sequence
        ],
    )(*inputs)


# ------------------------------ parameters ------------------------------------

def init_raw_params(key, in_dim, hidden_dim, n_layer, n_class):
    """Raw PyTorch-layout weights: LSTM layer k has weight_ih (4H, D_k),
    weight_hh (4H, H), bias_ih (4H,), bias_hh (4H,); classifier (C, H), (C,)."""
    bound = 1.0 / float(hidden_dim) ** 0.5
    raw = {"lstm": []}
    for layer in range(n_layer):
        d_in = in_dim if layer == 0 else hidden_dim
        key, k1, k2, k3, k4 = jax.random.split(key, 5)
        raw["lstm"].append({
            "w_ih": jax.random.uniform(k1, (4 * hidden_dim, d_in), jnp.float32, -bound, bound),
            "w_hh": jax.random.uniform(k2, (4 * hidden_dim, hidden_dim), jnp.float32, -bound, bound),
            "b_ih": jax.random.uniform(k3, (4 * hidden_dim,), jnp.float32, -bound, bound),
            "b_hh": jax.random.uniform(k4, (4 * hidden_dim,), jnp.float32, -bound, bound),
        })
    key, k5, k6 = jax.random.split(key, 3)
    raw["fc_w"] = jax.random.uniform(k5, (n_class, hidden_dim), jnp.float32, -bound, bound)
    raw["fc_b"] = jax.random.uniform(k6, (n_class,), jnp.float32, -bound, bound)
    return raw


def pack_params(raw):
    """Kernel layout: transposed weights; layers>0 use concatenated [W_ih^T; W_hh^T]."""
    params = {"lstm": []}
    for layer, lp in enumerate(raw["lstm"]):
        bias = (lp["b_ih"] + lp["b_hh"])[None, :]                   # (1, 4H)
        if layer == 0:
            params["lstm"].append({"w_ih_t": lp["w_ih"].T,          # (D, 4H)
                                   "w_hh_t": lp["w_hh"].T,          # (H, 4H)
                                   "bias": bias})
        else:
            params["lstm"].append({
                "w_cat_t": jnp.concatenate([lp["w_ih"].T, lp["w_hh"].T], axis=0),  # (2H, 4H)
                "bias": bias})
    params["fc"] = {"w_t": raw["fc_w"].T, "b": raw["fc_b"][None, :]}
    return params


# ------------------------------ reference -------------------------------------

def rnn_reference(raw, x):
    """Pure-JAX reference matching PyTorch LSTM + Linear semantics."""
    x = x.astype(jnp.float32)
    B, T, _ = x.shape
    seq = x
    for lp in raw["lstm"]:
        H = lp["w_hh"].shape[1]
        h = jnp.zeros((B, H), jnp.float32)
        c = jnp.zeros((B, H), jnp.float32)
        outs = []
        for t in range(T):
            gates = seq[:, t, :] @ lp["w_ih"].T + h @ lp["w_hh"].T + lp["b_ih"] + lp["b_hh"]
            i = jax.nn.sigmoid(gates[:, 0 * H:1 * H])
            f = jax.nn.sigmoid(gates[:, 1 * H:2 * H])
            g = jnp.tanh(gates[:, 2 * H:3 * H])
            o = jax.nn.sigmoid(gates[:, 3 * H:4 * H])
            c = f * c + i * g
            h = o * jnp.tanh(c)
            outs.append(h)
        seq = jnp.stack(outs, axis=1)
    return seq[:, -1, :] @ raw["fc_w"].T + raw["fc_b"][None, :]


# --------------------------------- main ----------------------------------------

if __name__ == "__main__":
    # Rnn(in_dim=16, hidden_dim=32, n_layer=2, n_class=10) on x of shape (2, 8, 16).
    B, T, IN_DIM, HIDDEN, N_LAYER, N_CLASS = 2, 8, 16, 32, 2, 10

    key = jax.random.PRNGKey(0)
    key, pkey, xkey = jax.random.split(key, 3)

    raw = init_raw_params(pkey, IN_DIM, HIDDEN, N_LAYER, N_CLASS)
    params = pack_params(raw)
    x = jax.random.normal(xkey, (B, T, IN_DIM), dtype=jnp.float32)

    out = rnn_forward(params, x)
    jax.block_until_ready(out)
    assert out.shape == (B, N_CLASS), out.shape

    ref = rnn_reference(raw, x)
    max_err = float(jnp.max(jnp.abs(out - ref)))
    assert bool(jnp.allclose(out, ref, rtol=2e-3, atol=2e-3)), max_err

    print("KERNEL_OK")
</pallas_src>

<mosaic_0001>
module attributes {stable_mosaic.version = 11 : i64} {
  func.func @_fused_rnn_kernel(%arg0: memref<16x16xf32, #tpu.memory_space<vmem>>, %arg1: memref<16x128xf32, #tpu.memory_space<vmem>>, %arg2: memref<32x128xf32, #tpu.memory_space<vmem>>, %arg3: memref<1x128xf32, #tpu.memory_space<vmem>>, %arg4: memref<64x128xf32, #tpu.memory_space<vmem>>, %arg5: memref<1x128xf32, #tpu.memory_space<vmem>>, %arg6: memref<32x10xf32, #tpu.memory_space<vmem>>, %arg7: memref<1x10xf32, #tpu.memory_space<vmem>>, %arg8: memref<2x10xf32, #tpu.memory_space<vmem>>, %arg9: memref<16x128xf32, #tpu.memory_space<vmem>>, %arg10: memref<8x2x32xf32, #tpu.memory_space<vmem>>) attributes {dimension_semantics = [], scalar_prefetch = 0 : i64, scratch_operands = 2 : i64, tpu.core_type = #tpu.core_type<tc>} {
    %cst = arith.constant 0.000000e+00 : f32
    %0 = vector.broadcast %cst : f32 to vector<2x32xf32>
    %cst_0 = arith.constant 0.000000e+00 : f32
    %1 = vector.broadcast %cst_0 : f32 to vector<2x32xf32>
    %c0 = arith.constant 0 : index
    %c0_1 = arith.constant 0 : index
    %2 = vector.load %arg2[%c0, %c0_1] : memref<32x128xf32, #tpu.memory_space<vmem>>, vector<32x128xf32>
    %c0_2 = arith.constant 0 : index
    %c0_3 = arith.constant 0 : index
    %3 = vector.load %arg0[%c0_2, %c0_3] : memref<16x16xf32, #tpu.memory_space<vmem>>, vector<16x16xf32>
    %c0_4 = arith.constant 0 : index
    %c0_5 = arith.constant 0 : index
    %4 = vector.load %arg1[%c0_4, %c0_5] : memref<16x128xf32, #tpu.memory_space<vmem>>, vector<16x128xf32>
    %cst_6 = arith.constant dense<0.000000e+00> : vector<16x128xf32>
    %5 = tpu.matmul %3, %4, %cst_6 {dimension_numbers = #tpu.dot_dimension_numbers<[1], [0], [0], [1], [0, 0, 1, 1], [], []>, precision = #tpu.contract_precision<fp32>} : vector<16x16xf32>, vector<16x128xf32>, vector<16x128xf32> -> vector<16x128xf32>
    %c0_7 = arith.constant 0 : index
    %c0_8 = arith.constant 0 : index
    %6 = vector.load %arg3[%c0_7, %c0_8] : memref<1x128xf32, #tpu.memory_space<vmem>>, vector<1x128xf32>
    %7 = vector.broadcast %6 : vector<1x128xf32> to vector<16x128xf32>
    %8 = arith.addf %5, %7 : vector<16x128xf32>
    %c0_9 = arith.constant 0 : index
    %c0_10 = arith.constant 0 : index
    %9 = vector.load %arg9[%c0_9, %c0_10] : memref<16x128xf32, #tpu.memory_space<vmem>>, vector<16x128xf32>
    tpu.vector_store %arg9[%c0_9, %c0_10], %8 {strides = array<i32>} : memref<16x128xf32, #tpu.memory_space<vmem>>, vector<16x128xf32>,
    %c0_i32 = arith.constant 0 : i32
    %c2_i32 = arith.constant 2 : i32
    %10 = arith.muli %c0_i32, %c2_i32 : i32
    %11 = arith.index_cast %10 : i32 to index
    %c0_11 = arith.constant 0 : index
    %12 = vector.load %arg9[%11, %c0_11] : memref<16x128xf32, #tpu.memory_space<vmem>>, vector<2x128xf32>
    %cst_12 = arith.constant dense<0.000000e+00> : vector<2x128xf32>
    %13 = tpu.matmul %0, %2, %cst_12 {dimension_numbers = #tpu.dot_dimension_numbers<[1], [0], [0], [1], [0, 0, 1, 1], [], []>, precision = #tpu.contract_precision<fp32>} : vector<2x32xf32>, vector<32x128xf32>, vector<2x128xf32> -> vector<2x128xf32>
    %14 = arith.addf %12, %13 : vector<2x128xf32>
    %15 = vector.extract_strided_slice %14 {offsets = [0, 0], sizes = [2, 32], strides = [1, 1]} : vector<2x128xf32> to vector<2x32xf32>
    %16 = arith.negf %15 : vector<2x32xf32>
    %17 = math.exp %16 : vector<2x32xf32>
    %cst_13 = arith.constant 1.000000e+00 : f32
    %18 = vector.broadcast %cst_13 : f32 to vector<2x32xf32>
    %19 = arith.addf %18, %17 : vector<2x32xf32>
    %20 = arith.divf %18, %19 : vector<2x32xf32>
    %21 = vector.extract_strided_slice %14 {offsets = [0, 32], sizes = [2, 32], strides = [1, 1]} : vector<2x128xf32> to vector<2x32xf32>
    %22 = arith.negf %21 : vector<2x32xf32>
    %23 = math.exp %22 : vector<2x32xf32>
    %cst_14 = arith.constant 1.000000e+00 : f32
    %24 = vector.broadcast %cst_14 : f32 to vector<2x32xf32>
    %25 = arith.addf %24, %23 : vector<2x32xf32>
    %26 = arith.divf %24, %25 : vector<2x32xf32>
    %27 = vector.extract_strided_slice %14 {offsets = [0, 64], sizes = [2, 32], strides = [1, 1]} : vector<2x128xf32> to vector<2x32xf32>
    %28 = math.tanh %27 : vector<2x32xf32>
    %29 = vector.extract_strided_slice %14 {offsets = [0, 96], sizes = [2, 32], strides = [1, 1]} : vector<2x128xf32> to vector<2x32xf32>
    %30 = arith.negf %29 : vector<2x32xf32>
    %31 = math.exp %30 : vector<2x32xf32>
    %cst_15 = arith.constant 1.000000e+00 : f32
    %32 = vector.broadcast %cst_15 : f32 to vector<2x32xf32>
    %33 = arith.addf %32, %31 : vector<2x32xf32>
    %34 = arith.divf %32, %33 : vector<2x32xf32>
    %35 = arith.mulf %26, %1 : vector<2x32xf32>
    %36 = arith.mulf %20, %28 : vector<2x32xf32>
    %37 = arith.addf %35, %36 : vector<2x32xf32>
    %38 = math.tanh %37 : vector<2x32xf32>
    %39 = arith.mulf %34, %38 : vector<2x32xf32>
    %40 = arith.index_cast %c0_i32 : i32 to index
    %c0_16 = arith.constant 0 : index
    %c0_17 = arith.constant 0 : index
    %41 = vector.load %arg10[%40, %c0_16, %c0_17] : memref<8x2x32xf32, #tpu.memory_space<vmem>>, vector<1x2x32xf32>
    %42 = vector.shape_cast %41 : vector<1x2x32xf32> to vector<2x32xf32>
    %43 = vector.shape_cast %39 : vector<2x32xf32> to vector<1x2x32xf32>
    tpu.vector_store %arg10[%40, %c0_16, %c0_17], %43 {strides = array<i32>} : memref<8x2x32xf32, #tpu.memory_space<vmem>>, vector<1x2x32xf32>,
    %c1_i32 = arith.constant 1 : i32
    %c2_i32_18 = arith.constant 2 : i32
    %44 = arith.muli %c1_i32, %c2_i32_18 : i32
    %45 = arith.index_cast %44 : i32 to index
    %c0_19 = arith.constant 0 : index
    %46 = vector.load %arg9[%45, %c0_19] : memref<16x128xf32, #tpu.memory_space<vmem>>, vector<2x128xf32>
    %cst_20 = arith.constant dense<0.000000e+00> : vector<2x128xf32>
    %47 = tpu.matmul %39, %2, %cst_20 {dimension_numbers = #tpu.dot_dimension_numbers<[1], [0], [0], [1], [0, 0, 1, 1], [], []>, precision = #tpu.contract_precision<fp32>} : vector<2x32xf32>, vector<32x128xf32>, vector<2x128xf32> -> vector<2x128xf32>
    %48 = arith.addf %46, %47 : vector<2x128xf32>
    %49 = vector.extract_strided_slice %48 {offsets = [0, 0], sizes = [2, 32], strides = [1, 1]} : vector<2x128xf32> to vector<2x32xf32>
    %50 = arith.negf %49 : vector<2x32xf32>
    %51 = math.exp %50 : vector<2x32xf32>
    %cst_21 = arith.constant 1.000000e+00 : f32
    %52 = vector.broadcast %cst_21 : f32 to vector<2x32xf32>
    %53 = arith.addf %52, %51 : vector<2x32xf32>
    %54 = arith.divf %52, %53 : vector<2x32xf32>
    %55 = vector.extract_strided_slice %48 {offsets = [0, 32], sizes = [2, 32], strides = [1, 1]} : vector<2x128xf32> to vector<2x32xf32>
    %56 = arith.negf %55 : vector<2x32xf32>
    %57 = math.exp %56 : vector<2x32xf32>
    %cst_22 = arith.constant 1.000000e+00 : f32
    %58 = vector.broadcast %cst_22 : f32 to vector<2x32xf32>
    %59 = arith.addf %58, %57 : vector<2x32xf32>
    %60 = arith.divf %58, %59 : vector<2x32xf32>
    %61 = vector.extract_strided_slice %48 {offsets = [0, 64], sizes = [2, 32], strides = [1, 1]} : vector<2x128xf32> to vector<2x32xf32>
    %62 = math.tanh %61 : vector<2x32xf32>
    %63 = vector.extract_strided_slice %48 {offsets = [0, 96], sizes = [2, 32], strides = [1, 1]} : vector<2x128xf32> to vector<2x32xf32>
    %64 = arith.negf %63 : vector<2x32xf32>
    %65 = math.exp %64 : vector<2x32xf32>
    %cst_23 = arith.constant 1.000000e+00 : f32
    %66 = vector.broadcast %cst_23 : f32 to vector<2x32xf32>
    %67 = arith.addf %66, %65 : vector<2x32xf32>
    %68 = arith.divf %66, %67 : vector<2x32xf32>
    %69 = arith.mulf %60, %37 : vector<2x32xf32>
    %70 = arith.mulf %54, %62 : vector<2x32xf32>
    %71 = arith.addf %69, %70 : vector<2x32xf32>
    %72 = math.tanh %71 : vector<2x32xf32>
    %73 = arith.mulf %68, %72 : vector<2x32xf32>
    %74 = arith.index_cast %c1_i32 : i32 to index
    %c0_24 = arith.constant 0 : index
    %c0_25 = arith.constant 0 : index
    %75 = vector.load %arg10[%74, %c0_24, %c0_25] : memref<8x2x32xf32, #tpu.memory_space<vmem>>, vector<1x2x32xf32>
    %76 = vector.shape_cast %75 : vector<1x2x32xf32> to vector<2x32xf32>
    %77 = vector.shape_cast %73 : vector<2x32xf32> to vector<1x2x32xf32>
    tpu.vector_store %arg10[%74, %c0_24, %c0_25], %77 {strides = array<i32>} : memref<8x2x32xf32, #tpu.memory_space<vmem>>, vector<1x2x32xf32>,
    %c2_i32_26 = arith.constant 2 : i32
    %c2_i32_27 = arith.constant 2 : i32
    %78 = arith.muli %c2_i32_26, %c2_i32_27 : i32
    %79 = arith.index_cast %78 : i32 to index
    %c0_28 = arith.constant 0 : index
    %80 = vector.load %arg9[%79, %c0_28] : memref<16x128xf32, #tpu.memory_space<vmem>>, vector<2x128xf32>
    %cst_29 = arith.constant dense<0.000000e+00> : vector<2x128xf32>
    %81 = tpu.matmul %73, %2, %cst_29 {dimension_numbers = #tpu.dot_dimension_numbers<[1], [0], [0], [1], [0, 0, 1, 1], [], []>, precision = #tpu.contract_precision<fp32>} : vector<2x32xf32>, vector<32x128xf32>, vector<2x128xf32> -> vector<2x128xf32>
    %82 = arith.addf %80, %81 : vector<2x128xf32>
    %83 = vector.extract_strided_slice %82 {offsets = [0, 0], sizes = [2, 32], strides = [1, 1]} : vector<2x128xf32> to vector<2x32xf32>
    %84 = arith.negf %83 : vector<2x32xf32>
    %85 = math.exp %84 : vector<2x32xf32>
    %cst_30 = arith.constant 1.000000e+00 : f32
    %86 = vector.broadcast %cst_30 : f32 to vector<2x32xf32>
    %87 = arith.addf %86, %85 : vector<2x32xf32>
    %88 = arith.divf %86, %87 : vector<2x32xf32>
    %89 = vector.extract_strided_slice %82 {offsets = [0, 32], sizes = [2, 32], strides = [1, 1]} : vector<2x128xf32> to vector<2x32xf32>
    %90 = arith.negf %89 : vector<2x32xf32>
    %91 = math.exp %90 : vector<2x32xf32>
    %cst_31 = arith.constant 1.000000e+00 : f32
    %92 = vector.broadcast %cst_31 : f32 to vector<2x32xf32>
    %93 = arith.addf %92, %91 : vector<2x32xf32>
    %94 = arith.divf %92, %93 : vector<2x32xf32>
    %95 = vector.extract_strided_slice %82 {offsets = [0, 64], sizes = [2, 32], strides = [1, 1]} : vector<2x128xf32> to vector<2x32xf32>
    %96 = math.tanh %95 : vector<2x32xf32>
    %97 = vector.extract_strided_slice %82 {offsets = [0, 96], sizes = [2, 32], strides = [1, 1]} : vector<2x128xf32> to vector<2x32xf32>
    %98 = arith.negf %97 : vector<2x32xf32>
    %99 = math.exp %98 : vector<2x32xf32>
    %cst_32 = arith.constant 1.000000e+00 : f32
    %100 = vector.broadcast %cst_32 : f32 to vector<2x32xf32>
    %101 = arith.addf %100, %99 : vector<2x32xf32>
    %102 = arith.divf %100, %101 : vector<2x32xf32>
    %103 = arith.mulf %94, %71 : vector<2x32xf32>
    %104 = arith.mulf %88, %96 : vector<2x32xf32>
    %105 = arith.addf %103, %104 : vector<2x32xf32>
    %106 = math.tanh %105 : vector<2x32xf32>
    %107 = arith.mulf %102, %106 : vector<2x32xf32>
    %108 = arith.index_cast %c2_i32_26 : i32 to index
    %c0_33 = arith.constant 0 : index
    %c0_34 = arith.constant 0 : index
    %109 = vector.load %arg10[%108, %c0_33, %c0_34] : memref<8x2x32xf32, #tpu.memory_space<vmem>>, vector<1x2x32xf32>
    %110 = vector.shape_cast %109 : vector<1x2x32xf32> to vector<2x32xf32>
    %111 = vector.shape_cast %107 : vector<2x32xf32> to vector<1x2x32xf32>
    tpu.vector_store %arg10[%108, %c0_33, %c0_34], %111 {strides = array<i32>} : memref<8x2x32xf32, #tpu.memory_space<vmem>>, vector<1x2x32xf32>,
    %c3_i32 = arith.constant 3 : i32
    %c2_i32_35 = arith.constant 2 : i32
    %112 = arith.muli %c3_i32, %c2_i32_35 : i32
    %113 = arith.index_cast %112 : i32 to index
    %c0_36 = arith.constant 0 : index
    %114 = vector.load %arg9[%113, %c0_36] : memref<16x128xf32, #tpu.memory_space<vmem>>, vector<2x128xf32>
    %cst_37 = arith.constant dense<0.000000e+00> : vector<2x128xf32>
    %115 = tpu.matmul %107, %2, %cst_37 {dimension_numbers = #tpu.dot_dimension_numbers<[1], [0], [0], [1], [0, 0, 1, 1], [], []>, precision = #tpu.contract_precision<fp32>} : vector<2x32xf32>, vector<32x128xf32>, vector<2x128xf32> -> vector<2x128xf32>
    %116 = arith.addf %114, %115 : vector<2x128xf32>
    %117 = vector.extract_strided_slice %116 {offsets = [0, 0], sizes = [2, 32], strides = [1, 1]} : vector<2x128xf32> to vector<2x32xf32>
    %118 = arith.negf %117 : vector<2x32xf32>
    %119 = math.exp %118 : vector<2x32xf32>
    %cst_38 = arith.constant 1.000000e+00 : f32
    %120 = vector.broadcast %cst_38 : f32 to vector<2x32xf32>
    %121 = arith.addf %120, %119 : vector<2x32xf32>
    %122 = arith.divf %120, %121 : vector<2x32xf32>
    %123 = vector.extract_strided_slice %116 {offsets = [0, 32], sizes = [2, 32], strides = [1, 1]} : vector<2x128xf32> to vector<2x32xf32>
    %124 = arith.negf %123 : vector<2x32xf32>
    %125 = math.exp %124 : vector<2x32xf32>
    %cst_39 = arith.constant 1.000000e+00 : f32
    %126 = vector.broadcast %cst_39 : f32 to vector<2x32xf32>
    %127 = arith.addf %126, %125 : vector<2x32xf32>
    %128 = arith.divf %126, %127 : vector<2x32xf32>
    %129 = vector.extract_strided_slice %116 {offsets = [0, 64], sizes = [2, 32], strides = [1, 1]} : vector<2x128xf32> to vector<2x32xf32>
    %130 = math.tanh %129 : vector<2x32xf32>
    %131 = vector.extract_strided_slice %116 {offsets = [0, 96], sizes = [2, 32], strides = [1, 1]} : vector<2x128xf32> to vector<2x32xf32>
    %132 = arith.negf %131 : vector<2x32xf32>
    %133 = math.exp %132 : vector<2x32xf32>
    %cst_40 = arith.constant 1.000000e+00 : f32
    %134 = vector.broadcast %cst_40 : f32 to vector<2x32xf32>
    %135 = arith.addf %134, %133 : vector<2x32xf32>
    %136 = arith.divf %134, %135 : vector<2x32xf32>
    %137 = arith.mulf %128, %105 : vector<2x32xf32>
    %138 = arith.mulf %122, %130 : vector<2x32xf32>
    %139 = arith.addf %137, %138 : vector<2x32xf32>
    %140 = math.tanh %139 : vector<2x32xf32>
    %141 = arith.mulf %136, %140 : vector<2x32xf32>
    %142 = arith.index_cast %c3_i32 : i32 to index
    %c0_41 = arith.constant 0 : index
    %c0_42 = arith.constant 0 : index
    %143 = vector.load %arg10[%142, %c0_41, %c0_42] : memref<8x2x32xf32, #tpu.memory_space<vmem>>, vector<1x2x32xf32>
    %144 = vector.shape_cast %143 : vector<1x2x32xf32> to vector<2x32xf32>
    %145 = vector.shape_cast %141 : vector<2x32xf32> to vector<1x2x32xf32>
    tpu.vector_store %arg10[%142, %c0_41, %c0_42], %145 {strides = array<i32>} : memref<8x2x32xf32, #tpu.memory_space<vmem>>, vector<1x2x32xf32>,
    %c4_i32 = arith.constant 4 : i32
    %c2_i32_43 = arith.constant 2 : i32
    %146 = arith.muli %c4_i32, %c2_i32_43 : i32
    %147 = arith.index_cast %146 : i32 to index
    %c0_44 = arith.constant 0 : index
    %148 = vector.load %arg9[%147, %c0_44] : memref<16x128xf32, #tpu.memory_space<vmem>>, vector<2x128xf32>
    %cst_45 = arith.constant dense<0.000000e+00> : vector<2x128xf32>
    %149 = tpu.matmul %141, %2, %cst_45 {dimension_numbers = #tpu.dot_dimension_numbers<[1], [0], [0], [1], [0, 0, 1, 1], [], []>, precision = #tpu.contract_precision<fp32>} : vector<2x32xf32>, vector<32x128xf32>, vector<2x128xf32> -> vector<2x128xf32>
    %150 = arith.addf %148, %149 : vector<2x128xf32>
    %151 = vector.extract_strided_slice %150 {offsets = [0, 0], sizes = [2, 32], strides = [1, 1]} : vector<2x128xf32> to vector<2x32xf32>
    %152 = arith.negf %151 : vector<2x32xf32>
    %153 = math.exp %152 : vector<2x32xf32>
    %cst_46 = arith.constant 1.000000e+00 : f32
    %154 = vector.broadcast %cst_46 : f32 to vector<2x32xf32>
    %155 = arith.addf %154, %153 : vector<2x32xf32>
    %156 = arith.divf %154, %155 : vector<2x32xf32>
    %157 = vector.extract_strided_slice %150 {offsets = [0, 32], sizes = [2, 32], strides = [1, 1]} : vector<2x128xf32> to vector<2x32xf32>
    %158 = arith.negf %157 : vector<2x32xf32>
    %159 = math.exp %158 : vector<2x32xf32>
    %cst_47 = arith.constant 1.000000e+00 : f32
    %160 = vector.broadcast %cst_47 : f32 to vector<2x32xf32>
    %161 = arith.addf %160, %159 : vector<2x32xf32>
    %162 = arith.divf %160, %161 : vector<2x32xf32>
    %163 = vector.extract_strided_slice %150 {offsets = [0, 64], sizes = [2, 32], strides = [1, 1]} : vector<2x128xf32> to vector<2x32xf32>
    %164 = math.tanh %163 : vector<2x32xf32>
    %165 = vector.extract_strided_slice %150 {offsets = [0, 96], sizes = [2, 32], strides = [1, 1]} : vector<2x128xf32> to vector<2x32xf32>
    %166 = arith.negf %165 : vector<2x32xf32>
    %167 = math.exp %166 : vector<2x32xf32>
    %cst_48 = arith.constant 1.000000e+00 : f32
    %168 = vector.broadcast %cst_48 : f32 to vector<2x32xf32>
    %169 = arith.addf %168, %167 : vector<2x32xf32>
    %170 = arith.divf %168, %169 : vector<2x32xf32>
    %171 = arith.mulf %162, %139 : vector<2x32xf32>
    %172 = arith.mulf %156, %164 : vector<2x32xf32>
    %173 = arith.addf %171, %172 : vector<2x32xf32>
    %174 = math.tanh %173 : vector<2x32xf32>
    %175 = arith.mulf %170, %174 : vector<2x32xf32>
    %176 = arith.index_cast %c4_i32 : i32 to index
    %c0_49 = arith.constant 0 : index
    %c0_50 = arith.constant 0 : index
    %177 = vector.load %arg10[%176, %c0_49, %c0_50] : memref<8x2x32xf32, #tpu.memory_space<vmem>>, vector<1x2x32xf32>
    %178 = vector.shape_cast %177 : vector<1x2x32xf32> to vector<2x32xf32>
    %179 = vector.shape_cast %175 : vector<2x32xf32> to vector<1x2x32xf32>
    tpu.vector_store %arg10[%176, %c0_49, %c0_50], %179 {strides = array<i32>} : memref<8x2x32xf32, #tpu.memory_space<vmem>>, vector<1x2x32xf32>,
    %c5_i32 = arith.constant 5 : i32
    %c2_i32_51 = arith.constant 2 : i32
    %180 = arith.muli %c5_i32, %c2_i32_51 : i32
    %181 = arith.index_cast %180 : i32 to index
    %c0_52 = arith.constant 0 : index
    %182 = vector.load %arg9[%181, %c0_52] : memref<16x128xf32, #tpu.memory_space<vmem>>, vector<2x128xf32>
    %cst_53 = arith.constant dense<0.000000e+00> : vector<2x128xf32>
    %183 = tpu.matmul %175, %2, %cst_53 {dimension_numbers = #tpu.dot_dimension_numbers<[1], [0], [0], [1], [0, 0, 1, 1], [], []>, precision = #tpu.contract_precision<fp32>} : vector<2x32xf32>, vector<32x128xf32>, vector<2x128xf32> -> vector<2x128xf32>
    %184 = arith.addf %182, %183 : vector<2x128xf32>
    %185 = vector.extract_strided_slice %184 {offsets = [0, 0], sizes = [2, 32], strides = [1, 1]} : vector<2x128xf32> to vector<2x32xf32>
    %186 = arith.negf %185 : vector<2x32xf32>
    %187 = math.exp %186 : vector<2x32xf32>
    %cst_54 = arith.constant 1.000000e+00 : f32
    %188 = vector.broadcast %cst_54 : f32 to vector<2x32xf32>
    %189 = arith.addf %188, %187 : vector<2x32xf32>
    %190 = arith.divf %188, %189 : vector<2x32xf32>
    %191 = vector.extract_strided_slice %184 {offsets = [0, 32], sizes = [2, 32], strides = [1, 1]} : vector<2x128xf32> to vector<2x32xf32>
    %192 = arith.negf %191 : vector<2x32xf32>
    %193 = math.exp %192 : vector<2x32xf32>
    %cst_55 = arith.constant 1.000000e+00 : f32
    %194 = vector.broadcast %cst_55 : f32 to vector<2x32xf32>
    %195 = arith.addf %194, %193 : vector<2x32xf32>
    %196 = arith.divf %194, %195 : vector<2x32xf32>
    %197 = vector.extract_strided_slice %184 {offsets = [0, 64], sizes = [2, 32], strides = [1, 1]} : vector<2x128xf32> to vector<2x32xf32>
    %198 = math.tanh %197 : vector<2x32xf32>
    %199 = vector.extract_strided_slice %184 {offsets = [0, 96], sizes = [2, 32], strides = [1, 1]} : vector<2x128xf32> to vector<2x32xf32>
    %200 = arith.negf %199 : vector<2x32xf32>
    %201 = math.exp %200 : vector<2x32xf32>
    %cst_56 = arith.constant 1.000000e+00 : f32
    %202 = vector.broadcast %cst_56 : f32 to vector<2x32xf32>
    %203 = arith.addf %202, %201 : vector<2x32xf32>
    %204 = arith.divf %202, %203 : vector<2x32xf32>
    %205 = arith.mulf %196, %173 : vector<2x32xf32>
    %206 = arith.mulf %190, %198 : vector<2x32xf32>
    %207 = arith.addf %205, %206 : vector<2x32xf32>
    %208 = math.tanh %207 : vector<2x32xf32>
    %209 = arith.mulf %204, %208 : vector<2x32xf32>
    %210 = arith.index_cast %c5_i32 : i32 to index
    %c0_57 = arith.constant 0 : index
    %c0_58 = arith.constant 0 : index
    %211 = vector.load %arg10[%210, %c0_57, %c0_58] : memref<8x2x32xf32, #tpu.memory_space<vmem>>, vector<1x2x32xf32>
    %212 = vector.shape_cast %211 : vector<1x2x32xf32> to vector<2x32xf32>
    %213 = vector.shape_cast %209 : vector<2x32xf32> to vector<1x2x32xf32>
    tpu.vector_store %arg10[%210, %c0_57, %c0_58], %213 {strides = array<i32>} : memref<8x2x32xf32, #tpu.memory_space<vmem>>, vector<1x2x32xf32>,
    %c6_i32 = arith.constant 6 : i32
    %c2_i32_59 = arith.constant 2 : i32
    %214 = arith.muli %c6_i32, %c2_i32_59 : i32
    %215 = arith.index_cast %214 : i32 to index
    %c0_60 = arith.constant 0 : index
    %216 = vector.load %arg9[%215, %c0_60] : memref<16x128xf32, #tpu.memory_space<vmem>>, vector<2x128xf32>
    %cst_61 = arith.constant dense<0.000000e+00> : vector<2x128xf32>
    %217 = tpu.matmul %209, %2, %cst_61 {dimension_numbers = #tpu.dot_dimension_numbers<[1], [0], [0], [1], [0, 0, 1, 1], [], []>, precision = #tpu.contract_precision<fp32>} : vector<2x32xf32>, vector<32x128xf32>, vector<2x128xf32> -> vector<2x128xf32>
    %218 = arith.addf %216, %217 : vector<2x128xf32>
    %219 = vector.extract_strided_slice %218 {offsets = [0, 0], sizes = [2, 32], strides = [1, 1]} : vector<2x128xf32> to vector<2x32xf32>
    %220 = arith.negf %219 : vector<2x32xf32>
    %221 = math.exp %220 : vector<2x32xf32>
    %cst_62 = arith.constant 1.000000e+00 : f32
    %222 = vector.broadcast %cst_62 : f32 to vector<2x32xf32>
    %223 = arith.addf %222, %221 : vector<2x32xf32>
    %224 = arith.divf %222, %223 : vector<2x32xf32>
    %225 = vector.extract_strided_slice %218 {offsets = [0, 32], sizes = [2, 32], strides = [1, 1]} : vector<2x128xf32> to vector<2x32xf32>
    %226 = arith.negf %225 : vector<2x32xf32>
    %227 = math.exp %226 : vector<2x32xf32>
    %cst_63 = arith.constant 1.000000e+00 : f32
    %228 = vector.broadcast %cst_63 : f32 to vector<2x32xf32>
    %229 = arith.addf %228, %227 : vector<2x32xf32>
    %230 = arith.divf %228, %229 : vector<2x32xf32>
    %231 = vector.extract_strided_slice %218 {offsets = [0, 64], sizes = [2, 32], strides = [1, 1]} : vector<2x128xf32> to vector<2x32xf32>
    %232 = math.tanh %231 : vector<2x32xf32>
    %233 = vector.extract_strided_slice %218 {offsets = [0, 96], sizes = [2, 32], strides = [1, 1]} : vector<2x128xf32> to vector<2x32xf32>
    %234 = arith.negf %233 : vector<2x32xf32>
    %235 = math.exp %234 : vector<2x32xf32>
    %cst_64 = arith.constant 1.000000e+00 : f32
    %236 = vector.broadcast %cst_64 : f32 to vector<2x32xf32>
    %237 = arith.addf %236, %235 : vector<2x32xf32>
    %238 = arith.divf %236, %237 : vector<2x32xf32>
    %239 = arith.mulf %230, %207 : vector<2x32xf32>
    %240 = arith.mulf %224, %232 : vector<2x32xf32>
    %241 = arith.addf %239, %240 : vector<2x32xf32>
    %242 = math.tanh %241 : vector<2x32xf32>
    %243 = arith.mulf %238, %242 : vector<2x32xf32>
    %244 = arith.index_cast %c6_i32 : i32 to index
    %c0_65 = arith.constant 0 : index
    %c0_66 = arith.constant 0 : index
    %245 = vector.load %arg10[%244, %c0_65, %c0_66] : memref<8x2x32xf32, #tpu.memory_space<vmem>>, vector<1x2x32xf32>
    %246 = vector.shape_cast %245 : vector<1x2x32xf32> to vector<2x32xf32>
    %247 = vector.shape_cast %243 : vector<2x32xf32> to vector<1x2x32xf32>
    tpu.vector_store %arg10[%244, %c0_65, %c0_66], %247 {strides = array<i32>} : memref<8x2x32xf32, #tpu.memory_space<vmem>>, vector<1x2x32xf32>,
    %c7_i32 = arith.constant 7 : i32
    %c2_i32_67 = arith.constant 2 : i32
    %248 = arith.muli %c7_i32, %c2_i32_67 : i32
    %249 = arith.index_cast %248 : i32 to index
    %c0_68 = arith.constant 0 : index
    %250 = vector.load %arg9[%249, %c0_68] : memref<16x128xf32, #tpu.memory_space<vmem>>, vector<2x128xf32>
    %cst_69 = arith.constant dense<0.000000e+00> : vector<2x128xf32>
    %251 = tpu.matmul %243, %2, %cst_69 {dimension_numbers = #tpu.dot_dimension_numbers<[1], [0], [0], [1], [0, 0, 1, 1], [], []>, precision = #tpu.contract_precision<fp32>} : vector<2x32xf32>, vector<32x128xf32>, vector<2x128xf32> -> vector<2x128xf32>
    %252 = arith.addf %250, %251 : vector<2x128xf32>
    %253 = vector.extract_strided_slice %252 {offsets = [0, 0], sizes = [2, 32], strides = [1, 1]} : vector<2x128xf32> to vector<2x32xf32>
    %254 = arith.negf %253 : vector<2x32xf32>
    %255 = math.exp %254 : vector<2x32xf32>
    %cst_70 = arith.constant 1.000000e+00 : f32
    %256 = vector.broadcast %cst_70 : f32 to vector<2x32xf32>
    %257 = arith.addf %256, %255 : vector<2x32xf32>
    %258 = arith.divf %256, %257 : vector<2x32xf32>
    %259 = vector.extract_strided_slice %252 {offsets = [0, 32], sizes = [2, 32], strides = [1, 1]} : vector<2x128xf32> to vector<2x32xf32>
    %260 = arith.negf %259 : vector<2x32xf32>
    %261 = math.exp %260 : vector<2x32xf32>
    %cst_71 = arith.constant 1.000000e+00 : f32
    %262 = vector.broadcast %cst_71 : f32 to vector<2x32xf32>
    %263 = arith.addf %262, %261 : vector<2x32xf32>
    %264 = arith.divf %262, %263 : vector<2x32xf32>
    %265 = vector.extract_strided_slice %252 {offsets = [0, 64], sizes = [2, 32], strides = [1, 1]} : vector<2x128xf32> to vector<2x32xf32>
    %266 = math.tanh %265 : vector<2x32xf32>
    %267 = vector.extract_strided_slice %252 {offsets = [0, 96], sizes = [2, 32], strides = [1, 1]} : vector<2x128xf32> to vector<2x32xf32>
    %268 = arith.negf %267 : vector<2x32xf32>
    %269 = math.exp %268 : vector<2x32xf32>
    %cst_72 = arith.constant 1.000000e+00 : f32
    %270 = vector.broadcast %cst_72 : f32 to vector<2x32xf32>
    %271 = arith.addf %270, %269 : vector<2x32xf32>
    %272 = arith.divf %270, %271 : vector<2x32xf32>
    %273 = arith.mulf %264, %241 : vector<2x32xf32>
    %274 = arith.mulf %258, %266 : vector<2x32xf32>
    %275 = arith.addf %273, %274 : vector<2x32xf32>
    %276 = math.tanh %275 : vector<2x32xf32>
    %277 = arith.mulf %272, %276 : vector<2x32xf32>
    %278 = arith.index_cast %c7_i32 : i32 to index
    %c0_73 = arith.constant 0 : index
    %c0_74 = arith.constant 0 : index
    %279 = vector.load %arg10[%278, %c0_73, %c0_74] : memref<8x2x32xf32, #tpu.memory_space<vmem>>, vector<1x2x32xf32>
    %280 = vector.shape_cast %279 : vector<1x2x32xf32> to vector<2x32xf32>
    %281 = vector.shape_cast %277 : vector<2x32xf32> to vector<1x2x32xf32>
    tpu.vector_store %arg10[%278, %c0_73, %c0_74], %281 {strides = array<i32>} : memref<8x2x32xf32, #tpu.memory_space<vmem>>, vector<1x2x32xf32>,
    %c8_i32 = arith.constant 8 : i32
    %c0_75 = arith.constant 0 : index
    %c0_76 = arith.constant 0 : index
    %282 = vector.load %arg4[%c0_75, %c0_76] : memref<64x128xf32, #tpu.memory_space<vmem>>, vector<64x128xf32>
    %c0_77 = arith.constant 0 : index
    %c0_78 = arith.constant 0 : index
    %283 = vector.load %arg5[%c0_77, %c0_78] : memref<1x128xf32, #tpu.memory_space<vmem>>, vector<1x128xf32>
    %c0_i32_79 = arith.constant 0 : i32
    %284 = arith.index_cast %c0_i32_79 : i32 to index
    %c0_80 = arith.constant 0 : index
    %c0_81 = arith.constant 0 : index
    %285 = vector.load %arg10[%284, %c0_80, %c0_81] : memref<8x2x32xf32, #tpu.memory_space<vmem>>, vector<1x2x32xf32>
    %286 = vector.shape_cast %285 : vector<1x2x32xf32> to vector<2x32xf32>
    %287 = tpu.concatenate %286, %0 in 1 : vector<2x32xf32>, vector<2x32xf32> -> vector<2x64xf32>
    %cst_82 = arith.constant dense<0.000000e+00> : vector<2x128xf32>
    %288 = tpu.matmul %287, %282, %cst_82 {dimension_numbers = #tpu.dot_dimension_numbers<[1], [0], [0], [1], [0, 0, 1, 1], [], []>, precision = #tpu.contract_precision<fp32>} : vector<2x64xf32>, vector<64x128xf32>, vector<2x128xf32> -> vector<2x128xf32>
    %289 = vector.broadcast %283 : vector<1x128xf32> to vector<2x128xf32>
    %290 = arith.addf %288, %289 : vector<2x128xf32>
    %291 = vector.extract_strided_slice %290 {offsets = [0, 0], sizes = [2, 32], strides = [1, 1]} : vector<2x128xf32> to vector<2x32xf32>
    %292 = arith.negf %291 : vector<2x32xf32>
    %293 = math.exp %292 : vector<2x32xf32>
    %cst_83 = arith.constant 1.000000e+00 : f32
    %294 = vector.broadcast %cst_83 : f32 to vector<2x32xf32>
    %295 = arith.addf %294, %293 : vector<2x32xf32>
    %296 = arith.divf %294, %295 : vector<2x32xf32>
    %297 = vector.extract_strided_slice %290 {offsets = [0, 32], sizes = [2, 32], strides = [1, 1]} : vector<2x128xf32> to vector<2x32xf32>
    %298 = arith.negf %297 : vector<2x32xf32>
    %299 = math.exp %298 : vector<2x32xf32>
    %cst_84 = arith.constant 1.000000e+00 : f32
    %300 = vector.broadcast %cst_84 : f32 to vector<2x32xf32>
    %301 = arith.addf %300, %299 : vector<2x32xf32>
    %302 = arith.divf %300, %301 : vector<2x32xf32>
    %303 = vector.extract_strided_slice %290 {offsets = [0, 64], sizes = [2, 32], strides = [1, 1]} : vector<2x128xf32> to vector<2x32xf32>
    %304 = math.tanh %303 : vector<2x32xf32>
    %305 = vector.extract_strided_slice %290 {offsets = [0, 96], sizes = [2, 32], strides = [1, 1]} : vector<2x128xf32> to vector<2x32xf32>
    %306 = arith.negf %305 : vector<2x32xf32>
    %307 = math.exp %306 : vector<2x32xf32>
    %cst_85 = arith.constant 1.000000e+00 : f32
    %308 = vector.broadcast %cst_85 : f32 to vector<2x32xf32>
    %309 = arith.addf %308, %307 : vector<2x32xf32>
    %310 = arith.divf %308, %309 : vector<2x32xf32>
    %311 = arith.mulf %302, %1 : vector<2x32xf32>
    %312 = arith.mulf %296, %304 : vector<2x32xf32>
    %313 = arith.addf %311, %312 : vector<2x32xf32>
    %314 = math.tanh %313 : vector<2x32xf32>
    %315 = arith.mulf %310, %314 : vector<2x32xf32>
    %c1_i32_86 = arith.constant 1 : i32
    %316 = arith.index_cast %c1_i32_86 : i32 to index
    %c0_87 = arith.constant 0 : index
    %c0_88 = arith.constant 0 : index
    %317 = vector.load %arg10[%316, %c0_87, %c0_88] : memref<8x2x32xf32, #tpu.memory_space<vmem>>, vector<1x2x32xf32>
    %318 = vector.shape_cast %317 : vector<1x2x32xf32> to vector<2x32xf32>
    %319 = tpu.concatenate %318, %315 in 1 : vector<2x32xf32>, vector<2x32xf32> -> vector<2x64xf32>
    %cst_89 = arith.constant dense<0.000000e+00> : vector<2x128xf32>
    %320 = tpu.matmul %319, %282, %cst_89 {dimension_numbers = #tpu.dot_dimension_numbers<[1], [0], [0], [1], [0, 0, 1, 1], [], []>, precision = #tpu.contract_precision<fp32>} : vector<2x64xf32>, vector<64x128xf32>, vector<2x128xf32> -> vector<2x128xf32>
    %321 = vector.broadcast %283 : vector<1x128xf32> to vector<2x128xf32>
    %322 = arith.addf %320, %321 : vector<2x128xf32>
    %323 = vector.extract_strided_slice %322 {offsets = [0, 0], sizes = [2, 32], strides = [1, 1]} : vector<2x128xf32> to vector<2x32xf32>
    %324 = arith.negf %323 : vector<2x32xf32>
    %325 = math.exp %324 : vector<2x32xf32>
    %cst_90 = arith.constant 1.000000e+00 : f32
    %326 = vector.broadcast %cst_90 : f32 to vector<2x32xf32>
    %327 = arith.addf %326, %325 : vector<2x32xf32>
    %328 = arith.divf %326, %327 : vector<2x32xf32>
    %329 = vector.extract_strided_slice %322 {offsets = [0, 32], sizes = [2, 32], strides = [1, 1]} : vector<2x128xf32> to vector<2x32xf32>
    %330 = arith.negf %329 : vector<2x32xf32>
    %331 = math.exp %330 : vector<2x32xf32>
    %cst_91 = arith.constant 1.000000e+00 : f32
    %332 = vector.broadcast %cst_91 : f32 to vector<2x32xf32>
    %333 = arith.addf %332, %331 : vector<2x32xf32>
    %334 = arith.divf %332, %333 : vector<2x32xf32>
    %335 = vector.extract_strided_slice %322 {offsets = [0, 64], sizes = [2, 32], strides = [1, 1]} : vector<2x128xf32> to vector<2x32xf32>
    %336 = math.tanh %335 : vector<2x32xf32>
    %337 = vector.extract_strided_slice %322 {offsets = [0, 96], sizes = [2, 32], strides = [1, 1]} : vector<2x128xf32> to vector<2x32xf32>
    %338 = arith.negf %337 : vector<2x32xf32>
    %339 = math.exp %338 : vector<2x32xf32>
    %cst_92 = arith.constant 1.000000e+00 : f32
    %340 = vector.broadcast %cst_92 : f32 to vector<2x32xf32>
    %341 = arith.addf %340, %339 : vector<2x32xf32>
    %342 = arith.divf %340, %341 : vector<2x32xf32>
    %343 = arith.mulf %334, %313 : vector<2x32xf32>
    %344 = arith.mulf %328, %336 : vector<2x32xf32>
    %345 = arith.addf %343, %344 : vector<2x32xf32>
    %346 = math.tanh %345 : vector<2x32xf32>
    %347 = arith.mulf %342, %346 : vector<2x32xf32>
    %c2_i32_93 = arith.constant 2 : i32
    %348 = arith.index_cast %c2_i32_93 : i32 to index
    %c0_94 = arith.constant 0 : index
    %c0_95 = arith.constant 0 : index
    %349 = vector.load %arg10[%348, %c0_94, %c0_95] : memref<8x2x32xf32, #tpu.memory_space<vmem>>, vector<1x2x32xf32>
    %350 = vector.shape_cast %349 : vector<1x2x32xf32> to vector<2x32xf32>
    %351 = tpu.concatenate %350, %347 in 1 : vector<2x32xf32>, vector<2x32xf32> -> vector<2x64xf32>
    %cst_96 = arith.constant dense<0.000000e+00> : vector<2x128xf32>
    %352 = tpu.matmul %351, %282, %cst_96 {dimension_numbers = #tpu.dot_dimension_numbers<[1], [0], [0], [1], [0, 0, 1, 1], [], []>, precision = #tpu.contract_precision<fp32>} : vector<2x64xf32>, vector<64x128xf32>, vector<2x128xf32> -> vector<2x128xf32>
    %353 = vector.broadcast %283 : vector<1x128xf32> to vector<2x128xf32>
    %354 = arith.addf %352, %353 : vector<2x128xf32>
    %355 = vector.extract_strided_slice %354 {offsets = [0, 0], sizes = [2, 32], strides = [1, 1]} : vector<2x128xf32> to vector<2x32xf32>
    %356 = arith.negf %355 : vector<2x32xf32>
    %357 = math.exp %356 : vector<2x32xf32>
    %cst_97 = arith.constant 1.000000e+00 : f32
    %358 = vector.broadcast %cst_97 : f32 to vector<2x32xf32>
    %359 = arith.addf %358, %357 : vector<2x32xf32>
    %360 = arith.divf %358, %359 : vector<2x32xf32>
    %361 = vector.extract_strided_slice %354 {offsets = [0, 32], sizes = [2, 32], strides = [1, 1]} : vector<2x128xf32> to vector<2x32xf32>
    %362 = arith.negf %361 : vector<2x32xf32>
    %363 = math.exp %362 : vector<2x32xf32>
    %cst_98 = arith.constant 1.000000e+00 : f32
    %364 = vector.broadcast %cst_98 : f32 to vector<2x32xf32>
    %365 = arith.addf %364, %363 : vector<2x32xf32>
    %366 = arith.divf %364, %365 : vector<2x32xf32>
    %367 = vector.extract_strided_slice %354 {offsets = [0, 64], sizes = [2, 32], strides = [1, 1]} : vector<2x128xf32> to vector<2x32xf32>
    %368 = math.tanh %367 : vector<2x32xf32>
    %369 = vector.extract_strided_slice %354 {offsets = [0, 96], sizes = [2, 32], strides = [1, 1]} : vector<2x128xf32> to vector<2x32xf32>
    %370 = arith.negf %369 : vector<2x32xf32>
    %371 = math.exp %370 : vector<2x32xf32>
    %cst_99 = arith.constant 1.000000e+00 : f32
    %372 = vector.broadcast %cst_99 : f32 to vector<2x32xf32>
    %373 = arith.addf %372, %371 : vector<2x32xf32>
    %374 = arith.divf %372, %373 : vector<2x32xf32>
    %375 = arith.mulf %366, %345 : vector<2x32xf32>
    %376 = arith.mulf %360, %368 : vector<2x32xf32>
    %377 = arith.addf %375, %376 : vector<2x32xf32>
    %378 = math.tanh %377 : vector<2x32xf32>
    %379 = arith.mulf %374, %378 : vector<2x32xf32>
    %c3_i32_100 = arith.constant 3 : i32
    %380 = arith.index_cast %c3_i32_100 : i32 to index
    %c0_101 = arith.constant 0 : index
    %c0_102 = arith.constant 0 : index
    %381 = vector.load %arg10[%380, %c0_101, %c0_102] : memref<8x2x32xf32, #tpu.memory_space<vmem>>, vector<1x2x32xf32>
    %382 = vector.shape_cast %381 : vector<1x2x32xf32> to vector<2x32xf32>
    %383 = tpu.concatenate %382, %379 in 1 : vector<2x32xf32>, vector<2x32xf32> -> vector<2x64xf32>
    %cst_103 = arith.constant dense<0.000000e+00> : vector<2x128xf32>
    %384 = tpu.matmul %383, %282, %cst_103 {dimension_numbers = #tpu.dot_dimension_numbers<[1], [0], [0], [1], [0, 0, 1, 1], [], []>, precision = #tpu.contract_precision<fp32>} : vector<2x64xf32>, vector<64x128xf32>, vector<2x128xf32> -> vector<2x128xf32>
    %385 = vector.broadcast %283 : vector<1x128xf32> to vector<2x128xf32>
    %386 = arith.addf %384, %385 : vector<2x128xf32>
    %387 = vector.extract_strided_slice %386 {offsets = [0, 0], sizes = [2, 32], strides = [1, 1]} : vector<2x128xf32> to vector<2x32xf32>
    %388 = arith.negf %387 : vector<2x32xf32>
    %389 = math.exp %388 : vector<2x32xf32>
    %cst_104 = arith.constant 1.000000e+00 : f32
    %390 = vector.broadcast %cst_104 : f32 to vector<2x32xf32>
    %391 = arith.addf %390, %389 : vector<2x32xf32>
    %392 = arith.divf %390, %391 : vector<2x32xf32>
    %393 = vector.extract_strided_slice %386 {offsets = [0, 32], sizes = [2, 32], strides = [1, 1]} : vector<2x128xf32> to vector<2x32xf32>
    %394 = arith.negf %393 : vector<2x32xf32>
    %395 = math.exp %394 : vector<2x32xf32>
    %cst_105 = arith.constant 1.000000e+00 : f32
    %396 = vector.broadcast %cst_105 : f32 to vector<2x32xf32>
    %397 = arith.addf %396, %395 : vector<2x32xf32>
    %398 = arith.divf %396, %397 : vector<2x32xf32>
    %399 = vector.extract_strided_slice %386 {offsets = [0, 64], sizes = [2, 32], strides = [1, 1]} : vector<2x128xf32> to vector<2x32xf32>
    %400 = math.tanh %399 : vector<2x32xf32>
    %401 = vector.extract_strided_slice %386 {offsets = [0, 96], sizes = [2, 32], strides = [1, 1]} : vector<2x128xf32> to vector<2x32xf32>
    %402 = arith.negf %401 : vector<2x32xf32>
    %403 = math.exp %402 : vector<2x32xf32>
    %cst_106 = arith.constant 1.000000e+00 : f32
    %404 = vector.broadcast %cst_106 : f32 to vector<2x32xf32>
    %405 = arith.addf %404, %403 : vector<2x32xf32>
    %406 = arith.divf %404, %405 : vector<2x32xf32>
    %407 = arith.mulf %398, %377 : vector<2x32xf32>
    %408 = arith.mulf %392, %400 : vector<2x32xf32>
    %409 = arith.addf %407, %408 : vector<2x32xf32>
    %410 = math.tanh %409 : vector<2x32xf32>
    %411 = arith.mulf %406, %410 : vector<2x32xf32>
    %c4_i32_107 = arith.constant 4 : i32
    %412 = arith.index_cast %c4_i32_107 : i32 to index
    %c0_108 = arith.constant 0 : index
    %c0_109 = arith.constant 0 : index
    %413 = vector.load %arg10[%412, %c0_108, %c0_109] : memref<8x2x32xf32, #tpu.memory_space<vmem>>, vector<1x2x32xf32>
    %414 = vector.shape_cast %413 : vector<1x2x32xf32> to vector<2x32xf32>
    %415 = tpu.concatenate %414, %411 in 1 : vector<2x32xf32>, vector<2x32xf32> -> vector<2x64xf32>
    %cst_110 = arith.constant dense<0.000000e+00> : vector<2x128xf32>
    %416 = tpu.matmul %415, %282, %cst_110 {dimension_numbers = #tpu.dot_dimension_numbers<[1], [0], [0], [1], [0, 0, 1, 1], [], []>, precision = #tpu.contract_precision<fp32>} : vector<2x64xf32>, vector<64x128xf32>, vector<2x128xf32> -> vector<2x128xf32>
    %417 = vector.broadcast %283 : vector<1x128xf32> to vector<2x128xf32>
    %418 = arith.addf %416, %417 : vector<2x128xf32>
    %419 = vector.extract_strided_slice %418 {offsets = [0, 0], sizes = [2, 32], strides = [1, 1]} : vector<2x128xf32> to vector<2x32xf32>
    %420 = arith.negf %419 : vector<2x32xf32>
    %421 = math.exp %420 : vector<2x32xf32>
    %cst_111 = arith.constant 1.000000e+00 : f32
    %422 = vector.broadcast %cst_111 : f32 to vector<2x32xf32>
    %423 = arith.addf %422, %421 : vector<2x32xf32>
    %424 = arith.divf %422, %423 : vector<2x32xf32>
    %425 = vector.extract_strided_slice %418 {offsets = [0, 32], sizes = [2, 32], strides = [1, 1]} : vector<2x128xf32> to vector<2x32xf32>
    %426 = arith.negf %425 : vector<2x32xf32>
    %427 = math.exp %426 : vector<2x32xf32>
    %cst_112 = arith.constant 1.000000e+00 : f32
    %428 = vector.broadcast %cst_112 : f32 to vector<2x32xf32>
    %429 = arith.addf %428, %427 : vector<2x32xf32>
    %430 = arith.divf %428, %429 : vector<2x32xf32>
    %431 = vector.extract_strided_slice %418 {offsets = [0, 64], sizes = [2, 32], strides = [1, 1]} : vector<2x128xf32> to vector<2x32xf32>
    %432 = math.tanh %431 : vector<2x32xf32>
    %433 = vector.extract_strided_slice %418 {offsets = [0, 96], sizes = [2, 32], strides = [1, 1]} : vector<2x128xf32> to vector<2x32xf32>
    %434 = arith.negf %433 : vector<2x32xf32>
    %435 = math.exp %434 : vector<2x32xf32>
    %cst_113 = arith.constant 1.000000e+00 : f32
    %436 = vector.broadcast %cst_113 : f32 to vector<2x32xf32>
    %437 = arith.addf %436, %435 : vector<2x32xf32>
    %438 = arith.divf %436, %437 : vector<2x32xf32>
    %439 = arith.mulf %430, %409 : vector<2x32xf32>
    %440 = arith.mulf %424, %432 : vector<2x32xf32>
    %441 = arith.addf %439, %440 : vector<2x32xf32>
    %442 = math.tanh %441 : vector<2x32xf32>
    %443 = arith.mulf %438, %442 : vector<2x32xf32>
    %c5_i32_114 = arith.constant 5 : i32
    %444 = arith.index_cast %c5_i32_114 : i32 to index
    %c0_115 = arith.constant 0 : index
    %c0_116 = arith.constant 0 : index
    %445 = vector.load %arg10[%444, %c0_115, %c0_116] : memref<8x2x32xf32, #tpu.memory_space<vmem>>, vector<1x2x32xf32>
    %446 = vector.shape_cast %445 : vector<1x2x32xf32> to vector<2x32xf32>
    %447 = tpu.concatenate %446, %443 in 1 : vector<2x32xf32>, vector<2x32xf32> -> vector<2x64xf32>
    %cst_117 = arith.constant dense<0.000000e+00> : vector<2x128xf32>
    %448 = tpu.matmul %447, %282, %cst_117 {dimension_numbers = #tpu.dot_dimension_numbers<[1], [0], [0], [1], [0, 0, 1, 1], [], []>, precision = #tpu.contract_precision<fp32>} : vector<2x64xf32>, vector<64x128xf32>, vector<2x128xf32> -> vector<2x128xf32>
    %449 = vector.broadcast %283 : vector<1x128xf32> to vector<2x128xf32>
    %450 = arith.addf %448, %449 : vector<2x128xf32>
    %451 = vector.extract_strided_slice %450 {offsets = [0, 0], sizes = [2, 32], strides = [1, 1]} : vector<2x128xf32> to vector<2x32xf32>
    %452 = arith.negf %451 : vector<2x32xf32>
    %453 = math.exp %452 : vector<2x32xf32>
    %cst_118 = arith.constant 1.000000e+00 : f32
    %454 = vector.broadcast %cst_118 : f32 to vector<2x32xf32>
    %455 = arith.addf %454, %453 : vector<2x32xf32>
    %456 = arith.divf %454, %455 : vector<2x32xf32>
    %457 = vector.extract_strided_slice %450 {offsets = [0, 32], sizes = [2, 32], strides = [1, 1]} : vector<2x128xf32> to vector<2x32xf32>
    %458 = arith.negf %457 : vector<2x32xf32>
    %459 = math.exp %458 : vector<2x32xf32>
    %cst_119 = arith.constant 1.000000e+00 : f32
    %460 = vector.broadcast %cst_119 : f32 to vector<2x32xf32>
    %461 = arith.addf %460, %459 : vector<2x32xf32>
    %462 = arith.divf %460, %461 : vector<2x32xf32>
    %463 = vector.extract_strided_slice %450 {offsets = [0, 64], sizes = [2, 32], strides = [1, 1]} : vector<2x128xf32> to vector<2x32xf32>
    %464 = math.tanh %463 : vector<2x32xf32>
    %465 = vector.extract_strided_slice %450 {offsets = [0, 96], sizes = [2, 32], strides = [1, 1]} : vector<2x128xf32> to vector<2x32xf32>
    %466 = arith.negf %465 : vector<2x32xf32>
    %467 = math.exp %466 : vector<2x32xf32>
    %cst_120 = arith.constant 1.000000e+00 : f32
    %468 = vector.broadcast %cst_120 : f32 to vector<2x32xf32>
    %469 = arith.addf %468, %467 : vector<2x32xf32>
    %470 = arith.divf %468, %469 : vector<2x32xf32>
    %471 = arith.mulf %462, %441 : vector<2x32xf32>
    %472 = arith.mulf %456, %464 : vector<2x32xf32>
    %473 = arith.addf %471, %472 : vector<2x32xf32>
    %474 = math.tanh %473 : vector<2x32xf32>
    %475 = arith.mulf %470, %474 : vector<2x32xf32>
    %c6_i32_121 = arith.constant 6 : i32
    %476 = arith.index_cast %c6_i32_121 : i32 to index
    %c0_122 = arith.constant 0 : index
    %c0_123 = arith.constant 0 : index
    %477 = vector.load %arg10[%476, %c0_122, %c0_123] : memref<8x2x32xf32, #tpu.memory_space<vmem>>, vector<1x2x32xf32>
    %478 = vector.shape_cast %477 : vector<1x2x32xf32> to vector<2x32xf32>
    %479 = tpu.concatenate %478, %475 in 1 : vector<2x32xf32>, vector<2x32xf32> -> vector<2x64xf32>
    %cst_124 = arith.constant dense<0.000000e+00> : vector<2x128xf32>
    %480 = tpu.matmul %479, %282, %cst_124 {dimension_numbers = #tpu.dot_dimension_numbers<[1], [0], [0], [1], [0, 0, 1, 1], [], []>, precision = #tpu.contract_precision<fp32>} : vector<2x64xf32>, vector<64x128xf32>, vector<2x128xf32> -> vector<2x128xf32>
    %481 = vector.broadcast %283 : vector<1x128xf32> to vector<2x128xf32>
    %482 = arith.addf %480, %481 : vector<2x128xf32>
    %483 = vector.extract_strided_slice %482 {offsets = [0, 0], sizes = [2, 32], strides = [1, 1]} : vector<2x128xf32> to vector<2x32xf32>
    %484 = arith.negf %483 : vector<2x32xf32>
    %485 = math.exp %484 : vector<2x32xf32>
    %cst_125 = arith.constant 1.000000e+00 : f32
    %486 = vector.broadcast %cst_125 : f32 to vector<2x32xf32>
    %487 = arith.addf %486, %485 : vector<2x32xf32>
    %488 = arith.divf %486, %487 : vector<2x32xf32>
    %489 = vector.extract_strided_slice %482 {offsets = [0, 32], sizes = [2, 32], strides = [1, 1]} : vector<2x128xf32> to vector<2x32xf32>
    %490 = arith.negf %489 : vector<2x32xf32>
    %491 = math.exp %490 : vector<2x32xf32>
    %cst_126 = arith.constant 1.000000e+00 : f32
    %492 = vector.broadcast %cst_126 : f32 to vector<2x32xf32>
    %493 = arith.addf %492, %491 : vector<2x32xf32>
    %494 = arith.divf %492, %493 : vector<2x32xf32>
    %495 = vector.extract_strided_slice %482 {offsets = [0, 64], sizes = [2, 32], strides = [1, 1]} : vector<2x128xf32> to vector<2x32xf32>
    %496 = math.tanh %495 : vector<2x32xf32>
    %497 = vector.extract_strided_slice %482 {offsets = [0, 96], sizes = [2, 32], strides = [1, 1]} : vector<2x128xf32> to vector<2x32xf32>
    %498 = arith.negf %497 : vector<2x32xf32>
    %499 = math.exp %498 : vector<2x32xf32>
    %cst_127 = arith.constant 1.000000e+00 : f32
    %500 = vector.broadcast %cst_127 : f32 to vector<2x32xf32>
    %501 = arith.addf %500, %499 : vector<2x32xf32>
    %502 = arith.divf %500, %501 : vector<2x32xf32>
    %503 = arith.mulf %494, %473 : vector<2x32xf32>
    %504 = arith.mulf %488, %496 : vector<2x32xf32>
    %505 = arith.addf %503, %504 : vector<2x32xf32>
    %506 = math.tanh %505 : vector<2x32xf32>
    %507 = arith.mulf %502, %506 : vector<2x32xf32>
    %c7_i32_128 = arith.constant 7 : i32
    %508 = arith.index_cast %c7_i32_128 : i32 to index
    %c0_129 = arith.constant 0 : index
    %c0_130 = arith.constant 0 : index
    %509 = vector.load %arg10[%508, %c0_129, %c0_130] : memref<8x2x32xf32, #tpu.memory_space<vmem>>, vector<1x2x32xf32>
    %510 = vector.shape_cast %509 : vector<1x2x32xf32> to vector<2x32xf32>
    %511 = tpu.concatenate %510, %507 in 1 : vector<2x32xf32>, vector<2x32xf32> -> vector<2x64xf32>
    %cst_131 = arith.constant dense<0.000000e+00> : vector<2x128xf32>
    %512 = tpu.matmul %511, %282, %cst_131 {dimension_numbers = #tpu.dot_dimension_numbers<[1], [0], [0], [1], [0, 0, 1, 1], [], []>, precision = #tpu.contract_precision<fp32>} : vector<2x64xf32>, vector<64x128xf32>, vector<2x128xf32> -> vector<2x128xf32>
    %513 = vector.broadcast %283 : vector<1x128xf32> to vector<2x128xf32>
    %514 = arith.addf %512, %513 : vector<2x128xf32>
    %515 = vector.extract_strided_slice %514 {offsets = [0, 0], sizes = [2, 32], strides = [1, 1]} : vector<2x128xf32> to vector<2x32xf32>
    %516 = arith.negf %515 : vector<2x32xf32>
    %517 = math.exp %516 : vector<2x32xf32>
    %cst_132 = arith.constant 1.000000e+00 : f32
    %518 = vector.broadcast %cst_132 : f32 to vector<2x32xf32>
    %519 = arith.addf %518, %517 : vector<2x32xf32>
    %520 = arith.divf %518, %519 : vector<2x32xf32>
    %521 = vector.extract_strided_slice %514 {offsets = [0, 32], sizes = [2, 32], strides = [1, 1]} : vector<2x128xf32> to vector<2x32xf32>
    %522 = arith.negf %521 : vector<2x32xf32>
    %523 = math.exp %522 : vector<2x32xf32>
    %cst_133 = arith.constant 1.000000e+00 : f32
    %524 = vector.broadcast %cst_133 : f32 to vector<2x32xf32>
    %525 = arith.addf %524, %523 : vector<2x32xf32>
    %526 = arith.divf %524, %525 : vector<2x32xf32>
    %527 = vector.extract_strided_slice %514 {offsets = [0, 64], sizes = [2, 32], strides = [1, 1]} : vector<2x128xf32> to vector<2x32xf32>
    %528 = math.tanh %527 : vector<2x32xf32>
    %529 = vector.extract_strided_slice %514 {offsets = [0, 96], sizes = [2, 32], strides = [1, 1]} : vector<2x128xf32> to vector<2x32xf32>
    %530 = arith.negf %529 : vector<2x32xf32>
    %531 = math.exp %530 : vector<2x32xf32>
    %cst_134 = arith.constant 1.000000e+00 : f32
    %532 = vector.broadcast %cst_134 : f32 to vector<2x32xf32>
    %533 = arith.addf %532, %531 : vector<2x32xf32>
    %534 = arith.divf %532, %533 : vector<2x32xf32>
    %535 = arith.mulf %526, %505 : vector<2x32xf32>
    %536 = arith.mulf %520, %528 : vector<2x32xf32>
    %537 = arith.addf %535, %536 : vector<2x32xf32>
    %538 = math.tanh %537 : vector<2x32xf32>
    %539 = arith.mulf %534, %538 : vector<2x32xf32>
    %c8_i32_135 = arith.constant 8 : i32
    %c0_136 = arith.constant 0 : index
    %c0_137 = arith.constant 0 : index
    %540 = vector.load %arg6[%c0_136, %c0_137] : memref<32x10xf32, #tpu.memory_space<vmem>>, vector<32x10xf32>
    %cst_138 = arith.constant dense<0.000000e+00> : vector<2x10xf32>
    %541 = tpu.matmul %539, %540, %cst_138 {dimension_numbers = #tpu.dot_dimension_numbers<[1], [0], [0], [1], [0, 0, 1, 1], [], []>, precision = #tpu.contract_precision<fp32>} : vector<2x32xf32>, vector<32x10xf32>, vector<2x10xf32> -> vector<2x10xf32>
    %c0_139 = arith.constant 0 : index
    %c0_140 = arith.constant 0 : index
    %542 = vector.load %arg7[%c0_139, %c0_140] : memref<1x10xf32, #tpu.memory_space<vmem>>, vector<1x10xf32>
    %543 = vector.broadcast %542 : vector<1x10xf32> to vector<2x10xf32>
    %544 = arith.addf %541, %543 : vector<2x10xf32>
    %c0_141 = arith.constant 0 : index
    %c0_142 = arith.constant 0 : index
    %545 = vector.load %arg8[%c0_141, %c0_142] : memref<2x10xf32, #tpu.memory_space<vmem>>, vector<2x10xf32>
    tpu.vector_store %arg8[%c0_141, %c0_142], %544 {strides = array<i32>} : memref<2x10xf32, #tpu.memory_space<vmem>>, vector<2x10xf32>,
    return
  }
}

</mosaic_0001>

<bundles_post_ra>
// kernel: rnn_forward.1
= control target key start
LH: loop header
LB: loop body
LE: loop exit
PB: predicated region body
PF: predicated region fallthrough
CT: control target
= control target key end

     0   :  { %13 = vsyncpa [#allocation5], 0  ;;  %s5923_s0 = inlined_call_operand.vmem [shape: f32[16,16], index: 0, kind: input, shape index: {}]   ;;  %s5924_s1 = inlined_call_operand.hbm [shape: f32[16,128], index: 1, kind: input, shape index: {}]   ;;  %s5925_s2 = inlined_call_operand.hbm [shape: f32[32,128], index: 2, kind: input, shape index: {}]   ;;  %s5926_s3 = inlined_call_operand.vmem [shape: f32[1,128], index: 3, kind: input, shape index: {}]   ;;  %s5927_s4 = inlined_call_operand.vmem [shape: f32[64,128], index: 4, kind: input, shape index: {}]   ;;  %s5928_s5 = inlined_call_operand.vmem [shape: f32[1,128], index: 5, kind: input, shape index: {}]   ;;  %s5929_s6 = inlined_call_operand.vmem [shape: f32[32,10], index: 6, kind: input, shape index: {}]   ;;  %s5930_s7 = inlined_call_operand.hbm [shape: f32[1,10], index: 7, kind: input, shape index: {}]   ;;  %s5931_s8 = inlined_call_operand.hbm [shape: f32[2,10], index: 8, kind: output, shape index: {}]  }
   0x1   :  { %14 = vsyncpa [#allocation8], 0 }
   0x2   :  { %15 = vsyncpa [#allocation6], 0  ;;  %s35_s29 = sshll.u32 %s5925_s2, 4  ;;  %s4894_s30 = smov [#allocation7]   ;;  %s36_s29 = int_to_ptr.hbm [resolvable:$true] %s35_s29 }
   0x3   :  { %s37_s9 = sshll.u32 %s4894_s30, 4  ;;  %s22_s12 = sshll.u32 %s5924_s1, 4  ;;  %s38_s9 = int_to_ptr.vmem [resolvable:$true] %s37_s9  ;;  %s23_s12 = int_to_ptr.hbm [resolvable:$true] %s22_s12 }
   0x4   :  { %s4895_s13 = smov 128   ;;  %s4896_s14 = smov 8  }
   0x5   :  { %43 = dma.hbm_to_vmem [thread:$0]  %s36_s29, 512, %s38_s9, [#allocation8], %s4895_s13, %s4895_s13, %s4896_s14  }
   0x6   :  { %s4897_s15 = smov [#allocation4]   ;;  %s57_s19 = sshll.u32 %s5930_s7, 4  ;;  %s58_s19 = int_to_ptr.hbm [resolvable:$true] %s57_s19 }
   0x7   :  { %s24_s16 = sshll.u32 %s4897_s15, 4  ;;  %s4898_s2 = smov [#allocation9]   ;;  %s25_s16 = int_to_ptr.vmem [resolvable:$true] %s24_s16 }
   0x8   :  { %30 = dma.hbm_to_vmem [thread:$0]  %s23_s12, 256, %s25_s16, [#allocation5], %s4895_s13, %s4895_s13, %s4896_s14  }
   0x9   :  { %s59_s20 = sshll.u32 %s4898_s2, 4  ;;  %s60_s20 = int_to_ptr.vmem [resolvable:$true] %s59_s20 }
   0xa   :  { %62 = dma.hbm_to_vmem [thread:$0]  %s58_s19, 16, %s60_s20, [#allocation8]  }
   0xb   :  { %4888 = dma.done.wait [#allocation5], 256  }
   0xc   :  { %4889 = vsyncadd [#allocation5], 4294967040 }
   0xd   :  { %4890 = dma.done.wait [#allocation8], 528  }
   0xe   :  { %4891 = vsyncadd [#allocation8], 4294966768  ;;  %vm87_vm0 = vcmask 130048   ;;  %v82_v0 = vld [vmem:[#allocation4 + $0x8] sm:$0xff]  ;;  %v81_v1 = vld [vmem:[#allocation4] sm:$0xff]  ;;  %v4899_v50 = vmov 0.0  }
   0xf   :  { %v79_v2 = vld [vmem:[%s5923_s0] sm:$0xff]  ;;  %v4960_v3 = vand.u32 4294901760, %v82_v0  ;;  %v4962_v4 = vand.u32 4294901760, %v81_v1  ;;  %v78_v6 = vld [vmem:[#allocation7 + $0x18] sm:$0xff]  ;;  %v76_v13 = vld [vmem:[#allocation7 + $0x8] sm:$0xff]  ;;  %s4901_s24 = smov 32  }
  0x10   :  { %v89_v5 = vsel %vm87_vm0, %v79_v2, 0  ;;  %v77_v7 = vld [vmem:[#allocation7 + $0x10] sm:$0xff]  ;;  %v80_v8 = vld [vmem:[%s5923_s0 + $0x8] sm:$0xff]  ;;  %v4969_v10 = vand.u32 4294901760, %v78_v6  ;;  %v75_v14 = vld [vmem:[#allocation7] sm:$0xff]  ;;  %v4979_v18 = vand.u32 4294901760, %v76_v13 }
  0x11   :  { %v4967_v9 = vand.u32 4294901760, %v89_v5  ;;  %v4971_v11 = vand.u32 4294901760, %v77_v7  ;;  %v92_v12 = vsel %vm87_vm0, %v80_v8, 0  ;;  %v144_v15 = vsub.f32 %v82_v0, %v4960_v3  ;;  %210 = vmatpush.msra.mxu3 %v4960_v3  ;;  %109 = vmatpush.msra.mxu0 %v4960_v3  ;;  %v4660_v51 = vld [vmem:[%s5926_s3] ss:$0 sm:$0xff]  ;;  %s4900_s3 = smov 64  }
  0x12   :  { %v150_v16 = vsub.f32 %v81_v1, %v4962_v4  ;;  %v4977_v17 = vand.u32 4294901760, %v92_v12  ;;  %v4983_v20 = vsub.f32 %v78_v6, %v4969_v10  ;;  %v4988_v22 = vand.u32 4294901760, %v75_v14  ;;  %s4624_s27 = sshll.u32 %s5931_s8, 4  ;;  %s4625_s27 = int_to_ptr.hbm [resolvable:$true] %s4624_s27 }
  0x13   :  { %v113_v19 = vsub.f32 %v89_v5, %v4967_v9  ;;  %v4986_v21 = vsub.f32 %v77_v7, %v4971_v11  ;;  %180 = vmatpush.msra.mxu2 %v144_v15  ;;  %212 = vmatpush.msra.mxu3 %v4962_v4  ;;  %v145_v23 = vand.u32 4294901760, %v144_v15  ;;  %v4993_v26 = vsub.f32 %v76_v13, %v4979_v18 }
  0x14   :  { %v151_v24 = vand.u32 4294901760, %v150_v16  ;;  %v121_v25 = vsub.f32 %v92_v12, %v4977_v17  ;;  %111 = vmatpush.msra.mxu0 %v4962_v4  ;;  %v4997_v28 = vand.u32 4294901760, %v4983_v20  ;;  %v5003_v30 = vsub.f32 %v75_v14, %v4988_v22 }
  0x15   :  { %v114_v27 = vand.u32 4294901760, %v113_v19  ;;  %v5000_v29 = vand.u32 4294901760, %v4986_v21  ;;  %183 = vmatpush.msra.mxu2 %v150_v16  ;;  %v146_v31 = vsub.f32 %v144_v15, %v145_v23  ;;  %v5006_v34 = vand.u32 4294901760, %v4993_v26 }
  0x16   :  { %243 = vmatpush.msrb.mxu0 %v145_v23  ;;  %v152_v32 = vsub.f32 %v150_v16, %v151_v24  ;;  %v122_v33 = vand.u32 4294901760, %v121_v25  ;;  %186 = vmatmul.f32.vlgmr.msra.gmra.mxu2 %v113_v19  ;;  %v335_v36 = vsub.f32 %v4983_v20, %v4997_v28  ;;  %v5013_v38 = vand.u32 4294901760, %v5003_v30 }
  0x17   :  { %216 = vmatmul.f32.vlgmr.msra.gmra.mxu3 %v114_v27  ;;  %v115_v35 = vsub.f32 %v113_v19, %v114_v27  ;;  %v341_v37 = vsub.f32 %v4986_v21, %v5000_v29  ;;  %304 = vmatpush.msrb.mxu2 %v4969_v10  ;;  %v147_v39 = vand.u32 4294901760, %v146_v31  ;;  %v347_v41 = vsub.f32 %v4993_v26, %v5006_v34 }
  0x18   :  { %v153_v40 = vand.u32 4294901760, %v152_v32  ;;  %247 = vmatpush.msrb.mxu0 %v151_v24  ;;  %v5018_v43 = vand.u32 4294901760, %v335_v36  ;;  %v353_v45 = vsub.f32 %v5003_v30, %v5013_v38  ;;  %v123_v46 = vsub.f32 %v121_v25, %v122_v33 }
  0x19   :  { %v116_v42 = vand.u32 4294901760, %v115_v35  ;;  %v5020_v44 = vand.u32 4294901760, %v341_v37  ;;  %148 = vmatpush.msra.mxu1 %v147_v39  ;;  %306 = vmatpush.msrb.mxu2 %v4971_v11  ;;  %v5027_v47 = vand.u32 4294901760, %v347_v41  ;;  %vm287_vm5 = vcmask 261120  }
  0x1a   :  { %337 = vmatpush.msrb.mxu3 %v5018_v43  ;;  %v5033_v48 = vand.u32 4294901760, %v353_v45  ;;  %v124_v49 = vand.u32 4294901760, %v123_v46  ;;  %vm518_vm6 = vcmask 254976  }
  0x1b   :  { %117 = vmatmul.f32.vlgmr.msra.gmra.mxu0 %v116_v42  ;;  %154 = vmatpush.msra.mxu1 %v153_v40 }
  0x1c   :  { %308 = vmatpush.msrb.mxu2 %v4979_v18  ;;  %156 = vmatmul.f32.vlgmr.msra.gmra.mxu1 %v4967_v9 }
  0x1d   :  { %343 = vmatpush.msrb.mxu3 %v5020_v44  ;;  %272 = vmatpush.msrb.mxu1 %v4960_v3 }
  0x1e   :  { %310 = vmatpush.msrb.mxu2 %v4988_v22  ;;  %433 = vmatpush.msra.mxu0 %v4997_v28 }
  0x1f   :  { %191 = vmatmul.f32.gmra.mxu2 %v121_v25  ;;  %222 = vmatmul.f32.gmra.mxu3 %v122_v33 }
  0x20   :  { %349 = vmatpush.msrb.mxu3 %v5027_v47  ;;  %274 = vmatpush.msrb.mxu1 %v4962_v4 }
  0x21   :  { %375 = vmatpush.msra.mxu2 %v4983_v20  ;;  %437 = vmatpush.msra.mxu0 %v5000_v29 }
  0x22   :  { %355 = vmatpush.msrb.mxu3 %v5033_v48  ;;  %464 = vmatpush.msra.mxu1 %v4969_v10 }
  0x23   :  { %125 = vmatmul.f32.gmra.mxu0 %v124_v49  ;;  %378 = vmatpush.msra.mxu2 %v4986_v21 }
  0x24   :  { %404 = vmatpush.msra.mxu3 %v4969_v10  ;;  %160 = vmatmul.f32.gmra.mxu1 %v4977_v17 }
  0x25   :  { %381 = vmatpush.msra.mxu2 %v4993_v26  ;;  %466 = vmatpush.msra.mxu1 %v4971_v11 }
  0x26   :  { %406 = vmatpush.msra.mxu3 %v4971_v11  ;;  %441 = vmatpush.msra.mxu0 %v5006_v34 }
  0x27   :  { %316 = vmatmul.f32.vlgmr.msrb.gmra.mxu2 %v4899_v50  ;;  %357 = vmatmul.f32.vlgmr.msrb.gmra.mxu3 %v4899_v50 }
  0x28   :  { %384 = vmatpush.msra.mxu2 %v5003_v30  ;;  %408 = vmatpush.msra.mxu3 %v4979_v18 }
  0x29   :  { %468 = vmatpush.msra.mxu1 %v4979_v18  ;;  %445 = vmatpush.msra.mxu0 %v5013_v38 }
  0x2a   :  { %410 = vmatpush.msra.mxu3 %v4988_v22  ;;  %536 = vmatpush.msrb.mxu2 %v4969_v10 }
  0x2b   :  { %249 = vmatmul.f32.vlgmr.msrb.gmra.mxu0 %v4967_v9  ;;  %470 = vmatpush.msra.mxu1 %v4988_v22 }
  0x2c   :  { %569 = vmatpush.msrb.mxu3 %v5018_v43  ;;  %276 = vmatmul.f32.vlgmr.msrb.gmra.mxu1 %v4967_v9 }
  0x2d   :  { %607 = vmatpush.msrb.mxu0 %v4983_v20  ;;  %636 = vmatpush.msrb.mxu1 %v4969_v10 }
  0x2e   :  { %575 = vmatpush.msrb.mxu3 %v5020_v44  ;;  %538 = vmatpush.msrb.mxu2 %v4971_v11 }
  0x2f   :  { %387 = vmatmul.f32.vlgmr.msra.gmra.mxu2 %v4899_v50  ;;  %414 = vmatmul.f32.vlgmr.msra.gmra.mxu3 %v4899_v50 }
  0x30   :  { %581 = vmatpush.msrb.mxu3 %v5027_v47  ;;  %610 = vmatpush.msrb.mxu0 %v4986_v21 }
  0x31   :  { %638 = vmatpush.msrb.mxu1 %v4971_v11  ;;  %540 = vmatpush.msrb.mxu2 %v4979_v18 }
  0x32   :  { %587 = vmatpush.msrb.mxu3 %v5033_v48  ;;  %613 = vmatpush.msrb.mxu0 %v4993_v26 }
  0x33   :  { %253 = vmatmul.f32.gmra.mxu0 %v4977_v17  ;;  %640 = vmatpush.msrb.mxu1 %v4979_v18 }
  0x34   :  { %616 = vmatpush.msrb.mxu0 %v5003_v30  ;;  %696 = vmatpush.msra.mxu3 %v4969_v10 }
  0x35   :  { %280 = vmatmul.f32.gmra.mxu1 %v4977_v17  ;;  %542 = vmatpush.msrb.mxu2 %v4988_v22 }
  0x36   :  { %642 = vmatpush.msrb.mxu1 %v4988_v22  ;;  %698 = vmatpush.msra.mxu3 %v4971_v11 }
  0x37   :  { %665 = vmatpush.msra.mxu2 %v4997_v28 }
  0x38   :  { %700 = vmatpush.msra.mxu3 %v4979_v18 }
  0x39   :  { %669 = vmatpush.msra.mxu2 %v5000_v29 }
  0x3a   :  { %702 = vmatpush.msra.mxu3 %v4988_v22 }
  0x3b   :  { %447 = vmatmul.f32.vlgmr.msra.gmra.mxu0 %v4899_v50  ;;  %673 = vmatpush.msra.mxu2 %v5006_v34 }
  0x3c   :  { %768 = vmatpush.msra.mxu0 %v4969_v10 }
  0x3d   :  { %472 = vmatmul.f32.vlgmr.msra.gmra.mxu1 %v4899_v50  ;;  %677 = vmatpush.msra.mxu2 %v5013_v38 }
  0x3e   :  { %801 = vmatpush.msra.mxu1 %v5018_v43  ;;  %770 = vmatpush.msra.mxu0 %v4971_v11 }
  0x40   :  { %807 = vmatpush.msra.mxu1 %v5020_v44  ;;  %772 = vmatpush.msra.mxu0 %v4979_v18 }
  0x42   :  { %813 = vmatpush.msra.mxu1 %v5027_v47  ;;  %774 = vmatpush.msra.mxu0 %v4988_v22 }
  0x44   :  { %819 = vmatpush.msra.mxu1 %v5033_v48 }
  0x98   :  { %v118_v52 = vpop.f32.mrf.mxu0 }
  0x99   :  { %v157_v53 = vpop.f32.mrf.mxu1  ;;  %v187_v54 = vpop.f32.mrf.mxu2  ;;  %v119_v55 = vadd.f32 %v4660_v51, %v118_v52 }
  0x9a   :  { %v217_v56 = vpop.f32.mrf.mxu3 }
  0x9b   :  { %v158_v57 = vadd.f32 %v157_v53, %v119_v55 }
  0x9d   :  { %v188_v61 = vadd.f32 %v187_v54, %v158_v57 }
  0x9f   :  { %v218_v0 = vadd.f32 %v217_v56, %v188_v61 }
  0xa0   :  { %v126_v58 = vpop.f32.mrf.mxu0 }
  0xa1   :  { %v161_v59 = vpop.f32.mrf.mxu1  ;;  %v127_v62 = vadd.f32 %v4660_v51, %v126_v58 }
  0xa2   :  { %v192_v60 = vpop.f32.mrf.mxu2  ;;  %v223_v63 = vpop.f32.mrf.mxu3 }
  0xa3   :  { %v162_v1 = vadd.f32 %v161_v59, %v127_v62 }
  0xa5   :  { %v193_v6 = vadd.f32 %v192_v60, %v162_v1 }
  0xa7   :  { %v224_v9 = vadd.f32 %v223_v63, %v193_v6 }
  0xa8   :  { %v250_v2 = vpop.f32.mrf.mxu0 }
  0xa9   :  { %v251_v3 = vadd.f32 %v250_v2, %v218_v0  ;;  %v277_v4 = vpop.f32.mrf.mxu1 }
  0xaa   :  { %v317_v5 = vpop.f32.mrf.mxu2  ;;  %v358_v8 = vpop.f32.mrf.mxu3 }
  0xab   :  { %v278_v7 = vadd.f32 %v277_v4, %v251_v3  ;;  %v359_v13 = vadd.f32 %v358_v8, %v317_v5 }
  0xad   :  { %284 = vst [vmem:[#allocation2] sm:$0xff] %v278_v7 }
  0xb0   :  { %v254_v12 = vpop.f32.mrf.mxu0 }
  0xb1   :  { %v255_v14 = vadd.f32 %v254_v12, %v224_v9 }
  0xb2   :  { %v281_v15 = vpop.f32.mrf.mxu1  ;;  %v388_v16 = vpop.f32.mrf.mxu2 }
  0xb3   :  { %v282_v17 = vadd.f32 %v281_v15, %v255_v14  ;;  %v389_v19 = vadd.f32 %v388_v16, %v359_v13  ;;  %v415_v23 = vpop.f32.mrf.mxu3 }
  0xb4   :  { %v286_v33 = vld [vmem:[#allocation2] sm:$0x3] }
  0xb5   :  { %285 = vst [vmem:[#allocation2 + $0x8] sm:$0xff] %v282_v17  ;;  %v416_v24 = vadd.f32 %v415_v23, %v389_v19  ;;  %v520_v23 = vld [vmem:[#allocation2 + $0x2] sm:$0x3] }
  0xb8   :  { %v448_v25 = vpop.f32.mrf.mxu0 }
  0xb9   :  { %v449_v27 = vadd.f32 %v448_v25, %v416_v24 }
  0xba   :  { %v473_v31 = vpop.f32.mrf.mxu1 }
  0xbb   :  { %v474_v32 = vadd.f32 %v473_v31, %v449_v27 }
  0xbd   :  { %v476_v35 = vadd.f32 %v474_v32, %v286_v33 }
  0xbf   :  { %4663 = vtanh.f32 %v476_v35  ;;  %v4635_v37 = vmul.f32 -1.442695, %v476_v35 }
  0xc1   :  { %4665 = vpow2.f32 %v4635_v37 }
  0xc5   :  { %v4664_v36 = vpop.eup %4663 }
  0xc6   :  { %499 = vrot.lane.b32.xlu0 %v4664_v36, %s4900_s3 }
  0xc7   :  { %v4666_v39 = vpop.eup %4665 }
  0xc8   :  { %v480_v40 = vadd.f32 1.0, %v4666_v39 }
  0xca   :  { %4667 = vrcp.f32 %v480_v40  ;;  %v492_v50 = vand.u32 2147483648, %v480_v40  ;;  %vm486_vm2 = vweird.f32 %v480_v40  ;;  %v490_v51 = vand.u32 2147483647, %v480_v40 }
  0xcc   :  { %v493_v53 = vor.u32 1.1754944e-38, %v492_v50  ;;  %vm491_vm4 = vcmp.eq.f32.partialorder %v490_v51, 8.507059e+37 }
  0xd0   :  { %v4668_v41 = vpop.eup %4667 }
  0xd1   :  { %v482_v42 = vmul.f32 %v4668_v41, %v480_v40  ;;  %vm487_vm1 = vweird.f32 %v4668_v41 }
  0xd2   :  { %vm488_vm3 = vmor %vm486_vm2, %vm487_vm1 }
  0xd3   :  { %v483_v45 = vsub.f32 1.0, %v482_v42 }
  0xd5   :  { %v484_v46 = vmul.f32 %v4668_v41, %v483_v45 }
  0xd7   :  { %v485_v49 = vadd.f32 %v4668_v41, %v484_v46 }
  0xd9   :  { %v489_v52 = vsel %vm488_vm3, %v4668_v41, %v485_v49 }
  0xda   :  { %v494_v55 = vsel %vm491_vm4, %v493_v53, %v489_v52 }
  0xdb   :  { %v497_v57 = vmul.f32 0.0, %v494_v55 }
 0x138   :  { %v500_v54 = vpop.permute.xlu0 %499 }
 0x139   :  { %v502_v56 = vmul.f32 %v500_v54, %v494_v55 }
 0x13b   :  { %504 = vrot.lane.b32.xlu0 %v502_v56, %s4901_s24 }
 0x1ad   :  { %v505_v58 = vpop.permute.xlu0 %504 }
 0x1ae   :  { %v5096_v59 = vadd.f32 %v505_v58, %v497_v57 }
 0x1b0   :  { %4669 = vtanh.f32 %v5096_v59 }
 0x1b6   :  { %v4670_v60 = vpop.eup %4669 }
 0x1b7   :  { %510 = vrot.lane.b32.xlu1 %v4670_v60, %s4900_s3 }
 0x229   :  { %v511_v61 = vpop.permute.xlu1 %510 }
 0x22a   :  { %v513_v62 = vmul.f32 %v511_v61, %v494_v55 }
 0x22c   :  { %515 = vrot.lane.b32.xlu1 %v513_v62, %s4901_s24 }
 0x29e   :  { %v516_v63 = vpop.permute.xlu1 %515 }
 0x29f   :  { %519 = vst.msk [vmem:[#allocation3] sm:$0x3] %vm518_vm6, %v516_v63  ;;  %v521_v0 = vsel %vm287_vm5, %v516_v63, 0 }
 0x2a0   :  { %v543_v1 = vand.u32 4294901760, %v521_v0 }
 0x2a2   :  { %v544_v2 = vsub.f32 %v521_v0, %v543_v1  ;;  %589 = vmatmul.f32.vlgmr.msrb.gmra.mxu3 %v543_v1 }
 0x2a3   :  { %868 = vmatpush.msrb.mxu3 %v4969_v10 }
 0x2a4   :  { %v545_v3 = vand.u32 4294901760, %v544_v2  ;;  %619 = vmatmul.f32.vlgmr.msrb.gmra.mxu0 %v544_v2 }
 0x2a5   :  { %870 = vmatpush.msrb.mxu3 %v4971_v11  ;;  %897 = vmatpush.msrb.mxu0 %v4997_v28 }
 0x2a6   :  { %v546_v4 = vsub.f32 %v544_v2, %v545_v3  ;;  %646 = vmatmul.f32.vlgmr.msrb.gmra.mxu1 %v545_v3 }
 0x2a7   :  { %872 = vmatpush.msrb.mxu3 %v4979_v18  ;;  %928 = vmatpush.msrb.mxu1 %v4969_v10 }
 0x2a8   :  { %v547_v5 = vand.u32 4294901760, %v546_v4  ;;  %901 = vmatpush.msrb.mxu0 %v5000_v29 }
 0x2a9   :  { %874 = vmatpush.msrb.mxu3 %v4988_v22  ;;  %930 = vmatpush.msrb.mxu1 %v4971_v11 }
 0x2aa   :  { %548 = vmatmul.f32.vlgmr.msrb.gmra.mxu2 %v547_v5  ;;  %704 = vmatmul.f32.vlgmr.msra.gmra.mxu3 %v543_v1 }
 0x2ab   :  { %839 = vmatpush.msrb.mxu2 %v4983_v20  ;;  %932 = vmatpush.msrb.mxu1 %v4979_v18 }
 0x2ac   :  { %905 = vmatpush.msrb.mxu0 %v5006_v34  ;;  %1033 = vmatpush.msra.mxu3 %v5018_v43 }
 0x2ad   :  { %842 = vmatpush.msrb.mxu2 %v4986_v21  ;;  %934 = vmatpush.msrb.mxu1 %v4988_v22 }
 0x2ae   :  { %909 = vmatpush.msrb.mxu0 %v5013_v38  ;;  %1039 = vmatpush.msra.mxu3 %v5020_v44 }
 0x2af   :  { %845 = vmatpush.msrb.mxu2 %v4993_v26 }
 0x2b0   :  { %1045 = vmatpush.msra.mxu3 %v5027_v47 }
 0x2b1   :  { %848 = vmatpush.msrb.mxu2 %v5003_v30 }
 0x2b2   :  { %679 = vmatmul.f32.vlgmr.msra.gmra.mxu2 %v543_v1  ;;  %1051 = vmatpush.msra.mxu3 %v5033_v48 }
 0x2b3   :  { %1000 = vmatpush.msra.mxu2 %v4969_v10 }
 0x2b5   :  { %1002 = vmatpush.msra.mxu2 %v4971_v11 }
 0x2b7   :  { %1004 = vmatpush.msra.mxu2 %v4979_v18 }
 0x2b9   :  { %1006 = vmatpush.msra.mxu2 %v4988_v22 }
 0x321   :  { %v620_v9 = vpop.f32.mrf.mxu0 }
 0x323   :  { %v647_v13 = vpop.f32.mrf.mxu1 }
 0x325   :  { %v590_v6 = vpop.f32.mrf.mxu3 }
 0x32d   :  { %v549_v7 = vpop.f32.mrf.mxu2  ;;  %v705_v17 = vpop.f32.mrf.mxu3 }
 0x32e   :  { %v591_v8 = vadd.f32 %v590_v6, %v549_v7 }
 0x330   :  { %v621_v12 = vadd.f32 %v620_v9, %v591_v8 }
 0x332   :  { %v648_v14 = vadd.f32 %v647_v13, %v621_v12  ;;  %v752_v13 = vld [vmem:[#allocation2 + $0x4] sm:$0x3] }
 0x335   :  { %v680_v15 = vpop.f32.mrf.mxu2 }
 0x336   :  { %v681_v16 = vadd.f32 %v680_v15, %v648_v14 }
 0x338   :  { %v706_v19 = vadd.f32 %v705_v17, %v681_v16 }
 0x33a   :  { %v708_v24 = vadd.f32 %v706_v19, %v520_v23 }
 0x33c   :  { %4671 = vtanh.f32 %v708_v24  ;;  %v4636_v27 = vmul.f32 -1.442695, %v708_v24 }
 0x33e   :  { %4673 = vpow2.f32 %v4636_v27 }
 0x342   :  { %v4672_v25 = vpop.eup %4671 }
 0x343   :  { %731 = vrot.lane.b32.xlu2 %v4672_v25, %s4900_s3 }
 0x344   :  { %v4674_v31 = vpop.eup %4673 }
 0x345   :  { %v712_v32 = vadd.f32 1.0, %v4674_v31 }
 0x347   :  { %4675 = vrcp.f32 %v712_v32  ;;  %v724_v40 = vand.u32 2147483648, %v712_v32  ;;  %vm718_vm8 = vweird.f32 %v712_v32  ;;  %v722_v41 = vand.u32 2147483647, %v712_v32 }
 0x349   :  { %v725_v45 = vor.u32 1.1754944e-38, %v724_v40  ;;  %vm723_vm10 = vcmp.eq.f32.partialorder %v722_v41, 8.507059e+37 }
 0x34d   :  { %v4676_v33 = vpop.eup %4675 }
 0x34e   :  { %v714_v35 = vmul.f32 %v4676_v33, %v712_v32  ;;  %vm719_vm7 = vweird.f32 %v4676_v33 }
 0x34f   :  { %vm720_vm9 = vmor %vm718_vm8, %vm719_vm7 }
 0x350   :  { %v715_v36 = vsub.f32 1.0, %v714_v35 }
 0x352   :  { %v716_v37 = vmul.f32 %v4676_v33, %v715_v36 }
 0x354   :  { %v717_v39 = vadd.f32 %v4676_v33, %v716_v37 }
 0x356   :  { %v721_v42 = vsel %vm720_vm9, %v4676_v33, %v717_v39 }
 0x357   :  { %v726_v49 = vsel %vm723_vm10, %v725_v45, %v721_v42 }
 0x358   :  { %v729_v51 = vmul.f32 %v726_v49, %v5096_v59 }
 0x39d   :  { %v732_v46 = vpop.permute.xlu2 %731 }
 0x39e   :  { %v734_v50 = vmul.f32 %v732_v46, %v726_v49 }
 0x3a0   :  { %736 = vrot.lane.b32.xlu2 %v734_v50, %s4901_s24 }
 0x3fa   :  { %v737_v52 = vpop.permute.xlu2 %736 }
 0x3fb   :  { %v5130_v53 = vadd.f32 %v737_v52, %v729_v51 }
 0x3fd   :  { %4677 = vtanh.f32 %v5130_v53 }
 0x403   :  { %v4678_v54 = vpop.eup %4677 }
 0x404   :  { %742 = vrot.lane.b32.xlu0 %v4678_v54, %s4900_s3 }
 0x476   :  { %v743_v55 = vpop.permute.xlu0 %742 }
 0x477   :  { %v745_v56 = vmul.f32 %v743_v55, %v726_v49 }
 0x479   :  { %747 = vrot.lane.b32.xlu1 %v745_v56, %s4901_s24 }
 0x4eb   :  { %v748_v57 = vpop.permute.xlu1 %747 }
 0x4ec   :  { %751 = vst.msk [vmem:[#allocation3 + $0x2] sm:$0x3] %vm518_vm6, %v748_v57  ;;  %v753_v58 = vsel %vm287_vm5, %v748_v57, 0 }
 0x4ed   :  { %v775_v60 = vand.u32 4294901760, %v753_v58 }
 0x4ef   :  { %v776_v61 = vsub.f32 %v753_v58, %v775_v60  ;;  %821 = vmatmul.f32.vlgmr.msra.gmra.mxu1 %v775_v60 }
 0x4f0   :  { %1100 = vmatpush.msra.mxu1 %v4969_v10 }
 0x4f1   :  { %v777_v59 = vand.u32 4294901760, %v776_v61  ;;  %851 = vmatmul.f32.vlgmr.msrb.gmra.mxu2 %v776_v61 }
 0x4f2   :  { %1102 = vmatpush.msra.mxu1 %v4971_v11  ;;  %1129 = vmatpush.msrb.mxu2 %v4997_v28 }
 0x4f3   :  { %v778_v62 = vsub.f32 %v776_v61, %v777_v59  ;;  %878 = vmatmul.f32.vlgmr.msrb.gmra.mxu3 %v777_v59 }
 0x4f4   :  { %1104 = vmatpush.msra.mxu1 %v4979_v18  ;;  %1160 = vmatpush.msrb.mxu3 %v4969_v10 }
 0x4f5   :  { %v779_v63 = vand.u32 4294901760, %v778_v62  ;;  %1133 = vmatpush.msrb.mxu2 %v5000_v29 }
 0x4f6   :  { %1106 = vmatpush.msra.mxu1 %v4988_v22  ;;  %1162 = vmatpush.msrb.mxu3 %v4971_v11 }
 0x4f7   :  { %780 = vmatmul.f32.vlgmr.msra.gmra.mxu0 %v779_v63  ;;  %936 = vmatmul.f32.vlgmr.msrb.gmra.mxu1 %v775_v60 }
 0x4f8   :  { %1071 = vmatpush.msra.mxu0 %v4983_v20  ;;  %1164 = vmatpush.msrb.mxu3 %v4979_v18 }
 0x4f9   :  { %1137 = vmatpush.msrb.mxu2 %v5006_v34  ;;  %1265 = vmatpush.msrb.mxu1 %v5018_v43 }
 0x4fa   :  { %1074 = vmatpush.msra.mxu0 %v4986_v21  ;;  %1166 = vmatpush.msrb.mxu3 %v4988_v22 }
 0x4fb   :  { %1141 = vmatpush.msrb.mxu2 %v5013_v38  ;;  %1271 = vmatpush.msrb.mxu1 %v5020_v44 }
 0x4fc   :  { %1077 = vmatpush.msra.mxu0 %v4993_v26 }
 0x4fd   :  { %1277 = vmatpush.msrb.mxu1 %v5027_v47 }
 0x4fe   :  { %1080 = vmatpush.msra.mxu0 %v5003_v30 }
 0x4ff   :  { %911 = vmatmul.f32.vlgmr.msrb.gmra.mxu0 %v775_v60  ;;  %1283 = vmatpush.msrb.mxu1 %v5033_v48 }
 0x500   :  { %1232 = vmatpush.msrb.mxu0 %v4969_v10 }
 0x502   :  { %1234 = vmatpush.msrb.mxu0 %v4971_v11 }
 0x504   :  { %1236 = vmatpush.msrb.mxu0 %v4979_v18 }
 0x506   :  { %1238 = vmatpush.msrb.mxu0 %v4988_v22 }
 0x56c   :  { %v822_v0 = vpop.f32.mrf.mxu1 }
 0x574   :  { %v781_v1 = vpop.f32.mrf.mxu0  ;;  %v852_v3 = vpop.f32.mrf.mxu2 }
 0x575   :  { %v823_v2 = vadd.f32 %v822_v0, %v781_v1  ;;  %v937_v9 = vpop.f32.mrf.mxu1 }
 0x576   :  { %v879_v5 = vpop.f32.mrf.mxu3 }
 0x577   :  { %v853_v4 = vadd.f32 %v852_v3, %v823_v2 }
 0x579   :  { %v880_v6 = vadd.f32 %v879_v5, %v853_v4  ;;  %v984_v5 = vld [vmem:[#allocation2 + $0x6] sm:$0x3] }
 0x57c   :  { %v912_v7 = vpop.f32.mrf.mxu0 }
 0x57d   :  { %v913_v8 = vadd.f32 %v912_v7, %v880_v6 }
 0x57f   :  { %v938_v12 = vadd.f32 %v937_v9, %v913_v8 }
 0x581   :  { %v940_v14 = vadd.f32 %v938_v12, %v752_v13 }
 0x583   :  { %4679 = vtanh.f32 %v940_v14  ;;  %v4637_v16 = vmul.f32 -1.442695, %v940_v14 }
 0x585   :  { %4681 = vpow2.f32 %v4637_v16 }
 0x589   :  { %v4680_v15 = vpop.eup %4679 }
 0x58a   :  { %963 = vrot.lane.b32.xlu2 %v4680_v15, %s4900_s3 }
 0x58b   :  { %v4682_v17 = vpop.eup %4681 }
 0x58c   :  { %v944_v19 = vadd.f32 1.0, %v4682_v17 }
 0x58e   :  { %4683 = vrcp.f32 %v944_v19  ;;  %v956_v32 = vand.u32 2147483648, %v944_v19  ;;  %vm950_vm12 = vweird.f32 %v944_v19  ;;  %v954_v33 = vand.u32 2147483647, %v944_v19 }
 0x590   :  { %v957_v36 = vor.u32 1.1754944e-38, %v956_v32  ;;  %vm955_vm14 = vcmp.eq.f32.partialorder %v954_v33, 8.507059e+37 }
 0x594   :  { %v4684_v23 = vpop.eup %4683 }
 0x595   :  { %v946_v24 = vmul.f32 %v4684_v23, %v944_v19  ;;  %vm951_vm11 = vweird.f32 %v4684_v23 }
 0x596   :  { %vm952_vm13 = vmor %vm950_vm12, %vm951_vm11 }
 0x597   :  { %v947_v25 = vsub.f32 1.0, %v946_v24 }
 0x599   :  { %v948_v27 = vmul.f32 %v4684_v23, %v947_v25 }
 0x59b   :  { %v949_v31 = vadd.f32 %v4684_v23, %v948_v27 }
 0x59d   :  { %v953_v35 = vsel %vm952_vm13, %v4684_v23, %v949_v31 }
 0x59e   :  { %v958_v39 = vsel %vm955_vm14, %v957_v36, %v953_v35 }
 0x59f   :  { %v961_v41 = vmul.f32 %v958_v39, %v5130_v53 }
 0x5e4   :  { %v964_v37 = vpop.permute.xlu2 %963 }
 0x5e5   :  { %v966_v40 = vmul.f32 %v964_v37, %v958_v39 }
 0x5e7   :  { %968 = vrot.lane.b32.xlu0 %v966_v40, %s4901_s24 }
 0x659   :  { %v969_v42 = vpop.permute.xlu0 %968 }
 0x65a   :  { %v5164_v45 = vadd.f32 %v969_v42, %v961_v41 }
 0x65c   :  { %4685 = vtanh.f32 %v5164_v45 }
 0x662   :  { %v4686_v46 = vpop.eup %4685 }
 0x663   :  { %974 = vrot.lane.b32.xlu1 %v4686_v46, %s4900_s3 }
 0x6d5   :  { %v975_v49 = vpop.permute.xlu1 %974 }
 0x6d6   :  { %v977_v50 = vmul.f32 %v975_v49, %v958_v39 }
 0x6d8   :  { %979 = vrot.lane.b32.xlu2 %v977_v50, %s4901_s24 }
 0x732   :  { %v980_v51 = vpop.permute.xlu2 %979 }
 0x733   :  { %983 = vst.msk [vmem:[#allocation3 + $0x4] sm:$0x3] %vm518_vm6, %v980_v51  ;;  %v985_v52 = vsel %vm287_vm5, %v980_v51, 0 }
 0x734   :  { %v1007_v54 = vand.u32 4294901760, %v985_v52 }
 0x736   :  { %v1008_v55 = vsub.f32 %v985_v52, %v1007_v54  ;;  %1053 = vmatmul.f32.vlgmr.msra.gmra.mxu3 %v1007_v54 }
 0x737   :  { %1332 = vmatpush.msra.mxu3 %v4969_v10 }
 0x738   :  { %v1009_v53 = vand.u32 4294901760, %v1008_v55  ;;  %1083 = vmatmul.f32.vlgmr.msra.gmra.mxu0 %v1008_v55 }
 0x739   :  { %1334 = vmatpush.msra.mxu3 %v4971_v11  ;;  %1361 = vmatpush.msra.mxu0 %v4997_v28 }
 0x73a   :  { %v1010_v56 = vsub.f32 %v1008_v55, %v1009_v53  ;;  %1110 = vmatmul.f32.vlgmr.msra.gmra.mxu1 %v1009_v53 }
 0x73b   :  { %1336 = vmatpush.msra.mxu3 %v4979_v18  ;;  %1392 = vmatpush.msra.mxu1 %v4969_v10 }
 0x73c   :  { %v1011_v57 = vand.u32 4294901760, %v1010_v56  ;;  %1365 = vmatpush.msra.mxu0 %v5000_v29 }
 0x73d   :  { %1338 = vmatpush.msra.mxu3 %v4988_v22  ;;  %1394 = vmatpush.msra.mxu1 %v4971_v11 }
 0x73e   :  { %1012 = vmatmul.f32.vlgmr.msra.gmra.mxu2 %v1011_v57  ;;  %1168 = vmatmul.f32.vlgmr.msrb.gmra.mxu3 %v1007_v54 }
 0x73f   :  { %1303 = vmatpush.msra.mxu2 %v4983_v20  ;;  %1396 = vmatpush.msra.mxu1 %v4979_v18 }
 0x740   :  { %1369 = vmatpush.msra.mxu0 %v5006_v34  ;;  %1497 = vmatpush.msrb.mxu3 %v5018_v43 }
 0x741   :  { %1306 = vmatpush.msra.mxu2 %v4986_v21  ;;  %1398 = vmatpush.msra.mxu1 %v4988_v22 }
 0x742   :  { %1373 = vmatpush.msra.mxu0 %v5013_v38  ;;  %1503 = vmatpush.msrb.mxu3 %v5020_v44 }
 0x743   :  { %1309 = vmatpush.msra.mxu2 %v4993_v26 }
 0x744   :  { %1509 = vmatpush.msrb.mxu3 %v5027_v47 }
 0x745   :  { %1312 = vmatpush.msra.mxu2 %v5003_v30 }
 0x746   :  { %1143 = vmatmul.f32.vlgmr.msrb.gmra.mxu2 %v1007_v54  ;;  %1515 = vmatpush.msrb.mxu3 %v5033_v48 }
 0x747   :  { %1464 = vmatpush.msrb.mxu2 %v4969_v10 }
 0x749   :  { %1466 = vmatpush.msrb.mxu2 %v4971_v11 }
 0x74b   :  { %1468 = vmatpush.msrb.mxu2 %v4979_v18 }
 0x74d   :  { %1470 = vmatpush.msrb.mxu2 %v4988_v22 }
 0x7b5   :  { %v1084_v59 = vpop.f32.mrf.mxu0 }
 0x7b7   :  { %v1111_v63 = vpop.f32.mrf.mxu1 }
 0x7b9   :  { %v1054_v58 = vpop.f32.mrf.mxu3 }
 0x7c1   :  { %v1013_v60 = vpop.f32.mrf.mxu2  ;;  %v1169_v3 = vpop.f32.mrf.mxu3 }
 0x7c2   :  { %v1055_v61 = vadd.f32 %v1054_v58, %v1013_v60 }
 0x7c4   :  { %v1085_v62 = vadd.f32 %v1084_v59, %v1055_v61 }
 0x7c6   :  { %v1112_v0 = vadd.f32 %v1111_v63, %v1085_v62  ;;  %v1216_v63 = vld [vmem:[#allocation2 + $0x8] sm:$0x3] }
 0x7c9   :  { %v1144_v1 = vpop.f32.mrf.mxu2 }
 0x7ca   :  { %v1145_v2 = vadd.f32 %v1144_v1, %v1112_v0 }
 0x7cc   :  { %v1170_v4 = vadd.f32 %v1169_v3, %v1145_v2 }
 0x7ce   :  { %v1172_v6 = vadd.f32 %v1170_v4, %v984_v5 }
 0x7d0   :  { %4687 = vtanh.f32 %v1172_v6  ;;  %v4638_v8 = vmul.f32 -1.442695, %v1172_v6 }
 0x7d2   :  { %4689 = vpow2.f32 %v4638_v8 }
 0x7d6   :  { %v4688_v7 = vpop.eup %4687 }
 0x7d7   :  { %1195 = vrot.lane.b32.xlu0 %v4688_v7, %s4900_s3 }
 0x7d8   :  { %v4690_v9 = vpop.eup %4689 }
 0x7d9   :  { %v1176_v12 = vadd.f32 1.0, %v4690_v9 }
 0x7db   :  { %4691 = vrcp.f32 %v1176_v12  ;;  %v1188_v19 = vand.u32 2147483648, %v1176_v12  ;;  %vm1182_vm0 = vweird.f32 %v1176_v12  ;;  %v1186_v23 = vand.u32 2147483647, %v1176_v12 }
 0x7dd   :  { %v1189_v25 = vor.u32 1.1754944e-38, %v1188_v19  ;;  %vm1187_vm2 = vcmp.eq.f32.partialorder %v1186_v23, 8.507059e+37 }
 0x7e1   :  { %v4692_v13 = vpop.eup %4691 }
 0x7e2   :  { %v1178_v14 = vmul.f32 %v4692_v13, %v1176_v12  ;;  %vm1183_vm15 = vweird.f32 %v4692_v13 }
 0x7e3   :  { %vm1184_vm1 = vmor %vm1182_vm0, %vm1183_vm15 }
 0x7e4   :  { %v1179_v15 = vsub.f32 1.0, %v1178_v14 }
 0x7e6   :  { %v1180_v16 = vmul.f32 %v4692_v13, %v1179_v15 }
 0x7e8   :  { %v1181_v17 = vadd.f32 %v4692_v13, %v1180_v16 }
 0x7ea   :  { %v1185_v24 = vsel %vm1184_vm1, %v4692_v13, %v1181_v17  ;;  %vm2158_vm1 = vcmask 523264  }
 0x7eb   :  { %v1190_v31 = vsel %vm1187_vm2, %v1189_v25, %v1185_v24 }
 0x7ec   :  { %v1193_v33 = vmul.f32 %v1190_v31, %v5164_v45 }
 0x849   :  { %v1196_v27 = vpop.permute.xlu0 %1195 }
 0x84a   :  { %v1198_v32 = vmul.f32 %v1196_v27, %v1190_v31 }
 0x84c   :  { %1200 = vrot.lane.b32.xlu1 %v1198_v32, %s4901_s24 }
 0x8be   :  { %v1201_v35 = vpop.permute.xlu1 %1200 }
 0x8bf   :  { %v5198_v36 = vadd.f32 %v1201_v35, %v1193_v33 }
 0x8c1   :  { %4693 = vtanh.f32 %v5198_v36 }
 0x8c7   :  { %v4694_v37 = vpop.eup %4693 }
 0x8c8   :  { %1206 = vrot.lane.b32.xlu2 %v4694_v37, %s4900_s3 }
 0x922   :  { %v1207_v39 = vpop.permute.xlu2 %1206 }
 0x923   :  { %v1209_v40 = vmul.f32 %v1207_v39, %v1190_v31 }
 0x925   :  { %1211 = vrot.lane.b32.xlu0 %v1209_v40, %s4901_s24 }
 0x997   :  { %v1212_v41 = vpop.permute.xlu0 %1211 }
 0x998   :  { %1215 = vst.msk [vmem:[#allocation3 + $0x6] sm:$0x3] %vm518_vm6, %v1212_v41  ;;  %v1217_v42 = vsel %vm287_vm5, %v1212_v41, 0 }
 0x999   :  { %v1239_v46 = vand.u32 4294901760, %v1217_v42 }
 0x99b   :  { %v1240_v49 = vsub.f32 %v1217_v42, %v1239_v46  ;;  %1285 = vmatmul.f32.vlgmr.msrb.gmra.mxu1 %v1239_v46 }
 0x99c   :  { %1564 = vmatpush.msrb.mxu1 %v4969_v10 }
 0x99d   :  { %v1241_v45 = vand.u32 4294901760, %v1240_v49  ;;  %1315 = vmatmul.f32.vlgmr.msra.gmra.mxu2 %v1240_v49 }
 0x99e   :  { %1566 = vmatpush.msrb.mxu1 %v4971_v11  ;;  %1593 = vmatpush.msra.mxu2 %v4997_v28 }
 0x99f   :  { %v1242_v50 = vsub.f32 %v1240_v49, %v1241_v45  ;;  %1342 = vmatmul.f32.vlgmr.msra.gmra.mxu3 %v1241_v45 }
 0x9a0   :  { %1568 = vmatpush.msrb.mxu1 %v4979_v18  ;;  %1624 = vmatpush.msra.mxu3 %v4969_v10 }
 0x9a1   :  { %v1243_v51 = vand.u32 4294901760, %v1242_v50  ;;  %1597 = vmatpush.msra.mxu2 %v5000_v29 }
 0x9a2   :  { %1570 = vmatpush.msrb.mxu1 %v4988_v22  ;;  %1626 = vmatpush.msra.mxu3 %v4971_v11 }
 0x9a3   :  { %1244 = vmatmul.f32.vlgmr.msrb.gmra.mxu0 %v1243_v51  ;;  %1400 = vmatmul.f32.vlgmr.msra.gmra.mxu1 %v1239_v46 }
 0x9a4   :  { %1535 = vmatpush.msrb.mxu0 %v4983_v20  ;;  %1628 = vmatpush.msra.mxu3 %v4979_v18 }
 0x9a5   :  { %1601 = vmatpush.msra.mxu2 %v5006_v34  ;;  %1729 = vmatpush.msra.mxu1 %v5018_v43 }
 0x9a6   :  { %1538 = vmatpush.msrb.mxu0 %v4986_v21  ;;  %1630 = vmatpush.msra.mxu3 %v4988_v22 }
 0x9a7   :  { %1605 = vmatpush.msra.mxu2 %v5013_v38  ;;  %1735 = vmatpush.msra.mxu1 %v5020_v44 }
 0x9a8   :  { %1541 = vmatpush.msrb.mxu0 %v4993_v26 }
 0x9a9   :  { %1741 = vmatpush.msra.mxu1 %v5027_v47 }
 0x9aa   :  { %1544 = vmatpush.msrb.mxu0 %v5003_v30 }
 0x9ab   :  { %1375 = vmatmul.f32.vlgmr.msra.gmra.mxu0 %v1239_v46  ;;  %1747 = vmatpush.msra.mxu1 %v5033_v48 }
 0x9ac   :  { %1696 = vmatpush.msra.mxu0 %v4969_v10 }
 0x9ae   :  { %1698 = vmatpush.msra.mxu0 %v4971_v11 }
 0x9b0   :  { %1700 = vmatpush.msra.mxu0 %v4979_v18 }
 0x9b2   :  { %1702 = vmatpush.msra.mxu0 %v4988_v22 }
 0xa18   :  { %v1286_v52 = vpop.f32.mrf.mxu1 }
 0xa20   :  { %v1245_v54 = vpop.f32.mrf.mxu0  ;;  %v1316_v53 = vpop.f32.mrf.mxu2 }
 0xa21   :  { %v1287_v55 = vadd.f32 %v1286_v52, %v1245_v54  ;;  %v1401_v59 = vpop.f32.mrf.mxu1 }
 0xa22   :  { %v1343_v57 = vpop.f32.mrf.mxu3 }
 0xa23   :  { %v1317_v56 = vadd.f32 %v1316_v53, %v1287_v55 }
 0xa25   :  { %v1344_v58 = vadd.f32 %v1343_v57, %v1317_v56 }
 0xa28   :  { %v1376_v60 = vpop.f32.mrf.mxu0 }
 0xa29   :  { %v1377_v61 = vadd.f32 %v1376_v60, %v1344_v58 }
 0xa2b   :  { %v1402_v62 = vadd.f32 %v1401_v59, %v1377_v61 }
 0xa2d   :  { %v1404_v0 = vadd.f32 %v1402_v62, %v1216_v63 }
 0xa2f   :  { %4695 = vtanh.f32 %v1404_v0  ;;  %v4639_v2 = vmul.f32 -1.442695, %v1404_v0 }
 0xa31   :  { %4697 = vpow2.f32 %v4639_v2 }
 0xa35   :  { %v4696_v1 = vpop.eup %4695 }
 0xa36   :  { %1427 = vrot.lane.b32.xlu1 %v4696_v1, %s4900_s3 }
 0xa37   :  { %v4698_v3 = vpop.eup %4697 }
 0xa38   :  { %v1408_v4 = vadd.f32 1.0, %v4698_v3 }
 0xa3a   :  { %4699 = vrcp.f32 %v1408_v4  ;;  %v1420_v12 = vand.u32 2147483648, %v1408_v4  ;;  %vm1414_vm4 = vweird.f32 %v1408_v4  ;;  %v1418_v13 = vand.u32 2147483647, %v1408_v4 }
 0xa3c   :  { %v1421_v15 = vor.u32 1.1754944e-38, %v1420_v12  ;;  %vm1419_vm8 = vcmp.eq.f32.partialorder %v1418_v13, 8.507059e+37 }
 0xa40   :  { %v4700_v5 = vpop.eup %4699 }
 0xa41   :  { %v1410_v6 = vmul.f32 %v4700_v5, %v1408_v4  ;;  %vm1415_vm3 = vweird.f32 %v4700_v5 }
 0xa42   :  { %vm1416_vm7 = vmor %vm1414_vm4, %vm1415_vm3 }
 0xa43   :  { %v1411_v7 = vsub.f32 1.0, %v1410_v6 }
 0xa45   :  { %v1412_v8 = vmul.f32 %v4700_v5, %v1411_v7 }
 0xa47   :  { %v1413_v9 = vadd.f32 %v4700_v5, %v1412_v8 }
 0xa49   :  { %v1417_v14 = vsel %vm1416_vm7, %v4700_v5, %v1413_v9 }
 0xa4a   :  { %v1422_v17 = vsel %vm1419_vm8, %v1421_v15, %v1417_v14 }
 0xa4b   :  { %v1425_v23 = vmul.f32 %v1422_v17, %v5198_v36 }
 0xaa8   :  { %v1428_v16 = vpop.permute.xlu1 %1427 }
 0xaa9   :  { %v1430_v19 = vmul.f32 %v1428_v16, %v1422_v17 }
 0xaab   :  { %1432 = vrot.lane.b32.xlu2 %v1430_v19, %s4901_s24 }
 0xb05   :  { %v1433_v24 = vpop.permute.xlu2 %1432 }
 0xb06   :  { %v5232_v25 = vadd.f32 %v1433_v24, %v1425_v23 }
 0xb08   :  { %4701 = vtanh.f32 %v5232_v25 }
 0xb0e   :  { %v4702_v27 = vpop.eup %4701 }
 0xb0f   :  { %1438 = vrot.lane.b32.xlu0 %v4702_v27, %s4900_s3 }
 0xb81   :  { %v1439_v31 = vpop.permute.xlu0 %1438 }
 0xb82   :  { %v1441_v32 = vmul.f32 %v1439_v31, %v1422_v17 }
 0xb84   :  { %1443 = vrot.lane.b32.xlu1 %v1441_v32, %s4901_s24 }
 0xbf6   :  { %v1444_v33 = vpop.permute.xlu1 %1443 }
 0xbf7   :  { %1447 = vst.msk [vmem:[#allocation3 + $0x8] sm:$0x3] %vm518_vm6, %v1444_v33  ;;  %v1449_v35 = vsel %vm287_vm5, %v1444_v33, 0  ;;  %v1680_v33 = vld [vmem:[#allocation2 + $0xc] sm:$0x3] }
 0xbf8   :  { %v1471_v37 = vand.u32 4294901760, %v1449_v35 }
 0xbfa   :  { %v1472_v39 = vsub.f32 %v1449_v35, %v1471_v37  ;;  %1517 = vmatmul.f32.vlgmr.msrb.gmra.mxu3 %v1471_v37 }
 0xbfb   :  { %1796 = vmatpush.msrb.mxu3 %v4969_v10 }
 0xbfc   :  { %v1473_v36 = vand.u32 4294901760, %v1472_v39  ;;  %1547 = vmatmul.f32.vlgmr.msrb.gmra.mxu0 %v1472_v39 }
 0xbfd   :  { %1798 = vmatpush.msrb.mxu3 %v4971_v11  ;;  %1825 = vmatpush.msrb.mxu0 %v4997_v28 }
 0xbfe   :  { %v1474_v40 = vsub.f32 %v1472_v39, %v1473_v36  ;;  %1574 = vmatmul.f32.vlgmr.msrb.gmra.mxu1 %v1473_v36 }
 0xbff   :  { %1800 = vmatpush.msrb.mxu3 %v4979_v18  ;;  %1856 = vmatpush.msrb.mxu1 %v4969_v10 }
 0xc00   :  { %v1475_v41 = vand.u32 4294901760, %v1474_v40  ;;  %1829 = vmatpush.msrb.mxu0 %v5000_v29 }
 0xc01   :  { %1802 = vmatpush.msrb.mxu3 %v4988_v22  ;;  %1858 = vmatpush.msrb.mxu1 %v4971_v11 }
 0xc02   :  { %1476 = vmatmul.f32.vlgmr.msrb.gmra.mxu2 %v1475_v41  ;;  %1632 = vmatmul.f32.vlgmr.msra.gmra.mxu3 %v1471_v37 }
 0xc03   :  { %1767 = vmatpush.msrb.mxu2 %v4983_v20  ;;  %1860 = vmatpush.msrb.mxu1 %v4979_v18 }
 0xc04   :  { %1833 = vmatpush.msrb.mxu0 %v5006_v34  ;;  %1961 = vmatpush.msra.mxu3 %v5018_v43 }
 0xc05   :  { %1770 = vmatpush.msrb.mxu2 %v4986_v21  ;;  %1862 = vmatpush.msrb.mxu1 %v4988_v22 }
 0xc06   :  { %1837 = vmatpush.msrb.mxu0 %v5013_v38  ;;  %1967 = vmatpush.msra.mxu3 %v5020_v44 }
 0xc07   :  { %1773 = vmatpush.msrb.mxu2 %v4993_v26 }
 0xc08   :  { %1973 = vmatpush.msra.mxu3 %v5027_v47 }
 0xc09   :  { %1776 = vmatpush.msrb.mxu2 %v5003_v30 }
 0xc0a   :  { %1607 = vmatmul.f32.vlgmr.msra.gmra.mxu2 %v1471_v37  ;;  %1979 = vmatpush.msra.mxu3 %v5033_v48  ;;  %v1448_v48 = vld [vmem:[#allocation2 + $0xa] sm:$0x3] }
 0xc0b   :  { %1928 = vmatpush.msra.mxu2 %v4969_v10 }
 0xc0d   :  { %1930 = vmatpush.msra.mxu2 %v4971_v11 }
 0xc0f   :  { %1932 = vmatpush.msra.mxu2 %v4979_v18 }
 0xc11   :  { %1934 = vmatpush.msra.mxu2 %v4988_v22 }
 0xc79   :  { %v1548_v46 = vpop.f32.mrf.mxu0 }
 0xc7b   :  { %v1575_v45 = vpop.f32.mrf.mxu1 }
 0xc7d   :  { %v1518_v43 = vpop.f32.mrf.mxu3 }
 0xc85   :  { %v1477_v42 = vpop.f32.mrf.mxu2  ;;  %v1633_v52 = vpop.f32.mrf.mxu3 }
 0xc86   :  { %v1519_v44 = vadd.f32 %v1518_v43, %v1477_v42 }
 0xc88   :  { %v1549_v49 = vadd.f32 %v1548_v46, %v1519_v44 }
 0xc8a   :  { %v1576_v47 = vadd.f32 %v1575_v45, %v1549_v49 }
 0xc8d   :  { %v1608_v50 = vpop.f32.mrf.mxu2 }
 0xc8e   :  { %v1609_v51 = vadd.f32 %v1608_v50, %v1576_v47 }
 0xc90   :  { %v1634_v54 = vadd.f32 %v1633_v52, %v1609_v51 }
 0xc92   :  { %v1636_v55 = vadd.f32 %v1634_v54, %v1448_v48  ;;  %v2151_v48 = vld [vmem:[%s5927_s4 + $0x38] sm:$0xff] }
 0xc94   :  { %4703 = vtanh.f32 %v1636_v55  ;;  %v4640_v56 = vmul.f32 -1.442695, %v1636_v55  ;;  %v2150_v55 = vld [vmem:[%s5927_s4 + $0x30] sm:$0xff] }
 0xc96   :  { %4705 = vpow2.f32 %v4640_v56  ;;  %v5305_v56 = vand.u32 4294901760, %v2151_v48 }
 0xc9a   :  { %v4704_v53 = vpop.eup %4703 }
 0xc9b   :  { %1659 = vrot.lane.b32.xlu2 %v4704_v53, %s4900_s3  ;;  %v2149_v53 = vld [vmem:[%s5927_s4 + $0x28] sm:$0xff] }
 0xc9c   :  { %v4706_v57 = vpop.eup %4705 }
 0xc9d   :  { %v1640_v58 = vadd.f32 1.0, %v4706_v57  ;;  %v5307_v57 = vand.u32 4294901760, %v2150_v55 }
 0xc9f   :  { %4707 = vrcp.f32 %v1640_v58  ;;  %v1652_v0 = vand.u32 2147483648, %v1640_v58  ;;  %vm1646_vm10 = vweird.f32 %v1640_v58  ;;  %v1650_v1 = vand.u32 2147483647, %v1640_v58 }
 0xca1   :  { %v1653_v3 = vor.u32 1.1754944e-38, %v1652_v0  ;;  %vm1651_vm12 = vcmp.eq.f32.partialorder %v1650_v1, 8.507059e+37 }
 0xca5   :  { %v4708_v60 = vpop.eup %4707 }
 0xca6   :  { %v1642_v61 = vmul.f32 %v4708_v60, %v1640_v58  ;;  %vm1647_vm9 = vweird.f32 %v4708_v60  ;;  %v5309_v58 = vand.u32 4294901760, %v2149_v53 }
 0xca7   :  { %vm1648_vm11 = vmor %vm1646_vm10, %vm1647_vm9 }
 0xca8   :  { %v1643_v59 = vsub.f32 1.0, %v1642_v61 }
 0xcaa   :  { %v1644_v62 = vmul.f32 %v4708_v60, %v1643_v59  ;;  %v5318_v59 = vsub.f32 %v2151_v48, %v5305_v56 }
 0xcac   :  { %v1645_v63 = vadd.f32 %v4708_v60, %v1644_v62  ;;  %v5321_v62 = vsub.f32 %v2150_v55, %v5307_v57  ;;  %v5331_v1 = vand.u32 4294901760, %v5318_v59 }
 0xcae   :  { %v1649_v2 = vsel %vm1648_vm11, %v4708_v60, %v1645_v63  ;;  %v2148_v60 = vld [vmem:[%s5927_s4 + $0x20] sm:$0xff]  ;;  %v5324_v63 = vsub.f32 %v2149_v53, %v5309_v58 }
 0xcaf   :  { %v1654_v5 = vsel %vm1651_vm12, %v1653_v3, %v1649_v2  ;;  %v5314_v61 = vand.u32 4294901760, %v2148_v60  ;;  %v5334_v2 = vand.u32 4294901760, %v5321_v62 }
 0xcb0   :  { %v1657_v7 = vmul.f32 %v1654_v5, %v5232_v25  ;;  %v5337_v3 = vand.u32 4294901760, %v5324_v63 }
 0xcb1   :  { %v5327_v0 = vsub.f32 %v2148_v60, %v5314_v61 }
 0xcf5   :  { %v1660_v4 = vpop.permute.xlu2 %1659 }
 0xcf6   :  { %v1662_v6 = vmul.f32 %v1660_v4, %v1654_v5  ;;  %v2147_v4 = vld [vmem:[%s5927_s4 + $0x18] sm:$0xff] }
 0xcf8   :  { %1664 = vrot.lane.b32.xlu0 %v1662_v6, %s4901_s24  ;;  %v2206_v6 = vsub.f32 %v5318_v59, %v5331_v1 }
 0xd6a   :  { %v1665_v8 = vpop.permute.xlu0 %1664 }
 0xd6b   :  { %v5266_v9 = vadd.f32 %v1665_v8, %v1657_v7  ;;  %v2212_v7 = vsub.f32 %v5321_v62, %v5334_v2  ;;  %v2218_v8 = vsub.f32 %v5324_v63, %v5337_v3 }
 0xd6d   :  { %4709 = vtanh.f32 %v5266_v9 }
 0xd73   :  { %v4710_v12 = vpop.eup %4709 }
 0xd74   :  { %1670 = vrot.lane.b32.xlu1 %v4710_v12, %s4900_s3  ;;  %v5354_v12 = vand.u32 4294901760, %v2212_v7 }
 0xde6   :  { %v1671_v13 = vpop.permute.xlu1 %1670 }
 0xde7   :  { %v1673_v14 = vmul.f32 %v1671_v13, %v1654_v5  ;;  %v5343_v5 = vand.u32 4294901760, %v5327_v0  ;;  %v5357_v13 = vand.u32 4294901760, %v2147_v4 }
 0xde9   :  { %1675 = vrot.lane.b32.xlu2 %v1673_v14, %s4901_s24  ;;  %v2224_v14 = vsub.f32 %v5327_v0, %v5343_v5 }
 0xe43   :  { %v1676_v15 = vpop.permute.xlu2 %1675 }
 0xe44   :  { %1679 = vst.msk [vmem:[#allocation3 + $0xa] sm:$0x3] %vm518_vm6, %v1676_v15  ;;  %v1681_v16 = vsel %vm287_vm5, %v1676_v15, 0  ;;  %v5362_v15 = vand.u32 4294901760, %v2218_v8 }
 0xe45   :  { %v1703_v17 = vand.u32 4294901760, %v1681_v16 }
 0xe47   :  { %v1704_v19 = vsub.f32 %v1681_v16, %v1703_v17  ;;  %1749 = vmatmul.f32.vlgmr.msra.gmra.mxu1 %v1703_v17  ;;  %v5366_v16 = vand.u32 4294901760, %v2224_v14 }
 0xe48   :  { %2028 = vmatpush.msra.mxu1 %v4969_v10 }
 0xe49   :  { %v1705_v23 = vand.u32 4294901760, %v1704_v19  ;;  %1779 = vmatmul.f32.vlgmr.msrb.gmra.mxu2 %v1704_v19 }
 0xe4a   :  { %2030 = vmatpush.msra.mxu1 %v4971_v11  ;;  %2057 = vmatpush.msrb.mxu2 %v4997_v28 }
 0xe4b   :  { %v1706_v24 = vsub.f32 %v1704_v19, %v1705_v23  ;;  %1806 = vmatmul.f32.vlgmr.msrb.gmra.mxu3 %v1705_v23  ;;  %v2146_v23 = vld [vmem:[%s5927_s4 + $0x10] sm:$0xff] }
 0xe4c   :  { %2032 = vmatpush.msra.mxu1 %v4979_v18  ;;  %2088 = vmatpush.msrb.mxu3 %v4969_v10 }
 0xe4d   :  { %v1707_v25 = vand.u32 4294901760, %v1706_v24  ;;  %2061 = vmatpush.msrb.mxu2 %v5000_v29  ;;  %v5374_v24 = vand.u32 4294901760, %v2146_v23 }
 0xe4e   :  { %2034 = vmatpush.msra.mxu1 %v4988_v22  ;;  %2090 = vmatpush.msrb.mxu3 %v4971_v11 }
 0xe4f   :  { %1708 = vmatmul.f32.vlgmr.msra.gmra.mxu0 %v1707_v25  ;;  %1864 = vmatmul.f32.vlgmr.msrb.gmra.mxu1 %v1703_v17  ;;  %v5377_v25 = vsub.f32 %v2147_v4, %v5357_v13 }
 0xe50   :  { %1999 = vmatpush.msra.mxu0 %v4983_v20  ;;  %2092 = vmatpush.msrb.mxu3 %v4979_v18 }
 0xe51   :  { %2065 = vmatpush.msrb.mxu2 %v5006_v34 }
 0xe52   :  { %2002 = vmatpush.msra.mxu0 %v4986_v21  ;;  %2094 = vmatpush.msrb.mxu3 %v4988_v22 }
 0xe53   :  { %2069 = vmatpush.msrb.mxu2 %v5013_v38 }
 0xe54   :  { %2005 = vmatpush.msra.mxu0 %v4993_v26 }
 0xe56   :  { %2008 = vmatpush.msra.mxu0 %v5003_v30 }
 0xe57   :  { %1839 = vmatmul.f32.vlgmr.msrb.gmra.mxu0 %v1703_v17 }
 0xe58   :  { %2171 = vmatpush.msrb.mxu0 %v5305_v56 }
 0xe5a   :  { %2173 = vmatpush.msrb.mxu0 %v5307_v57 }
 0xe5c   :  { %2175 = vmatpush.msrb.mxu0 %v5309_v58 }
 0xe5e   :  { %2177 = vmatpush.msrb.mxu0 %v5314_v61 }
 0xe60   :  { %2179 = vmatpush.msrb.mxu0 %v5357_v13 }
 0xe62   :  { %2181 = vmatpush.msrb.mxu0 %v5374_v24 }
 0xec4   :  { %v1750_v10 = vpop.f32.mrf.mxu1 }
 0xecc   :  { %v1709_v11 = vpop.f32.mrf.mxu0  ;;  %v1780_v29 = vpop.f32.mrf.mxu2 }
 0xecd   :  { %v1751_v28 = vadd.f32 %v1750_v10, %v1709_v11  ;;  %v1865_v32 = vpop.f32.mrf.mxu1  ;;  %v2145_v10 = vld [vmem:[%s5927_s4 + $0x8] sm:$0xff]  ;;  %v5384_v11 = vand.u32 4294901760, %v5377_v25 }
 0xece   :  { %v1807_v27 = vpop.f32.mrf.mxu3 }
 0xecf   :  { %v1781_v20 = vadd.f32 %v1780_v29, %v1751_v28  ;;  %v5386_v28 = vand.u32 4294901760, %v2145_v10  ;;  %v5389_v29 = vsub.f32 %v2146_v23, %v5374_v24 }
 0xed1   :  { %v1808_v18 = vadd.f32 %v1807_v27, %v1781_v20  ;;  %v2144_v20 = vld [vmem:[%s5927_s4] sm:$0xff]  ;;  %v2230_v27 = vsub.f32 %v5377_v25, %v5384_v11  ;;  %2183 = vmatpush.msrb.mxu0 %v5386_v28 }
 0xed4   :  { %v1840_v31 = vpop.f32.mrf.mxu0 }
 0xed5   :  { %v1841_v34 = vadd.f32 %v1840_v31, %v1808_v18  ;;  %v5398_v18 = vand.u32 4294901760, %v5389_v29  ;;  %v5400_v31 = vand.u32 4294901760, %v2144_v20 }
 0xed7   :  { %v1866_v21 = vadd.f32 %v1865_v32, %v1841_v34  ;;  %v5403_v34 = vsub.f32 %v2145_v10, %v5386_v28  ;;  %v5405_v32 = vand.u32 4294901760, %v2230_v27  ;;  %2185 = vmatpush.msrb.mxu0 %v5400_v31 }
 0xed9   :  { %v1868_v22 = vadd.f32 %v1866_v21, %v1680_v33  ;;  %v2236_v21 = vsub.f32 %v5389_v29, %v5398_v18  ;;  %v5411_v33 = vand.u32 4294901760, %v5403_v34 }
 0xedb   :  { %4711 = vtanh.f32 %v1868_v22  ;;  %v4641_v26 = vmul.f32 -1.442695, %v1868_v22  ;;  %v5414_v22 = vsub.f32 %v2144_v20, %v5400_v31 }
 0xedd   :  { %4713 = vpow2.f32 %v4641_v26  ;;  %v2242_v26 = vsub.f32 %v5403_v34, %v5411_v33 }
 0xee1   :  { %v4712_v38 = vpop.eup %4711 }
 0xee2   :  { %1891 = vrot.lane.b32.xlu0 %v4712_v38, %s4900_s3  ;;  %v5417_v38 = vand.u32 4294901760, %v2236_v21 }
 0xee3   :  { %v4714_v30 = vpop.eup %4713 }
 0xee4   :  { %v1872_v35 = vadd.f32 1.0, %v4714_v30  ;;  %v5422_v30 = vand.u32 4294901760, %v5414_v22 }
 0xee6   :  { %4715 = vrcp.f32 %v1872_v35  ;;  %v1884_v43 = vand.u32 2147483648, %v1872_v35  ;;  %vm1878_vm14 = vweird.f32 %v1872_v35  ;;  %v1882_v42 = vand.u32 2147483647, %v1872_v35 }
 0xee8   :  { %v1885_v46 = vor.u32 1.1754944e-38, %v1884_v43  ;;  %vm1883_vm0 = vcmp.eq.f32.partialorder %v1882_v42, 8.507059e+37 }
 0xeec   :  { %v4716_v37 = vpop.eup %4715 }
 0xeed   :  { %v1874_v39 = vmul.f32 %v4716_v37, %v1872_v35  ;;  %vm1879_vm13 = vweird.f32 %v4716_v37  ;;  %v5425_v35 = vand.u32 4294901760, %v2242_v26 }
 0xeee   :  { %vm1880_vm15 = vmor %vm1878_vm14, %vm1879_vm13 }
 0xeef   :  { %v1875_v36 = vsub.f32 1.0, %v1874_v39 }
 0xef1   :  { %v1876_v40 = vmul.f32 %v4716_v37, %v1875_v36  ;;  %v2153_v36 = vld [vmem:[#allocation3] sm:$0x3] }
 0xef3   :  { %v1877_v41 = vadd.f32 %v4716_v37, %v1876_v40  ;;  %v2154_v40 = vsel %vm287_vm5, %v2153_v36, 0.0 }
 0xef5   :  { %v1881_v44 = vsel %vm1880_vm15, %v4716_v37, %v1877_v41  ;;  %v2248_v37 = vsub.f32 %v5414_v22, %v5422_v30  ;;  %v2160_v41 = vsel %vm2158_vm1, %v2154_v40, 0 }
 0xef6   :  { %v1886_v45 = vsel %vm1883_vm0, %v1885_v46, %v1881_v44  ;;  %v2186_v43 = vand.u32 4294901760, %v2160_v41 }
 0xef7   :  { %v1889_v50 = vmul.f32 %v1886_v45, %v5266_v9  ;;  %v5352_v9 = vand.u32 4294901760, %v2206_v6  ;;  %v5430_v39 = vand.u32 4294901760, %v2248_v37 }
 0xef8   :  { %v2187_v46 = vsub.f32 %v2160_v41, %v2186_v43 }
 0xef9   :  { %2208 = vmatpush.msrb.mxu1 %v5352_v9 }
 0xefb   :  { %2214 = vmatpush.msrb.mxu1 %v5354_v12 }
 0xefd   :  { %2220 = vmatpush.msrb.mxu1 %v5362_v15 }
 0xeff   :  { %2226 = vmatpush.msrb.mxu1 %v5366_v16 }
 0xf01   :  { %2232 = vmatpush.msrb.mxu1 %v5405_v32 }
 0xf03   :  { %2238 = vmatpush.msrb.mxu1 %v5417_v38 }
 0xf05   :  { %2244 = vmatpush.msrb.mxu1 %v5425_v35 }
 0xf07   :  { %2250 = vmatpush.msrb.mxu1 %v5430_v39 }
 0xf54   :  { %v1892_v49 = vpop.permute.xlu0 %1891 }
 0xf55   :  { %v1894_v47 = vmul.f32 %v1892_v49, %v1886_v45 }
 0xf57   :  { %1896 = vrot.lane.b32.xlu1 %v1894_v47, %s4901_s24  ;;  %v2188_v47 = vand.u32 4294901760, %v2187_v46 }
 0xfc9   :  { %v1897_v51 = vpop.permute.xlu1 %1896 }
 0xfca   :  { %v5292_v52 = vadd.f32 %v1897_v51, %v1889_v50 }
 0xfcc   :  { %4717 = vtanh.f32 %v5292_v52 }
 0xfd2   :  { %v4718_v54 = vpop.eup %4717 }
 0xfd3   :  { %1902 = vrot.lane.b32.xlu2 %v4718_v54, %s4900_s3  ;;  %v2189_v54 = vsub.f32 %v2187_v46, %v2188_v47 }
 0xfd5   :  { %v2190_v55 = vand.u32 4294901760, %v2189_v54 }
0x102d   :  { %v1903_v17 = vpop.permute.xlu2 %1902 }
0x102e   :  { %v1905_v19 = vmul.f32 %v1903_v17, %v1886_v45  ;;  %v5536_v17 = vld [vmem:[%s5928_s5] ss:$0 sm:$0xff] }
0x1030   :  { %1907 = vrot.lane.b32.xlu0 %v1905_v19, %s4901_s24 }
0x10a2   :  { %v1908_v42 = vpop.permute.xlu0 %1907 }
0x10a3   :  { %1911 = vst.msk [vmem:[#allocation3 + $0xc] sm:$0x3] %vm518_vm6, %v1908_v42  ;;  %v1913_v44 = vsel %vm287_vm5, %v1908_v42, 0 }
0x10a4   :  { %v1935_v49 = vand.u32 4294901760, %v1913_v44 }
0x10a6   :  { %v1936_v45 = vsub.f32 %v1913_v44, %v1935_v49  ;;  %1981 = vmatmul.f32.vlgmr.msra.gmra.mxu3 %v1935_v49 }
0x10a7   :  { %2303 = vmatpush.msra.mxu3 %v5305_v56 }
0x10a8   :  { %v1937_v50 = vand.u32 4294901760, %v1936_v45  ;;  %2011 = vmatmul.f32.vlgmr.msra.gmra.mxu0 %v1936_v45 }
0x10a9   :  { %2305 = vmatpush.msra.mxu3 %v5307_v57  ;;  %2336 = vmatpush.msra.mxu0 %v5331_v1 }
0x10aa   :  { %v1938_v51 = vsub.f32 %v1936_v45, %v1937_v50  ;;  %2038 = vmatmul.f32.vlgmr.msra.gmra.mxu1 %v1937_v50 }
0x10ab   :  { %2307 = vmatpush.msra.mxu3 %v5309_v58  ;;  %2340 = vmatpush.msra.mxu0 %v5334_v2 }
0x10ac   :  { %2379 = vmatpush.msra.mxu1 %v5305_v56  ;;  %v1939_v48 = vand.u32 4294901760, %v1938_v51 }
0x10ad   :  { %2309 = vmatpush.msra.mxu3 %v5314_v61  ;;  %2344 = vmatpush.msra.mxu0 %v5337_v3 }
0x10ae   :  { %2381 = vmatpush.msra.mxu1 %v5307_v57  ;;  %1940 = vmatmul.f32.vlgmr.msra.gmra.mxu2 %v1939_v48 }
0x10af   :  { %2096 = vmatmul.f32.vlgmr.msrb.gmra.mxu3 %v1935_v49  ;;  %2266 = vmatpush.msra.mxu2 %v5318_v59 }
0x10b0   :  { %2311 = vmatpush.msra.mxu3 %v5357_v13  ;;  %2348 = vmatpush.msra.mxu0 %v5343_v5 }
0x10b1   :  { %2383 = vmatpush.msra.mxu1 %v5309_v58  ;;  %2191 = vmatmul.f32.vlgmr.msrb.gmra.mxu0 %v2190_v55 }
0x10b2   :  { %2269 = vmatpush.msra.mxu2 %v5321_v62  ;;  %2313 = vmatpush.msra.mxu3 %v5374_v24 }
0x10b3   :  { %2352 = vmatpush.msra.mxu0 %v5384_v11  ;;  %2385 = vmatpush.msra.mxu1 %v5314_v61 }
0x10b4   :  { %2252 = vmatmul.f32.vlgmr.msrb.gmra.mxu1 %v2186_v43  ;;  %2272 = vmatpush.msra.mxu2 %v5324_v63 }
0x10b5   :  { %2315 = vmatpush.msra.mxu3 %v5386_v28  ;;  %2356 = vmatpush.msra.mxu0 %v5398_v18 }
0x10b6   :  { %2387 = vmatpush.msra.mxu1 %v5357_v13  ;;  %2275 = vmatpush.msra.mxu2 %v5327_v0 }
0x10b7   :  { %2317 = vmatpush.msra.mxu3 %v5400_v31  ;;  %2360 = vmatpush.msra.mxu0 %v5411_v33 }
0x10b8   :  { %2389 = vmatpush.msra.mxu1 %v5374_v24  ;;  %2071 = vmatmul.f32.vlgmr.msrb.gmra.mxu2 %v1935_v49 }
0x10b9   :  { %2321 = vmatmul.f32.vlgmr.msra.gmra.mxu3 %v2188_v47  ;;  %2278 = vmatpush.msra.mxu2 %v5377_v25 }
0x10ba   :  { %2364 = vmatpush.msra.mxu0 %v5422_v30  ;;  %2391 = vmatpush.msra.mxu1 %v5386_v28 }
0x10bb   :  { %2366 = vmatmul.f32.vlgmr.msra.gmra.mxu0 %v2186_v43  ;;  %2281 = vmatpush.msra.mxu2 %v5389_v29 }
0x10bc   :  { %2393 = vmatpush.msra.mxu1 %v5400_v31  ;;  %2491 = vmatpush.msrb.mxu3 %v5352_v9 }
0x10bd   :  { %2395 = vmatmul.f32.vlgmr.msra.gmra.mxu1 %v2186_v43  ;;  %2284 = vmatpush.msra.mxu2 %v5403_v34 }
0x10be   :  { %2497 = vmatpush.msrb.mxu3 %v5354_v12  ;;  %2549 = vmatpush.msrb.mxu0 %v5318_v59 }
0x10bf   :  { %2287 = vmatpush.msra.mxu2 %v5414_v22  ;;  %2586 = vmatpush.msrb.mxu1 %v5305_v56 }
0x10c0   :  { %2290 = vmatmul.f32.vlgmr.msra.gmra.mxu2 %v2187_v46  ;;  %2503 = vmatpush.msrb.mxu3 %v5362_v15 }
0x10c1   :  { %2454 = vmatpush.msrb.mxu2 %v5305_v56  ;;  %2552 = vmatpush.msrb.mxu0 %v5321_v62 }
0x10c2   :  { %2509 = vmatpush.msrb.mxu3 %v5366_v16  ;;  %2588 = vmatpush.msrb.mxu1 %v5307_v57 }
0x10c3   :  { %2456 = vmatpush.msrb.mxu2 %v5307_v57  ;;  %2555 = vmatpush.msrb.mxu0 %v5324_v63 }
0x10c4   :  { %2515 = vmatpush.msrb.mxu3 %v5405_v32  ;;  %2590 = vmatpush.msrb.mxu1 %v5309_v58 }
0x10c5   :  { %2458 = vmatpush.msrb.mxu2 %v5309_v58  ;;  %2558 = vmatpush.msrb.mxu0 %v5327_v0 }
0x10c6   :  { %2521 = vmatpush.msrb.mxu3 %v5417_v38  ;;  %2592 = vmatpush.msrb.mxu1 %v5314_v61 }
0x10c7   :  { %2460 = vmatpush.msrb.mxu2 %v5314_v61  ;;  %2561 = vmatpush.msrb.mxu0 %v5377_v25 }
0x10c8   :  { %2527 = vmatpush.msrb.mxu3 %v5425_v35  ;;  %2594 = vmatpush.msrb.mxu1 %v5357_v13 }
0x10c9   :  { %2462 = vmatpush.msrb.mxu2 %v5357_v13  ;;  %2564 = vmatpush.msrb.mxu0 %v5389_v29 }
0x10ca   :  { %2533 = vmatpush.msrb.mxu3 %v5430_v39  ;;  %2596 = vmatpush.msrb.mxu1 %v5374_v24 }
0x10cb   :  { %2464 = vmatpush.msrb.mxu2 %v5374_v24  ;;  %2567 = vmatpush.msrb.mxu0 %v5403_v34 }
0x10cc   :  { %2662 = vmatpush.msra.mxu3 %v5305_v56  ;;  %2598 = vmatpush.msrb.mxu1 %v5386_v28 }
0x10cd   :  { %2466 = vmatpush.msrb.mxu2 %v5386_v28  ;;  %2570 = vmatpush.msrb.mxu0 %v5414_v22 }
0x10ce   :  { %2664 = vmatpush.msra.mxu3 %v5307_v57  ;;  %2600 = vmatpush.msrb.mxu1 %v5400_v31 }
0x10cf   :  { %2468 = vmatpush.msrb.mxu2 %v5400_v31  ;;  %2737 = vmatpush.msra.mxu0 %v5305_v56 }
0x10d0   :  { %2666 = vmatpush.msra.mxu3 %v5309_v58  ;;  %2774 = vmatpush.msra.mxu1 %v5352_v9 }
0x10d1   :  { %2619 = vmatpush.msra.mxu2 %v5331_v1  ;;  %2739 = vmatpush.msra.mxu0 %v5307_v57 }
0x10d2   :  { %2668 = vmatpush.msra.mxu3 %v5314_v61  ;;  %2780 = vmatpush.msra.mxu1 %v5354_v12 }
0x10d3   :  { %2623 = vmatpush.msra.mxu2 %v5334_v2  ;;  %2741 = vmatpush.msra.mxu0 %v5309_v58 }
0x10d4   :  { %2670 = vmatpush.msra.mxu3 %v5357_v13  ;;  %2786 = vmatpush.msra.mxu1 %v5362_v15 }
0x10d5   :  { %2627 = vmatpush.msra.mxu2 %v5337_v3  ;;  %2743 = vmatpush.msra.mxu0 %v5314_v61 }
0x10d6   :  { %2672 = vmatpush.msra.mxu3 %v5374_v24  ;;  %2792 = vmatpush.msra.mxu1 %v5366_v16 }
0x10d7   :  { %2631 = vmatpush.msra.mxu2 %v5343_v5  ;;  %2745 = vmatpush.msra.mxu0 %v5357_v13 }
0x10d8   :  { %2674 = vmatpush.msra.mxu3 %v5386_v28  ;;  %2798 = vmatpush.msra.mxu1 %v5405_v32 }
0x10d9   :  { %2635 = vmatpush.msra.mxu2 %v5384_v11  ;;  %2747 = vmatpush.msra.mxu0 %v5374_v24 }
0x10da   :  { %2676 = vmatpush.msra.mxu3 %v5400_v31  ;;  %2804 = vmatpush.msra.mxu1 %v5417_v38 }
0x10db   :  { %2639 = vmatpush.msra.mxu2 %v5398_v18  ;;  %2749 = vmatpush.msra.mxu0 %v5386_v28 }
0x10dc   :  { %2810 = vmatpush.msra.mxu1 %v5425_v35 }
0x10dd   :  { %2643 = vmatpush.msra.mxu2 %v5411_v33  ;;  %2751 = vmatpush.msra.mxu0 %v5400_v31 }
0x10de   :  { %2816 = vmatpush.msra.mxu1 %v5430_v39 }
0x10df   :  { %2647 = vmatpush.msra.mxu2 %v5422_v30 }
0x1125   :  { %v2012_v53 = vpop.f32.mrf.mxu0 }
0x1127   :  { %v2039_v8 = vpop.f32.mrf.mxu1 }
0x1129   :  { %v1982_v60 = vpop.f32.mrf.mxu3 }
0x112e   :  { %v2192_v19 = vpop.f32.mrf.mxu0 }
0x112f   :  { %v2193_v27 = vadd.f32 %v5536_v17, %v2192_v19 }
0x1131   :  { %v1941_v4 = vpop.f32.mrf.mxu2  ;;  %v2253_v26 = vpop.f32.mrf.mxu1 }
0x1132   :  { %v1983_v6 = vadd.f32 %v1982_v60, %v1941_v4  ;;  %v2097_v23 = vpop.f32.mrf.mxu3  ;;  %v2254_v37 = vadd.f32 %v2253_v26, %v2193_v27 }
0x1134   :  { %v2013_v7 = vadd.f32 %v2012_v53, %v1983_v6 }
0x1136   :  { %v2040_v14 = vadd.f32 %v2039_v8, %v2013_v7 }
0x1138   :  { %v2367_v42 = vpop.f32.mrf.mxu0 }
0x113a   :  { %v2396_v46 = vpop.f32.mrf.mxu1 }
0x113b   :  { %v2072_v10 = vpop.f32.mrf.mxu2 }
0x113c   :  { %v2073_v20 = vadd.f32 %v2072_v10, %v2040_v14  ;;  %v2322_v41 = vpop.f32.mrf.mxu3 }
0x113e   :  { %v5539_v21 = vadd.f32 %v2097_v23, %v2073_v20 }
0x1143   :  { %v2291_v36 = vpop.f32.mrf.mxu2 }
0x1144   :  { %v2292_v40 = vadd.f32 %v2291_v36, %v2254_v37 }
0x1146   :  { %v2323_v43 = vadd.f32 %v2322_v41, %v2292_v40  ;;  %v2436_v40 = vld [vmem:[#allocation3 + $0x2] sm:$0x3] }
0x1148   :  { %v2368_v44 = vadd.f32 %v2367_v42, %v2323_v43 }
0x114a   :  { %v2397_v49 = vadd.f32 %v2396_v46, %v2368_v44 }
0x114c   :  { %4719 = vtanh.f32 %v2397_v49  ;;  %v4643_v47 = vmul.f32 -1.442695, %v2397_v49 }
0x114e   :  { %4721 = vpow2.f32 %v4643_v47 }
0x1152   :  { %v4720_v45 = vpop.eup %4719 }
0x1153   :  { %2421 = vrot.lane.b32.xlu1 %v4720_v45, %s4900_s3 }
0x1154   :  { %v4722_v50 = vpop.eup %4721 }
0x1155   :  { %v2402_v51 = vadd.f32 1.0, %v4722_v50 }
0x1157   :  { %4723 = vrcp.f32 %v2402_v51  ;;  %v2414_v4 = vand.u32 2147483648, %v2402_v51  ;;  %vm2408_vm3 = vweird.f32 %v2402_v51  ;;  %v2412_v6 = vand.u32 2147483647, %v2402_v51 }
0x1159   :  { %v2415_v8 = vor.u32 1.1754944e-38, %v2414_v4  ;;  %vm2413_vm7 = vcmp.eq.f32.partialorder %v2412_v6, 8.507059e+37 }
0x115d   :  { %v4724_v54 = vpop.eup %4723 }
0x115e   :  { %v2404_v48 = vmul.f32 %v4724_v54, %v2402_v51  ;;  %vm2409_vm2 = vweird.f32 %v4724_v54 }
0x115f   :  { %vm2410_vm4 = vmor %vm2408_vm3, %vm2409_vm2 }
0x1160   :  { %v2405_v55 = vsub.f32 1.0, %v2404_v48 }
0x1162   :  { %v2406_v53 = vmul.f32 %v4724_v54, %v2405_v55 }
0x1164   :  { %v2407_v60 = vadd.f32 %v4724_v54, %v2406_v53 }
0x1166   :  { %v2411_v7 = vsel %vm2410_vm4, %v4724_v54, %v2407_v60 }
0x1167   :  { %v2416_v19 = vsel %vm2413_vm7, %v2415_v8, %v2411_v7 }
0x1168   :  { %v2419_v10 = vmul.f32 0.0, %v2416_v19 }
0x11c5   :  { %v2422_v14 = vpop.permute.xlu1 %2421 }
0x11c6   :  { %v2424_v23 = vmul.f32 %v2422_v14, %v2416_v19 }
0x11c8   :  { %2426 = vrot.lane.b32.xlu2 %v2424_v23, %s4901_s24 }
0x1222   :  { %v2427_v20 = vpop.permute.xlu2 %2426 }
0x1223   :  { %v5543_v27 = vadd.f32 %v2427_v20, %v2419_v10 }
0x1225   :  { %4725 = vtanh.f32 %v5543_v27 }
0x122b   :  { %v4726_v26 = vpop.eup %4725 }
0x122c   :  { %2432 = vrot.lane.b32.xlu0 %v4726_v26, %s4900_s3 }
0x129e   :  { %v2433_v37 = vpop.permute.xlu0 %2432 }
0x129f   :  { %v2435_v36 = vmul.f32 %v2433_v37, %v2416_v19 }
0x12a1   :  { %2438 = vrot.lane.b32.xlu1 %v2435_v36, %s4900_s3 }
0x1313   :  { %v2439_v41 = vpop.permute.xlu1 %2438 }
0x1314   :  { %v2441_v43 = vsel %vm287_vm5, %v2436_v40, %v2439_v41 }
0x1315   :  { %v2443_v42 = vsel %vm2158_vm1, %v2441_v43, 0 }
0x1316   :  { %v2469_v44 = vand.u32 4294901760, %v2443_v42 }
0x1318   :  { %v2470_v46 = vsub.f32 %v2443_v42, %v2469_v44  ;;  %2535 = vmatmul.f32.vlgmr.msrb.gmra.mxu3 %v2469_v44 }
0x1319   :  { %2869 = vmatpush.msrb.mxu3 %v5305_v56 }
0x131a   :  { %2573 = vmatmul.f32.vlgmr.msrb.gmra.mxu0 %v2470_v46  ;;  %v2471_v49 = vand.u32 4294901760, %v2470_v46 }
0x131b   :  { %2871 = vmatpush.msrb.mxu3 %v5307_v57  ;;  %2902 = vmatpush.msrb.mxu0 %v5331_v1 }
0x131c   :  { %2604 = vmatmul.f32.vlgmr.msrb.gmra.mxu1 %v2471_v49  ;;  %v2472_v45 = vsub.f32 %v2470_v46, %v2471_v49 }
0x131d   :  { %2873 = vmatpush.msrb.mxu3 %v5309_v58  ;;  %2945 = vmatpush.msrb.mxu1 %v5305_v56 }
0x131e   :  { %v2473_v47 = vand.u32 4294901760, %v2472_v45  ;;  %2906 = vmatpush.msrb.mxu0 %v5334_v2 }
0x131f   :  { %2875 = vmatpush.msrb.mxu3 %v5314_v61  ;;  %2947 = vmatpush.msrb.mxu1 %v5307_v57 }
0x1320   :  { %2474 = vmatmul.f32.vlgmr.msrb.gmra.mxu2 %v2473_v47  ;;  %2678 = vmatmul.f32.vlgmr.msra.gmra.mxu3 %v2469_v44 }
0x1321   :  { %2832 = vmatpush.msrb.mxu2 %v5318_v59  ;;  %2877 = vmatpush.msrb.mxu3 %v5357_v13 }
0x1322   :  { %2949 = vmatpush.msrb.mxu1 %v5309_v58  ;;  %2910 = vmatpush.msrb.mxu0 %v5337_v3 }
0x1323   :  { %2835 = vmatpush.msrb.mxu2 %v5321_v62  ;;  %2879 = vmatpush.msrb.mxu3 %v5374_v24 }
0x1324   :  { %2951 = vmatpush.msrb.mxu1 %v5314_v61  ;;  %2914 = vmatpush.msrb.mxu0 %v5343_v5 }
0x1325   :  { %2838 = vmatpush.msrb.mxu2 %v5324_v63  ;;  %2881 = vmatpush.msrb.mxu3 %v5386_v28 }
0x1326   :  { %2953 = vmatpush.msrb.mxu1 %v5357_v13  ;;  %2918 = vmatpush.msrb.mxu0 %v5384_v11 }
0x1327   :  { %2841 = vmatpush.msrb.mxu2 %v5327_v0  ;;  %2883 = vmatpush.msrb.mxu3 %v5400_v31 }
0x1328   :  { %2649 = vmatmul.f32.vlgmr.msra.gmra.mxu2 %v2469_v44  ;;  %2955 = vmatpush.msrb.mxu1 %v5374_v24 }
0x1329   :  { %2844 = vmatpush.msrb.mxu2 %v5377_v25  ;;  %2922 = vmatpush.msrb.mxu0 %v5398_v18 }
0x132a   :  { %2957 = vmatpush.msrb.mxu1 %v5386_v28  ;;  %3057 = vmatpush.msra.mxu3 %v5352_v9 }
0x132b   :  { %2847 = vmatpush.msrb.mxu2 %v5389_v29  ;;  %2926 = vmatpush.msrb.mxu0 %v5411_v33 }
0x132c   :  { %2959 = vmatpush.msrb.mxu1 %v5400_v31  ;;  %3063 = vmatpush.msra.mxu3 %v5354_v12 }
0x132d   :  { %2850 = vmatpush.msrb.mxu2 %v5403_v34  ;;  %2930 = vmatpush.msrb.mxu0 %v5422_v30 }
0x132e   :  { %3069 = vmatpush.msra.mxu3 %v5362_v15 }
0x132f   :  { %2853 = vmatpush.msrb.mxu2 %v5414_v22 }
0x1330   :  { %3075 = vmatpush.msra.mxu3 %v5366_v16 }
0x1331   :  { %3020 = vmatpush.msra.mxu2 %v5305_v56 }
0x1332   :  { %3081 = vmatpush.msra.mxu3 %v5405_v32 }
0x1333   :  { %3022 = vmatpush.msra.mxu2 %v5307_v57 }
0x1334   :  { %3087 = vmatpush.msra.mxu3 %v5417_v38 }
0x1335   :  { %3024 = vmatpush.msra.mxu2 %v5309_v58 }
0x1336   :  { %3093 = vmatpush.msra.mxu3 %v5425_v35 }
0x1337   :  { %3026 = vmatpush.msra.mxu2 %v5314_v61 }
0x1338   :  { %3099 = vmatpush.msra.mxu3 %v5430_v39 }
0x1339   :  { %3028 = vmatpush.msra.mxu2 %v5357_v13 }
0x133b   :  { %3030 = vmatpush.msra.mxu2 %v5374_v24 }
0x133d   :  { %3032 = vmatpush.msra.mxu2 %v5386_v28 }
0x133f   :  { %3034 = vmatpush.msra.mxu2 %v5400_v31 }
0x1397   :  { %v2574_v55 = vpop.f32.mrf.mxu0 }
0x1399   :  { %v2605_v60 = vpop.f32.mrf.mxu1 }
0x139b   :  { %v2536_v50 = vpop.f32.mrf.mxu3 }
0x13a3   :  { %v2475_v51 = vpop.f32.mrf.mxu2  ;;  %v2679_v8 = vpop.f32.mrf.mxu3 }
0x13a4   :  { %v2476_v54 = vadd.f32 %v5536_v17, %v2475_v51 }
0x13a6   :  { %v2537_v48 = vadd.f32 %v2536_v50, %v2476_v54 }
0x13a8   :  { %v2575_v53 = vadd.f32 %v2574_v55, %v2537_v48 }
0x13aa   :  { %v2606_v4 = vadd.f32 %v2605_v60, %v2575_v53  ;;  %v2719_v60 = vld [vmem:[#allocation3 + $0x4] sm:$0x3] }
0x13ab   :  { %v2650_v6 = vpop.f32.mrf.mxu2 }
0x13ac   :  { %v2651_v7 = vadd.f32 %v2650_v6, %v2606_v4 }
0x13ae   :  { %v2680_v14 = vadd.f32 %v2679_v8, %v2651_v7 }
0x13b0   :  { %4727 = vtanh.f32 %v2680_v14  ;;  %v4644_v23 = vmul.f32 -1.442695, %v2680_v14 }
0x13b2   :  { %4729 = vpow2.f32 %v4644_v23 }
0x13b6   :  { %v4728_v19 = vpop.eup %4727 }
0x13b7   :  { %2704 = vrot.lane.b32.xlu2 %v4728_v19, %s4900_s3 }
0x13b8   :  { %v4730_v10 = vpop.eup %4729 }
0x13b9   :  { %v2685_v20 = vadd.f32 1.0, %v4730_v10 }
0x13bb   :  { %4731 = vrcp.f32 %v2685_v20  ;;  %v2697_v43 = vand.u32 2147483648, %v2685_v20  ;;  %vm2691_vm9 = vweird.f32 %v2685_v20  ;;  %v2695_v42 = vand.u32 2147483647, %v2685_v20 }
0x13bd   :  { %v2698_v46 = vor.u32 1.1754944e-38, %v2697_v43  ;;  %vm2696_vm11 = vcmp.eq.f32.partialorder %v2695_v42, 8.507059e+37 }
0x13c1   :  { %v4732_v26 = vpop.eup %4731 }
0x13c2   :  { %v2687_v37 = vmul.f32 %v4732_v26, %v2685_v20  ;;  %vm2692_vm8 = vweird.f32 %v4732_v26 }
0x13c3   :  { %vm2693_vm10 = vmor %vm2691_vm9, %vm2692_vm8 }
0x13c4   :  { %v2688_v36 = vsub.f32 1.0, %v2687_v37 }
0x13c6   :  { %v2689_v40 = vmul.f32 %v4732_v26, %v2688_v36 }
0x13c8   :  { %v2690_v41 = vadd.f32 %v4732_v26, %v2689_v40 }
0x13ca   :  { %v2694_v44 = vsel %vm2693_vm10, %v4732_v26, %v2690_v41 }
0x13cb   :  { %v2699_v45 = vsel %vm2696_vm11, %v2698_v46, %v2694_v44 }
0x13cc   :  { %v2702_v50 = vmul.f32 %v2699_v45, %v5543_v27 }
0x1411   :  { %v2705_v49 = vpop.permute.xlu2 %2704 }
0x1412   :  { %v2707_v47 = vmul.f32 %v2705_v49, %v2699_v45 }
0x1414   :  { %2709 = vrot.lane.b32.xlu0 %v2707_v47, %s4901_s24 }
0x1486   :  { %v2710_v51 = vpop.permute.xlu0 %2709 }
0x1487   :  { %v5602_v54 = vadd.f32 %v2710_v51, %v2702_v50 }
0x1489   :  { %4733 = vtanh.f32 %v5602_v54 }
0x148f   :  { %v4734_v48 = vpop.eup %4733 }
0x1490   :  { %2715 = vrot.lane.b32.xlu1 %v4734_v48, %s4900_s3 }
0x1502   :  { %v2716_v55 = vpop.permute.xlu1 %2715 }
0x1503   :  { %v2718_v53 = vmul.f32 %v2716_v55, %v2699_v45 }
0x1505   :  { %2721 = vrot.lane.b32.xlu2 %v2718_v53, %s4900_s3 }
0x155f   :  { %v2722_v4 = vpop.permute.xlu2 %2721 }
0x1560   :  { %v2724_v6 = vsel %vm287_vm5, %v2719_v60, %v2722_v4 }
0x1561   :  { %v2726_v7 = vsel %vm2158_vm1, %v2724_v6, 0 }
0x1562   :  { %v2752_v8 = vand.u32 4294901760, %v2726_v7 }
0x1564   :  { %v2753_v27 = vsub.f32 %v2726_v7, %v2752_v8  ;;  %2818 = vmatmul.f32.vlgmr.msra.gmra.mxu1 %v2752_v8 }
0x1565   :  { %3152 = vmatpush.msra.mxu1 %v5305_v56 }
0x1566   :  { %2856 = vmatmul.f32.vlgmr.msrb.gmra.mxu2 %v2753_v27  ;;  %v2754_v14 = vand.u32 4294901760, %v2753_v27 }
0x1567   :  { %3154 = vmatpush.msra.mxu1 %v5307_v57  ;;  %3185 = vmatpush.msrb.mxu2 %v5331_v1 }
0x1568   :  { %2887 = vmatmul.f32.vlgmr.msrb.gmra.mxu3 %v2754_v14  ;;  %v2755_v19 = vsub.f32 %v2753_v27, %v2754_v14 }
0x1569   :  { %3156 = vmatpush.msra.mxu1 %v5309_v58  ;;  %3228 = vmatpush.msrb.mxu3 %v5305_v56 }
0x156a   :  { %v2756_v23 = vand.u32 4294901760, %v2755_v19  ;;  %3189 = vmatpush.msrb.mxu2 %v5334_v2 }
0x156b   :  { %3158 = vmatpush.msra.mxu1 %v5314_v61  ;;  %3230 = vmatpush.msrb.mxu3 %v5307_v57 }
0x156c   :  { %2757 = vmatmul.f32.vlgmr.msra.gmra.mxu0 %v2756_v23  ;;  %2961 = vmatmul.f32.vlgmr.msrb.gmra.mxu1 %v2752_v8 }
0x156d   :  { %3115 = vmatpush.msra.mxu0 %v5318_v59  ;;  %3160 = vmatpush.msra.mxu1 %v5357_v13 }
0x156e   :  { %3232 = vmatpush.msrb.mxu3 %v5309_v58  ;;  %3193 = vmatpush.msrb.mxu2 %v5337_v3 }
0x156f   :  { %3118 = vmatpush.msra.mxu0 %v5321_v62  ;;  %3162 = vmatpush.msra.mxu1 %v5374_v24 }
0x1570   :  { %3234 = vmatpush.msrb.mxu3 %v5314_v61  ;;  %3197 = vmatpush.msrb.mxu2 %v5343_v5 }
0x1571   :  { %3121 = vmatpush.msra.mxu0 %v5324_v63  ;;  %3164 = vmatpush.msra.mxu1 %v5386_v28 }
0x1572   :  { %3236 = vmatpush.msrb.mxu3 %v5357_v13  ;;  %3201 = vmatpush.msrb.mxu2 %v5384_v11 }
0x1573   :  { %3124 = vmatpush.msra.mxu0 %v5327_v0  ;;  %3166 = vmatpush.msra.mxu1 %v5400_v31 }
0x1574   :  { %2932 = vmatmul.f32.vlgmr.msrb.gmra.mxu0 %v2752_v8  ;;  %3238 = vmatpush.msrb.mxu3 %v5374_v24 }
0x1575   :  { %3127 = vmatpush.msra.mxu0 %v5377_v25  ;;  %3205 = vmatpush.msrb.mxu2 %v5398_v18 }
0x1576   :  { %3240 = vmatpush.msrb.mxu3 %v5386_v28  ;;  %3340 = vmatpush.msrb.mxu1 %v5352_v9 }
0x1577   :  { %3130 = vmatpush.msra.mxu0 %v5389_v29  ;;  %3209 = vmatpush.msrb.mxu2 %v5411_v33 }
0x1578   :  { %3242 = vmatpush.msrb.mxu3 %v5400_v31  ;;  %3346 = vmatpush.msrb.mxu1 %v5354_v12 }
0x1579   :  { %3133 = vmatpush.msra.mxu0 %v5403_v34  ;;  %3213 = vmatpush.msrb.mxu2 %v5422_v30 }
0x157a   :  { %3352 = vmatpush.msrb.mxu1 %v5362_v15 }
0x157b   :  { %3136 = vmatpush.msra.mxu0 %v5414_v22 }
0x157c   :  { %3358 = vmatpush.msrb.mxu1 %v5366_v16 }
0x157d   :  { %3303 = vmatpush.msrb.mxu0 %v5305_v56 }
0x157e   :  { %3364 = vmatpush.msrb.mxu1 %v5405_v32 }
0x157f   :  { %3305 = vmatpush.msrb.mxu0 %v5307_v57 }
0x1580   :  { %3370 = vmatpush.msrb.mxu1 %v5417_v38 }
0x1581   :  { %3307 = vmatpush.msrb.mxu0 %v5309_v58 }
0x1582   :  { %3376 = vmatpush.msrb.mxu1 %v5425_v35 }
0x1583   :  { %3309 = vmatpush.msrb.mxu0 %v5314_v61 }
0x1584   :  { %3382 = vmatpush.msrb.mxu1 %v5430_v39 }
0x1585   :  { %3311 = vmatpush.msrb.mxu0 %v5357_v13 }
0x1587   :  { %3313 = vmatpush.msrb.mxu0 %v5374_v24 }
0x1589   :  { %3315 = vmatpush.msrb.mxu0 %v5386_v28 }
0x158b   :  { %3317 = vmatpush.msrb.mxu0 %v5400_v31 }
0x15e1   :  { %v2819_v10 = vpop.f32.mrf.mxu1 }
0x15e9   :  { %v2758_v20 = vpop.f32.mrf.mxu0  ;;  %v2857_v36 = vpop.f32.mrf.mxu2 }
0x15ea   :  { %v2759_v26 = vadd.f32 %v5536_v17, %v2758_v20  ;;  %v2962_v46 = vpop.f32.mrf.mxu1 }
0x15eb   :  { %v2888_v41 = vpop.f32.mrf.mxu3 }
0x15ec   :  { %v2820_v37 = vadd.f32 %v2819_v10, %v2759_v26 }
0x15ee   :  { %v2858_v40 = vadd.f32 %v2857_v36, %v2820_v37 }
0x15f0   :  { %v2889_v43 = vadd.f32 %v2888_v41, %v2858_v40  ;;  %v3002_v41 = vld [vmem:[#allocation3 + $0x6] sm:$0x3] }
0x15f1   :  { %v2933_v42 = vpop.f32.mrf.mxu0 }
0x15f2   :  { %v2934_v44 = vadd.f32 %v2933_v42, %v2889_v43 }
0x15f4   :  { %v2963_v49 = vadd.f32 %v2962_v46, %v2934_v44 }
0x15f6   :  { %4735 = vtanh.f32 %v2963_v49  ;;  %v4645_v47 = vmul.f32 -1.442695, %v2963_v49 }
0x15f8   :  { %4737 = vpow2.f32 %v4645_v47 }
0x15fc   :  { %v4736_v45 = vpop.eup %4735 }
0x15fd   :  { %2987 = vrot.lane.b32.xlu0 %v4736_v45, %s4900_s3 }
0x15fe   :  { %v4738_v50 = vpop.eup %4737 }
0x15ff   :  { %v2968_v51 = vadd.f32 1.0, %v4738_v50 }
0x1601   :  { %4739 = vrcp.f32 %v2968_v51  ;;  %v2980_v6 = vand.u32 2147483648, %v2968_v51  ;;  %vm2974_vm13 = vweird.f32 %v2968_v51  ;;  %v2978_v7 = vand.u32 2147483647, %v2968_v51 }
0x1603   :  { %v2981_v27 = vor.u32 1.1754944e-38, %v2980_v6  ;;  %vm2979_vm15 = vcmp.eq.f32.partialorder %v2978_v7, 8.507059e+37 }
0x1607   :  { %v4740_v48 = vpop.eup %4739 }
0x1608   :  { %v2970_v55 = vmul.f32 %v4740_v48, %v2968_v51  ;;  %vm2975_vm12 = vweird.f32 %v4740_v48 }
0x1609   :  { %vm2976_vm14 = vmor %vm2974_vm13, %vm2975_vm12 }
0x160a   :  { %v2971_v53 = vsub.f32 1.0, %v2970_v55 }
0x160c   :  { %v2972_v60 = vmul.f32 %v4740_v48, %v2971_v53 }
0x160e   :  { %v2973_v4 = vadd.f32 %v4740_v48, %v2972_v60 }
0x1610   :  { %v2977_v8 = vsel %vm2976_vm14, %v4740_v48, %v2973_v4 }
0x1611   :  { %v2982_v19 = vsel %vm2979_vm15, %v2981_v27, %v2977_v8 }
0x1612   :  { %v2985_v10 = vmul.f32 %v2982_v19, %v5602_v54 }
0x166f   :  { %v2988_v14 = vpop.permute.xlu0 %2987 }
0x1670   :  { %v2990_v23 = vmul.f32 %v2988_v14, %v2982_v19 }
0x1672   :  { %2992 = vrot.lane.b32.xlu1 %v2990_v23, %s4901_s24 }
0x16e4   :  { %v2993_v20 = vpop.permute.xlu1 %2992 }
0x16e5   :  { %v5661_v26 = vadd.f32 %v2993_v20, %v2985_v10 }
0x16e7   :  { %4741 = vtanh.f32 %v5661_v26 }
0x16ed   :  { %v4742_v37 = vpop.eup %4741 }
0x16ee   :  { %2998 = vrot.lane.b32.xlu2 %v4742_v37, %s4900_s3 }
0x1748   :  { %v2999_v36 = vpop.permute.xlu2 %2998 }
0x1749   :  { %v3001_v40 = vmul.f32 %v2999_v36, %v2982_v19 }
0x174b   :  { %3004 = vrot.lane.b32.xlu0 %v3001_v40, %s4900_s3 }
0x17bd   :  { %v3005_v43 = vpop.permute.xlu0 %3004 }
0x17be   :  { %v3007_v42 = vsel %vm287_vm5, %v3002_v41, %v3005_v43 }
0x17bf   :  { %v3009_v44 = vsel %vm2158_vm1, %v3007_v42, 0 }
0x17c0   :  { %v3035_v46 = vand.u32 4294901760, %v3009_v44 }
0x17c2   :  { %v3036_v54 = vsub.f32 %v3009_v44, %v3035_v46  ;;  %3101 = vmatmul.f32.vlgmr.msra.gmra.mxu3 %v3035_v46 }
0x17c3   :  { %3435 = vmatpush.msra.mxu3 %v5305_v56 }
0x17c4   :  { %3139 = vmatmul.f32.vlgmr.msra.gmra.mxu0 %v3036_v54  ;;  %v3037_v49 = vand.u32 4294901760, %v3036_v54 }
0x17c5   :  { %3437 = vmatpush.msra.mxu3 %v5307_v57  ;;  %3468 = vmatpush.msra.mxu0 %v5331_v1 }
0x17c6   :  { %3170 = vmatmul.f32.vlgmr.msra.gmra.mxu1 %v3037_v49  ;;  %v3038_v45 = vsub.f32 %v3036_v54, %v3037_v49 }
0x17c7   :  { %3439 = vmatpush.msra.mxu3 %v5309_v58  ;;  %3511 = vmatpush.msra.mxu1 %v5305_v56 }
0x17c8   :  { %v3039_v47 = vand.u32 4294901760, %v3038_v45  ;;  %3472 = vmatpush.msra.mxu0 %v5334_v2 }
0x17c9   :  { %3441 = vmatpush.msra.mxu3 %v5314_v61  ;;  %3513 = vmatpush.msra.mxu1 %v5307_v57 }
0x17ca   :  { %3040 = vmatmul.f32.vlgmr.msra.gmra.mxu2 %v3039_v47  ;;  %3244 = vmatmul.f32.vlgmr.msrb.gmra.mxu3 %v3035_v46 }
0x17cb   :  { %3398 = vmatpush.msra.mxu2 %v5318_v59  ;;  %3443 = vmatpush.msra.mxu3 %v5357_v13 }
0x17cc   :  { %3515 = vmatpush.msra.mxu1 %v5309_v58  ;;  %3476 = vmatpush.msra.mxu0 %v5337_v3 }
0x17cd   :  { %3401 = vmatpush.msra.mxu2 %v5321_v62  ;;  %3445 = vmatpush.msra.mxu3 %v5374_v24 }
0x17ce   :  { %3517 = vmatpush.msra.mxu1 %v5314_v61  ;;  %3480 = vmatpush.msra.mxu0 %v5343_v5 }
0x17cf   :  { %3404 = vmatpush.msra.mxu2 %v5324_v63  ;;  %3447 = vmatpush.msra.mxu3 %v5386_v28 }
0x17d0   :  { %3519 = vmatpush.msra.mxu1 %v5357_v13  ;;  %3484 = vmatpush.msra.mxu0 %v5384_v11 }
0x17d1   :  { %3407 = vmatpush.msra.mxu2 %v5327_v0  ;;  %3449 = vmatpush.msra.mxu3 %v5400_v31 }
0x17d2   :  { %3215 = vmatmul.f32.vlgmr.msrb.gmra.mxu2 %v3035_v46  ;;  %3521 = vmatpush.msra.mxu1 %v5374_v24 }
0x17d3   :  { %3410 = vmatpush.msra.mxu2 %v5377_v25  ;;  %3488 = vmatpush.msra.mxu0 %v5398_v18 }
0x17d4   :  { %3523 = vmatpush.msra.mxu1 %v5386_v28  ;;  %3623 = vmatpush.msrb.mxu3 %v5352_v9 }
0x17d5   :  { %3413 = vmatpush.msra.mxu2 %v5389_v29  ;;  %3492 = vmatpush.msra.mxu0 %v5411_v33 }
0x17d6   :  { %3525 = vmatpush.msra.mxu1 %v5400_v31  ;;  %3629 = vmatpush.msrb.mxu3 %v5354_v12 }
0x17d7   :  { %3416 = vmatpush.msra.mxu2 %v5403_v34  ;;  %3496 = vmatpush.msra.mxu0 %v5422_v30 }
0x17d8   :  { %3635 = vmatpush.msrb.mxu3 %v5362_v15 }
0x17d9   :  { %3419 = vmatpush.msra.mxu2 %v5414_v22 }
0x17da   :  { %3641 = vmatpush.msrb.mxu3 %v5366_v16 }
0x17db   :  { %3586 = vmatpush.msrb.mxu2 %v5305_v56 }
0x17dc   :  { %3647 = vmatpush.msrb.mxu3 %v5405_v32 }
0x17dd   :  { %3588 = vmatpush.msrb.mxu2 %v5307_v57 }
0x17de   :  { %3653 = vmatpush.msrb.mxu3 %v5417_v38 }
0x17df   :  { %3590 = vmatpush.msrb.mxu2 %v5309_v58 }
0x17e0   :  { %3659 = vmatpush.msrb.mxu3 %v5425_v35 }
0x17e1   :  { %3592 = vmatpush.msrb.mxu2 %v5314_v61 }
0x17e2   :  { %3665 = vmatpush.msrb.mxu3 %v5430_v39 }
0x17e3   :  { %3594 = vmatpush.msrb.mxu2 %v5357_v13 }
0x17e5   :  { %3596 = vmatpush.msrb.mxu2 %v5374_v24 }
0x17e7   :  { %3598 = vmatpush.msrb.mxu2 %v5386_v28 }
0x17e9   :  { %3600 = vmatpush.msrb.mxu2 %v5400_v31 }
0x1841   :  { %v3140_v53 = vpop.f32.mrf.mxu0 }
0x1843   :  { %v3171_v4 = vpop.f32.mrf.mxu1 }
0x1845   :  { %v3102_v50 = vpop.f32.mrf.mxu3 }
0x184d   :  { %v3041_v51 = vpop.f32.mrf.mxu2  ;;  %v3245_v27 = vpop.f32.mrf.mxu3 }
0x184e   :  { %v3042_v48 = vadd.f32 %v5536_v17, %v3041_v51 }
0x1850   :  { %v3103_v55 = vadd.f32 %v3102_v50, %v3042_v48 }
0x1852   :  { %v3141_v60 = vadd.f32 %v3140_v53, %v3103_v55 }
0x1854   :  { %v3172_v6 = vadd.f32 %v3171_v4, %v3141_v60  ;;  %v3285_v4 = vld [vmem:[#allocation3 + $0x8] sm:$0x3] }
0x1855   :  { %v3216_v7 = vpop.f32.mrf.mxu2 }
0x1856   :  { %v3217_v8 = vadd.f32 %v3216_v7, %v3172_v6 }
0x1858   :  { %v3246_v14 = vadd.f32 %v3245_v27, %v3217_v8 }
0x185a   :  { %4743 = vtanh.f32 %v3246_v14  ;;  %v4646_v23 = vmul.f32 -1.442695, %v3246_v14 }
0x185c   :  { %4745 = vpow2.f32 %v4646_v23 }
0x1860   :  { %v4744_v19 = vpop.eup %4743 }
0x1861   :  { %3270 = vrot.lane.b32.xlu1 %v4744_v19, %s4900_s3 }
0x1862   :  { %v4746_v10 = vpop.eup %4745 }
0x1863   :  { %v3251_v20 = vadd.f32 1.0, %v4746_v10 }
0x1865   :  { %4747 = vrcp.f32 %v3251_v20  ;;  %v3263_v42 = vand.u32 2147483648, %v3251_v20  ;;  %vm3257_vm2 = vweird.f32 %v3251_v20  ;;  %v3261_v44 = vand.u32 2147483647, %v3251_v20 }
0x1867   :  { %v3264_v54 = vor.u32 1.1754944e-38, %v3263_v42  ;;  %vm3262_vm4 = vcmp.eq.f32.partialorder %v3261_v44, 8.507059e+37 }
0x186b   :  { %v4748_v37 = vpop.eup %4747 }
0x186c   :  { %v3253_v36 = vmul.f32 %v4748_v37, %v3251_v20  ;;  %vm3258_vm0 = vweird.f32 %v4748_v37 }
0x186d   :  { %vm3259_vm3 = vmor %vm3257_vm2, %vm3258_vm0 }
0x186e   :  { %v3254_v40 = vsub.f32 1.0, %v3253_v36 }
0x1870   :  { %v3255_v41 = vmul.f32 %v4748_v37, %v3254_v40 }
0x1872   :  { %v3256_v43 = vadd.f32 %v4748_v37, %v3255_v41 }
0x1874   :  { %v3260_v46 = vsel %vm3259_vm3, %v4748_v37, %v3256_v43 }
0x1875   :  { %v3265_v45 = vsel %vm3262_vm4, %v3264_v54, %v3260_v46 }
0x1876   :  { %v3268_v50 = vmul.f32 %v3265_v45, %v5661_v26 }
0x18d3   :  { %v3271_v49 = vpop.permute.xlu1 %3270 }
0x18d4   :  { %v3273_v47 = vmul.f32 %v3271_v49, %v3265_v45 }
0x18d6   :  { %3275 = vrot.lane.b32.xlu2 %v3273_v47, %s4901_s24 }
0x1930   :  { %v3276_v51 = vpop.permute.xlu2 %3275 }
0x1931   :  { %v5720_v48 = vadd.f32 %v3276_v51, %v3268_v50 }
0x1933   :  { %4749 = vtanh.f32 %v5720_v48 }
0x1939   :  { %v4750_v55 = vpop.eup %4749 }
0x193a   :  { %3281 = vrot.lane.b32.xlu0 %v4750_v55, %s4900_s3 }
0x19ac   :  { %v3282_v53 = vpop.permute.xlu0 %3281 }
0x19ad   :  { %v3284_v60 = vmul.f32 %v3282_v53, %v3265_v45 }
0x19af   :  { %3287 = vrot.lane.b32.xlu1 %v3284_v60, %s4900_s3 }
0x1a21   :  { %v3288_v6 = vpop.permute.xlu1 %3287 }
0x1a22   :  { %v3290_v7 = vsel %vm287_vm5, %v3285_v4, %v3288_v6 }
0x1a23   :  { %v3292_v8 = vsel %vm2158_vm1, %v3290_v7, 0 }
0x1a24   :  { %v3318_v27 = vand.u32 4294901760, %v3292_v8 }
0x1a26   :  { %v3319_v26 = vsub.f32 %v3292_v8, %v3318_v27  ;;  %3384 = vmatmul.f32.vlgmr.msrb.gmra.mxu1 %v3318_v27 }
0x1a27   :  { %3718 = vmatpush.msrb.mxu1 %v5305_v56 }
0x1a28   :  { %3422 = vmatmul.f32.vlgmr.msra.gmra.mxu2 %v3319_v26  ;;  %v3320_v14 = vand.u32 4294901760, %v3319_v26 }
0x1a29   :  { %3720 = vmatpush.msrb.mxu1 %v5307_v57  ;;  %3751 = vmatpush.msra.mxu2 %v5331_v1 }
0x1a2a   :  { %3453 = vmatmul.f32.vlgmr.msra.gmra.mxu3 %v3320_v14  ;;  %v3321_v19 = vsub.f32 %v3319_v26, %v3320_v14 }
0x1a2b   :  { %3722 = vmatpush.msrb.mxu1 %v5309_v58  ;;  %3794 = vmatpush.msra.mxu3 %v5305_v56 }
0x1a2c   :  { %v3322_v23 = vand.u32 4294901760, %v3321_v19  ;;  %3755 = vmatpush.msra.mxu2 %v5334_v2 }
0x1a2d   :  { %3724 = vmatpush.msrb.mxu1 %v5314_v61  ;;  %3796 = vmatpush.msra.mxu3 %v5307_v57 }
0x1a2e   :  { %3323 = vmatmul.f32.vlgmr.msrb.gmra.mxu0 %v3322_v23  ;;  %3527 = vmatmul.f32.vlgmr.msra.gmra.mxu1 %v3318_v27 }
0x1a2f   :  { %3681 = vmatpush.msrb.mxu0 %v5318_v59  ;;  %3726 = vmatpush.msrb.mxu1 %v5357_v13 }
0x1a30   :  { %3798 = vmatpush.msra.mxu3 %v5309_v58  ;;  %3759 = vmatpush.msra.mxu2 %v5337_v3 }
0x1a31   :  { %3684 = vmatpush.msrb.mxu0 %v5321_v62  ;;  %3728 = vmatpush.msrb.mxu1 %v5374_v24 }
0x1a32   :  { %3800 = vmatpush.msra.mxu3 %v5314_v61  ;;  %3763 = vmatpush.msra.mxu2 %v5343_v5 }
0x1a33   :  { %3687 = vmatpush.msrb.mxu0 %v5324_v63  ;;  %3730 = vmatpush.msrb.mxu1 %v5386_v28 }
0x1a34   :  { %3802 = vmatpush.msra.mxu3 %v5357_v13  ;;  %3767 = vmatpush.msra.mxu2 %v5384_v11 }
0x1a35   :  { %3690 = vmatpush.msrb.mxu0 %v5327_v0  ;;  %3732 = vmatpush.msrb.mxu1 %v5400_v31 }
0x1a36   :  { %3498 = vmatmul.f32.vlgmr.msra.gmra.mxu0 %v3318_v27  ;;  %3804 = vmatpush.msra.mxu3 %v5374_v24 }
0x1a37   :  { %3693 = vmatpush.msrb.mxu0 %v5377_v25  ;;  %3771 = vmatpush.msra.mxu2 %v5398_v18 }
0x1a38   :  { %3806 = vmatpush.msra.mxu3 %v5386_v28  ;;  %3906 = vmatpush.msra.mxu1 %v5352_v9 }
0x1a39   :  { %3696 = vmatpush.msrb.mxu0 %v5389_v29  ;;  %3775 = vmatpush.msra.mxu2 %v5411_v33 }
0x1a3a   :  { %3808 = vmatpush.msra.mxu3 %v5400_v31  ;;  %3912 = vmatpush.msra.mxu1 %v5354_v12 }
0x1a3b   :  { %3699 = vmatpush.msrb.mxu0 %v5403_v34  ;;  %3779 = vmatpush.msra.mxu2 %v5422_v30 }
0x1a3c   :  { %3918 = vmatpush.msra.mxu1 %v5362_v15 }
0x1a3d   :  { %3702 = vmatpush.msrb.mxu0 %v5414_v22 }
0x1a3e   :  { %3924 = vmatpush.msra.mxu1 %v5366_v16 }
0x1a3f   :  { %3869 = vmatpush.msra.mxu0 %v5305_v56 }
0x1a40   :  { %3930 = vmatpush.msra.mxu1 %v5405_v32 }
0x1a41   :  { %3871 = vmatpush.msra.mxu0 %v5307_v57 }
0x1a42   :  { %3936 = vmatpush.msra.mxu1 %v5417_v38 }
0x1a43   :  { %3873 = vmatpush.msra.mxu0 %v5309_v58 }
0x1a44   :  { %3942 = vmatpush.msra.mxu1 %v5425_v35 }
0x1a45   :  { %3875 = vmatpush.msra.mxu0 %v5314_v61 }
0x1a46   :  { %3948 = vmatpush.msra.mxu1 %v5430_v39 }
0x1a47   :  { %3877 = vmatpush.msra.mxu0 %v5357_v13 }
0x1a49   :  { %3879 = vmatpush.msra.mxu0 %v5374_v24 }
0x1a4b   :  { %3881 = vmatpush.msra.mxu0 %v5386_v28 }
0x1a4d   :  { %3883 = vmatpush.msra.mxu0 %v5400_v31 }
0x1aa3   :  { %v3385_v10 = vpop.f32.mrf.mxu1 }
0x1aab   :  { %v3324_v20 = vpop.f32.mrf.mxu0  ;;  %v3423_v40 = vpop.f32.mrf.mxu2 }
0x1aac   :  { %v3325_v37 = vadd.f32 %v5536_v17, %v3324_v20  ;;  %v3528_v54 = vpop.f32.mrf.mxu1 }
0x1aad   :  { %v3454_v43 = vpop.f32.mrf.mxu3 }
0x1aae   :  { %v3386_v36 = vadd.f32 %v3385_v10, %v3325_v37 }
0x1ab0   :  { %v3424_v41 = vadd.f32 %v3423_v40, %v3386_v36 }
0x1ab2   :  { %v3455_v42 = vadd.f32 %v3454_v43, %v3424_v41  ;;  %v3568_v41 = vld [vmem:[#allocation3 + $0xa] sm:$0x3] }
0x1ab3   :  { %v3499_v44 = vpop.f32.mrf.mxu0 }
0x1ab4   :  { %v3500_v46 = vadd.f32 %v3499_v44, %v3455_v42 }
0x1ab6   :  { %v3529_v49 = vadd.f32 %v3528_v54, %v3500_v46 }
0x1ab8   :  { %4751 = vtanh.f32 %v3529_v49  ;;  %v4647_v47 = vmul.f32 -1.442695, %v3529_v49 }
0x1aba   :  { %4753 = vpow2.f32 %v4647_v47 }
0x1abe   :  { %v4752_v45 = vpop.eup %4751 }
0x1abf   :  { %3553 = vrot.lane.b32.xlu2 %v4752_v45, %s4900_s3 }
0x1ac0   :  { %v4754_v50 = vpop.eup %4753 }
0x1ac1   :  { %v3534_v51 = vadd.f32 1.0, %v4754_v50 }
0x1ac3   :  { %4755 = vrcp.f32 %v3534_v51  ;;  %v3546_v6 = vand.u32 2147483648, %v3534_v51  ;;  %vm3540_vm8 = vweird.f32 %v3534_v51  ;;  %v3544_v7 = vand.u32 2147483647, %v3534_v51 }
0x1ac5   :  { %v3547_v27 = vor.u32 1.1754944e-38, %v3546_v6  ;;  %vm3545_vm10 = vcmp.eq.f32.partialorder %v3544_v7, 8.507059e+37 }
0x1ac9   :  { %v4756_v55 = vpop.eup %4755 }
0x1aca   :  { %v3536_v17 = vmul.f32 %v4756_v55, %v3534_v51  ;;  %vm3541_vm7 = vweird.f32 %v4756_v55 }
0x1acb   :  { %vm3542_vm9 = vmor %vm3540_vm8, %vm3541_vm7 }
0x1acc   :  { %v3537_v53 = vsub.f32 1.0, %v3536_v17 }
0x1ace   :  { %v3538_v60 = vmul.f32 %v4756_v55, %v3537_v53 }
0x1ad0   :  { %v3539_v4 = vadd.f32 %v4756_v55, %v3538_v60 }
0x1ad2   :  { %v3543_v8 = vsel %vm3542_vm9, %v4756_v55, %v3539_v4 }
0x1ad3   :  { %v3548_v14 = vsel %vm3545_vm10, %v3547_v27, %v3543_v8 }
0x1ad4   :  { %v3551_v23 = vmul.f32 %v3548_v14, %v5720_v48 }
0x1b19   :  { %v3554_v26 = vpop.permute.xlu2 %3553 }
0x1b1a   :  { %v3556_v19 = vmul.f32 %v3554_v26, %v3548_v14 }
0x1b1c   :  { %3558 = vrot.lane.b32.xlu0 %v3556_v19, %s4901_s24 }
0x1b8e   :  { %v3559_v10 = vpop.permute.xlu0 %3558 }
0x1b8f   :  { %v5779_v20 = vadd.f32 %v3559_v10, %v3551_v23 }
0x1b91   :  { %4757 = vtanh.f32 %v5779_v20 }
0x1b97   :  { %v4758_v37 = vpop.eup %4757 }
0x1b98   :  { %3564 = vrot.lane.b32.xlu1 %v4758_v37, %s4900_s3 }
0x1c0a   :  { %v3565_v36 = vpop.permute.xlu1 %3564 }
0x1c0b   :  { %v3567_v40 = vmul.f32 %v3565_v36, %v3548_v14  ;;  %v1912_v36 = vld [vmem:[#allocation2 + $0xe] sm:$0x3] }
0x1c0d   :  { %3570 = vrot.lane.b32.xlu2 %v3567_v40, %s4900_s3  ;;  %v2100_v40 = vadd.f32 %v5539_v21, %v1912_v36 }
0x1c0f   :  { %v4642_v21 = vmul.f32 -1.442695, %v2100_v40 }
0x1c67   :  { %v3571_v43 = vpop.permute.xlu2 %3570 }
0x1c68   :  { %v3573_v42 = vsel %vm287_vm5, %v3568_v41, %v3571_v43 }
0x1c69   :  { %v3575_v44 = vsel %vm2158_vm1, %v3573_v42, 0 }
0x1c6a   :  { %v3601_v46 = vand.u32 4294901760, %v3575_v44 }
0x1c6c   :  { %v3602_v48 = vsub.f32 %v3575_v44, %v3601_v46  ;;  %3667 = vmatmul.f32.vlgmr.msrb.gmra.mxu3 %v3601_v46 }
0x1c6d   :  { %4001 = vmatpush.msrb.mxu3 %v5305_v56 }
0x1c6e   :  { %3705 = vmatmul.f32.vlgmr.msrb.gmra.mxu0 %v3602_v48  ;;  %v3603_v54 = vand.u32 4294901760, %v3602_v48 }
0x1c6f   :  { %4003 = vmatpush.msrb.mxu3 %v5307_v57  ;;  %4034 = vmatpush.msrb.mxu0 %v5331_v1 }
0x1c70   :  { %3736 = vmatmul.f32.vlgmr.msrb.gmra.mxu1 %v3603_v54  ;;  %v3604_v49 = vsub.f32 %v3602_v48, %v3603_v54 }
0x1c71   :  { %4005 = vmatpush.msrb.mxu3 %v5309_v58  ;;  %4077 = vmatpush.msrb.mxu1 %v5305_v56 }
0x1c72   :  { %v3605_v45 = vand.u32 4294901760, %v3604_v49  ;;  %4038 = vmatpush.msrb.mxu0 %v5334_v2 }
0x1c73   :  { %4007 = vmatpush.msrb.mxu3 %v5314_v61  ;;  %4079 = vmatpush.msrb.mxu1 %v5307_v57 }
0x1c74   :  { %3606 = vmatmul.f32.vlgmr.msrb.gmra.mxu2 %v3605_v45  ;;  %3810 = vmatmul.f32.vlgmr.msra.gmra.mxu3 %v3601_v46 }
0x1c75   :  { %3964 = vmatpush.msrb.mxu2 %v5318_v59  ;;  %4009 = vmatpush.msrb.mxu3 %v5357_v13 }
0x1c76   :  { %4081 = vmatpush.msrb.mxu1 %v5309_v58  ;;  %4042 = vmatpush.msrb.mxu0 %v5337_v3 }
0x1c77   :  { %3967 = vmatpush.msrb.mxu2 %v5321_v62  ;;  %4011 = vmatpush.msrb.mxu3 %v5374_v24 }
0x1c78   :  { %4083 = vmatpush.msrb.mxu1 %v5314_v61  ;;  %4046 = vmatpush.msrb.mxu0 %v5343_v5 }
0x1c79   :  { %3970 = vmatpush.msrb.mxu2 %v5324_v63  ;;  %4013 = vmatpush.msrb.mxu3 %v5386_v28 }
0x1c7a   :  { %4085 = vmatpush.msrb.mxu1 %v5357_v13  ;;  %4050 = vmatpush.msrb.mxu0 %v5384_v11 }
0x1c7b   :  { %3973 = vmatpush.msrb.mxu2 %v5327_v0  ;;  %4015 = vmatpush.msrb.mxu3 %v5400_v31 }
0x1c7c   :  { %3781 = vmatmul.f32.vlgmr.msra.gmra.mxu2 %v3601_v46  ;;  %4087 = vmatpush.msrb.mxu1 %v5374_v24 }
0x1c7d   :  { %3976 = vmatpush.msrb.mxu2 %v5377_v25  ;;  %4054 = vmatpush.msrb.mxu0 %v5398_v18 }
0x1c7e   :  { %4089 = vmatpush.msrb.mxu1 %v5386_v28  ;;  %4189 = vmatpush.msra.mxu3 %v5352_v9 }
0x1c7f   :  { %3979 = vmatpush.msrb.mxu2 %v5389_v29  ;;  %4058 = vmatpush.msrb.mxu0 %v5411_v33 }
0x1c80   :  { %4091 = vmatpush.msrb.mxu1 %v5400_v31  ;;  %4195 = vmatpush.msra.mxu3 %v5354_v12 }
0x1c81   :  { %3982 = vmatpush.msrb.mxu2 %v5403_v34  ;;  %4062 = vmatpush.msrb.mxu0 %v5422_v30 }
0x1c82   :  { %4201 = vmatpush.msra.mxu3 %v5362_v15  ;;  %v5837_v15 = vld [vmem:[%s5928_s5] ss:$0 sm:$0xff] }
0x1c83   :  { %3985 = vmatpush.msrb.mxu2 %v5414_v22 }
0x1c84   :  { %4207 = vmatpush.msra.mxu3 %v5366_v16 }
0x1c85   :  { %4152 = vmatpush.msra.mxu2 %v5305_v56 }
0x1c86   :  { %4213 = vmatpush.msra.mxu3 %v5405_v32 }
0x1c87   :  { %4154 = vmatpush.msra.mxu2 %v5307_v57 }
0x1c88   :  { %4219 = vmatpush.msra.mxu3 %v5417_v38 }
0x1c89   :  { %4156 = vmatpush.msra.mxu2 %v5309_v58 }
0x1c8a   :  { %4225 = vmatpush.msra.mxu3 %v5425_v35 }
0x1c8b   :  { %4158 = vmatpush.msra.mxu2 %v5314_v61 }
0x1c8c   :  { %4231 = vmatpush.msra.mxu3 %v5430_v39 }
0x1c8d   :  { %4160 = vmatpush.msra.mxu2 %v5357_v13 }
0x1c8f   :  { %4162 = vmatpush.msra.mxu2 %v5374_v24 }
0x1c91   :  { %4164 = vmatpush.msra.mxu2 %v5386_v28 }
0x1c93   :  { %4166 = vmatpush.msra.mxu2 %v5400_v31 }
0x1ceb   :  { %v3706_v38 = vpop.f32.mrf.mxu0 }
0x1ced   :  { %v3737_v39 = vpop.f32.mrf.mxu1 }
0x1cef   :  { %v3668_v9 = vpop.f32.mrf.mxu3 }
0x1cf7   :  { %v3607_v12 = vpop.f32.mrf.mxu2  ;;  %v3811_v55 = vpop.f32.mrf.mxu3 }
0x1cf8   :  { %v3608_v16 = vadd.f32 %v5837_v15, %v3607_v12 }
0x1cfa   :  { %v3669_v32 = vadd.f32 %v3668_v9, %v3608_v16 }
0x1cfc   :  { %v3707_v35 = vadd.f32 %v3706_v38, %v3669_v32 }
0x1cfe   :  { %v3738_v47 = vadd.f32 %v3737_v39, %v3707_v35 }
0x1cff   :  { %v3782_v50 = vpop.f32.mrf.mxu2 }
0x1d00   :  { %v3783_v51 = vadd.f32 %v3782_v50, %v3738_v47 }
0x1d02   :  { %v3812_v17 = vadd.f32 %v3811_v55, %v3783_v51 }
0x1d04   :  { %4759 = vtanh.f32 %v3812_v17  ;;  %v4648_v60 = vmul.f32 -1.442695, %v3812_v17 }
0x1d06   :  { %4761 = vpow2.f32 %v4648_v60 }
0x1d0a   :  { %v4760_v53 = vpop.eup %4759 }
0x1d0b   :  { %3836 = vrot.lane.b32.xlu0 %v4760_v53, %s4900_s3 }
0x1d0c   :  { %v4762_v4 = vpop.eup %4761 }
0x1d0d   :  { %v3817_v6 = vadd.f32 1.0, %v4762_v4  ;;  %v3851_v4 = vld [vmem:[#allocation3 + $0xc] sm:$0x3] }
0x1d0f   :  { %4763 = vrcp.f32 %v3817_v6  ;;  %v3829_v19 = vand.u32 2147483648, %v3817_v6  ;;  %vm3823_vm12 = vweird.f32 %v3817_v6  ;;  %v3827_v23 = vand.u32 2147483647, %v3817_v6 }
0x1d10   :  { %4765 = vtanh.f32 %v2100_v40 }
0x1d11   :  { %v3830_v37 = vor.u32 1.1754944e-38, %v3829_v19  ;;  %vm3828_vm14 = vcmp.eq.f32.partialorder %v3827_v23, 8.507059e+37 }
0x1d15   :  { %v4764_v7 = vpop.eup %4763 }
0x1d16   :  { %v3819_v8 = vmul.f32 %v4764_v7, %v3817_v6  ;;  %vm3824_vm11 = vweird.f32 %v4764_v7  ;;  %v4766_v44 = vpop.eup %4765 }
0x1d17   :  { %vm3825_vm13 = vmor %vm3823_vm12, %vm3824_vm11 }
0x1d18   :  { %v3820_v27 = vsub.f32 1.0, %v3819_v8 }
0x1d1a   :  { %v3821_v26 = vmul.f32 %v4764_v7, %v3820_v27 }
0x1d1c   :  { %v3822_v14 = vadd.f32 %v4764_v7, %v3821_v26 }
0x1d1e   :  { %v3826_v10 = vsel %vm3825_vm13, %v4764_v7, %v3822_v14 }
0x1d1f   :  { %v3831_v43 = vsel %vm3828_vm14, %v3830_v37, %v3826_v10 }
0x1d20   :  { %v3834_v46 = vmul.f32 %v3831_v43, %v5779_v20 }
0x1d7d   :  { %v3837_v41 = vpop.permute.xlu0 %3836 }
0x1d7e   :  { %v3839_v42 = vmul.f32 %v3837_v41, %v3831_v43 }
0x1d80   :  { %3841 = vrot.lane.b32.xlu1 %v3839_v42, %s4901_s24 }
0x1d88   :  { %2123 = vrot.lane.b32.xlu1 %v4766_v44, %s4900_s3 }
0x1df2   :  { %v3842_v48 = vpop.permute.xlu1 %3841 }
0x1df3   :  { %v5845_v54 = vadd.f32 %v3842_v48, %v3834_v46 }
0x1df5   :  { %4767 = vtanh.f32 %v5845_v54 }
0x1df6   :  { %4769 = vpow2.f32 %v4642_v21 }
0x1dfa   :  { %v2124_v55 = vpop.permute.xlu1 %2123 }
0x1dfb   :  { %v4768_v49 = vpop.eup %4767 }
0x1dfc   :  { %3847 = vrot.lane.b32.xlu2 %v4768_v49, %s4900_s3  ;;  %v4770_v45 = vpop.eup %4769 }
0x1dfd   :  { %v2104_v9 = vadd.f32 1.0, %v4770_v45 }
0x1dff   :  { %4771 = vrcp.f32 %v2104_v9  ;;  %v2116_v47 = vand.u32 2147483648, %v2104_v9  ;;  %vm2110_vm0 = vweird.f32 %v2104_v9  ;;  %v2114_v50 = vand.u32 2147483647, %v2104_v9 }
0x1e01   :  { %v2117_v17 = vor.u32 1.1754944e-38, %v2116_v47  ;;  %vm2115_vm3 = vcmp.eq.f32.partialorder %v2114_v50, 8.507059e+37 }
0x1e05   :  { %v4772_v12 = vpop.eup %4771 }
0x1e06   :  { %v2106_v16 = vmul.f32 %v4772_v12, %v2104_v9  ;;  %vm2111_vm15 = vweird.f32 %v4772_v12 }
0x1e07   :  { %vm2112_vm2 = vmor %vm2110_vm0, %vm2111_vm15 }
0x1e08   :  { %v2107_v32 = vsub.f32 1.0, %v2106_v16 }
0x1e0a   :  { %v2108_v38 = vmul.f32 %v4772_v12, %v2107_v32 }
0x1e0c   :  { %v2109_v39 = vadd.f32 %v4772_v12, %v2108_v38 }
0x1e0e   :  { %v2113_v51 = vsel %vm2112_vm2, %v4772_v12, %v2109_v39 }
0x1e0f   :  { %v5850_v53 = vsel %vm2115_vm3, %v2117_v17, %v2113_v51 }
0x1e10   :  { %v2126_v60 = vmul.f32 %v2124_v55, %v5850_v53 }
0x1e56   :  { %v3848_v35 = vpop.permute.xlu2 %3847 }
0x1e57   :  { %v3850_v20 = vmul.f32 %v3848_v35, %v3831_v43 }
0x1e59   :  { %3853 = vrot.lane.b32.xlu0 %v3850_v20, %s4900_s3 }
0x1e61   :  { %2128 = vrot.lane.b32.xlu0 %v2126_v60, %s4901_s24 }
0x1ecb   :  { %v3854_v6 = vpop.permute.xlu0 %3853 }
0x1ecc   :  { %v3856_v7 = vsel %vm287_vm5, %v3851_v4, %v3854_v6 }
0x1ecd   :  { %v3858_v8 = vsel %vm2158_vm1, %v3856_v7, 0 }
0x1ece   :  { %v3884_v27 = vand.u32 4294901760, %v3858_v8 }
0x1ed0   :  { %v3885_v26 = vsub.f32 %v3858_v8, %v3884_v27  ;;  %3950 = vmatmul.f32.vlgmr.msra.gmra.mxu1 %v3884_v27 }
0x1ed1   :  { %4284 = vmatpush.msra.mxu1 %v5305_v56 }
0x1ed2   :  { %v3886_v14 = vand.u32 4294901760, %v3885_v26  ;;  %3988 = vmatmul.f32.vlgmr.msrb.gmra.mxu2 %v3885_v26 }
0x1ed3   :  { %4286 = vmatpush.msra.mxu1 %v5307_v57  ;;  %4317 = vmatpush.msrb.mxu2 %v5331_v1 }
0x1ed4   :  { %v3887_v19 = vsub.f32 %v3885_v26, %v3886_v14  ;;  %4019 = vmatmul.f32.vlgmr.msrb.gmra.mxu3 %v3886_v14 }
0x1ed5   :  { %4288 = vmatpush.msra.mxu1 %v5309_v58  ;;  %4360 = vmatpush.msrb.mxu3 %v5305_v56 }
0x1ed6   :  { %v3888_v23 = vand.u32 4294901760, %v3887_v19  ;;  %4321 = vmatpush.msrb.mxu2 %v5334_v2 }
0x1ed7   :  { %4290 = vmatpush.msra.mxu1 %v5314_v61  ;;  %4362 = vmatpush.msrb.mxu3 %v5307_v57 }
0x1ed8   :  { %3889 = vmatmul.f32.vlgmr.msra.gmra.mxu0 %v3888_v23  ;;  %4093 = vmatmul.f32.vlgmr.msrb.gmra.mxu1 %v3884_v27 }
0x1ed9   :  { %4247 = vmatpush.msra.mxu0 %v5318_v59  ;;  %4292 = vmatpush.msra.mxu1 %v5357_v13 }
0x1eda   :  { %4364 = vmatpush.msrb.mxu3 %v5309_v58  ;;  %4325 = vmatpush.msrb.mxu2 %v5337_v3 }
0x1edb   :  { %4250 = vmatpush.msra.mxu0 %v5321_v62  ;;  %4294 = vmatpush.msra.mxu1 %v5374_v24 }
0x1edc   :  { %4366 = vmatpush.msrb.mxu3 %v5314_v61  ;;  %4329 = vmatpush.msrb.mxu2 %v5343_v5 }
0x1edd   :  { %4253 = vmatpush.msra.mxu0 %v5324_v63  ;;  %4296 = vmatpush.msra.mxu1 %v5386_v28 }
0x1ede   :  { %4368 = vmatpush.msrb.mxu3 %v5357_v13  ;;  %4333 = vmatpush.msrb.mxu2 %v5384_v11  ;;  %v2129_v13 = vpop.permute.xlu0 %2128 }
0x1edf   :  { %4256 = vmatpush.msra.mxu0 %v5327_v0  ;;  %4298 = vmatpush.msra.mxu1 %v5400_v31 }
0x1ee0   :  { %4064 = vmatmul.f32.vlgmr.msrb.gmra.mxu0 %v3884_v27  ;;  %4370 = vmatpush.msrb.mxu3 %v5374_v24  ;;  %v2121_v24 = vmul.f32 %v5850_v53, %v5292_v52 }
0x1ee1   :  { %4259 = vmatpush.msra.mxu0 %v5377_v25  ;;  %4337 = vmatpush.msrb.mxu2 %v5398_v18 }
0x1ee2   :  { %4372 = vmatpush.msrb.mxu3 %v5386_v28  ;;  %v2131_v25 = vadd.f32 %v2129_v13, %v2121_v24 }
0x1ee3   :  { %4262 = vmatpush.msra.mxu0 %v5389_v29  ;;  %4341 = vmatpush.msrb.mxu2 %v5411_v33 }
0x1ee4   :  { %4374 = vmatpush.msrb.mxu3 %v5400_v31 }
0x1ee5   :  { %4265 = vmatpush.msra.mxu0 %v5403_v34  ;;  %4345 = vmatpush.msrb.mxu2 %v5422_v30 }
0x1ee7   :  { %4268 = vmatpush.msra.mxu0 %v5414_v22 }
0x1f4d   :  { %v3951_v56 = vpop.f32.mrf.mxu1 }
0x1f55   :  { %v3890_v57 = vpop.f32.mrf.mxu0  ;;  %v3989_v59 = vpop.f32.mrf.mxu2 }
0x1f56   :  { %v3891_v58 = vadd.f32 %v5837_v15, %v3890_v57  ;;  %v4094_v3 = vpop.f32.mrf.mxu1 }
0x1f57   :  { %v4020_v63 = vpop.f32.mrf.mxu3 }
0x1f58   :  { %v3952_v61 = vadd.f32 %v3951_v56, %v3891_v58 }
0x1f5a   :  { %v3990_v62 = vadd.f32 %v3989_v59, %v3952_v61 }
0x1f5c   :  { %v4021_v0 = vadd.f32 %v4020_v63, %v3990_v62 }
0x1f5d   :  { %v4065_v1 = vpop.f32.mrf.mxu0 }
0x1f5e   :  { %v4066_v2 = vadd.f32 %v4065_v1, %v4021_v0 }
0x1f60   :  { %v4095_v5 = vadd.f32 %v4094_v3, %v4066_v2 }
0x1f62   :  { %4773 = vtanh.f32 %v4095_v5  ;;  %v4649_v29 = vmul.f32 -1.442695, %v4095_v5 }
0x1f63   :  { %4775 = vtanh.f32 %v2131_v25 }
0x1f64   :  { %4777 = vpow2.f32 %v4649_v29 }
0x1f68   :  { %v4774_v11 = vpop.eup %4773 }
0x1f69   :  { %4119 = vrot.lane.b32.xlu2 %v4774_v11, %s4900_s3  ;;  %v4776_v28 = vpop.eup %4775 }
0x1f6a   :  { %v4778_v18 = vpop.eup %4777 }
0x1f6b   :  { %v4100_v31 = vadd.f32 1.0, %v4778_v18  ;;  %v4420_v18 = vld [vmem:[%s5929_s6 + $0x18] sm:$0xff] }
0x1f6d   :  { %4779 = vrcp.f32 %v4100_v31  ;;  %v4112_v52 = vand.u32 2147483648, %v4100_v31  ;;  %vm4106_vm7 = vweird.f32 %v4100_v31  ;;  %v4110_v37 = vand.u32 2147483647, %v4100_v31 }
0x1f6f   :  { %v4113_v40 = vor.u32 1.1754944e-38, %v4112_v52  ;;  %vm4111_vm9 = vcmp.eq.f32.partialorder %v4110_v37, 8.507059e+37 }
0x1f71   :  { %2134 = vrot.lane.b32.xlu2 %v4776_v28, %s4900_s3 }
0x1f73   :  { %v4780_v34 = vpop.eup %4779 }
0x1f74   :  { %v4102_v33 = vmul.f32 %v4780_v34, %v4100_v31  ;;  %vm4107_vm4 = vweird.f32 %v4780_v34  ;;  %v4419_v31 = vld [vmem:[%s5929_s6 + $0x10] sm:$0xff] }
0x1f75   :  { %vm4108_vm8 = vmor %vm4106_vm7, %vm4107_vm4 }
0x1f76   :  { %v4103_v22 = vsub.f32 1.0, %v4102_v33  ;;  %v4444_v33 = vand.u32 4294901760, %v4419_v31 }
0x1f78   :  { %v4104_v30 = vmul.f32 %v4780_v34, %v4103_v22 }
0x1f7a   :  { %v4105_v10 = vadd.f32 %v4780_v34, %v4104_v30  ;;  %v4478_v30 = vsub.f32 %v4419_v31, %v4444_v33 }
0x1f7c   :  { %v4109_v36 = vsel %vm4108_vm8, %v4780_v34, %v4105_v10  ;;  %v4442_v34 = vand.u32 4294901760, %v4420_v18  ;;  %v4479_v52 = vand.u32 4294901760, %v4478_v30 }
0x1f7d   :  { %v4114_v43 = vsel %vm4111_vm9, %v4113_v40, %v4109_v36 }
0x1f7e   :  { %v4117_v48 = vmul.f32 %v4114_v43, %v5845_v54  ;;  %v4472_v22 = vsub.f32 %v4420_v18, %v4442_v34  ;;  %4443 = vmatpush.msrb.mxu0 %v4442_v34  ;;  %v4480_v36 = vsub.f32 %v4478_v30, %v4479_v52 }
0x1f80   :  { %v4473_v10 = vand.u32 4294901760, %v4472_v22  ;;  %4445 = vmatpush.msrb.mxu0 %v4444_v33 }
0x1f82   :  { %v4474_v37 = vsub.f32 %v4472_v22, %v4473_v10 }
0x1f84   :  { %v4475_v40 = vand.u32 4294901760, %v4474_v37 }
0x1f86   :  { %4476 = vmatpush.msrb.mxu1 %v4475_v40 }
0x1fc3   :  { %v4120_v41 = vpop.permute.xlu2 %4119 }
0x1fc4   :  { %v4122_v42 = vmul.f32 %v4120_v41, %v4114_v43  ;;  %v4481_v41 = vand.u32 4294901760, %v4480_v36 }
0x1fc6   :  { %4124 = vrot.lane.b32.xlu1 %v4122_v42, %s4901_s24  ;;  %4482 = vmatpush.msrb.mxu1 %v4481_v41 }
0x1fcb   :  { %v2135_v44 = vpop.permute.xlu2 %2134 }
0x1fcc   :  { %v2137_v46 = vmul.f32 %v2135_v44, %v5850_v53  ;;  %v4418_v44 = vld [vmem:[%s5929_s6 + $0x8] sm:$0xff] }
0x1fce   :  { %2139 = vrot.lane.b32.xlu1 %v2137_v46, %s4901_s24  ;;  %v4446_v46 = vand.u32 4294901760, %v4418_v44 }
0x1fd0   :  { %4447 = vmatpush.msrb.mxu0 %v4446_v46 }
0x2038   :  { %v4125_v49 = vpop.permute.xlu1 %4124 }
0x2039   :  { %v4127_v21 = vadd.f32 %v4125_v49, %v4117_v48  ;;  %v4417_v48 = vld [vmem:[%s5929_s6] sm:$0xff]  ;;  %v4484_v49 = vsub.f32 %v4418_v44, %v4446_v46  ;;  %s4902_s6 = smov [#allocation10]  }
0x203b   :  { %4781 = vtanh.f32 %v4127_v21 }
0x2040   :  { %v2140_v45 = vpop.permute.xlu1 %2139 }
0x2041   :  { %v4782_v9 = vpop.eup %4781  ;;  %2143 = vst.msk [vmem:[#allocation3 + $0xe] sm:$0x3] %vm518_vm6, %v2140_v45  ;;  %v4485_v45 = vand.u32 4294901760, %v4484_v49 }
0x2042   :  { %4130 = vrot.lane.b32.xlu0 %v4782_v9, %s4900_s3 }
0x2048   :  { %v4134_v32 = vld [vmem:[#allocation3 + $0xe] sm:$0x3] }
0x20b4   :  { %v4131_v12 = vpop.permute.xlu0 %4130 }
0x20b5   :  { %v4133_v16 = vmul.f32 %v4131_v12, %v4114_v43  ;;  %v4486_v12 = vsub.f32 %v4484_v49, %v4485_v45 }
0x20b7   :  { %4136 = vrot.lane.b32.xlu2 %v4133_v16, %s4900_s3 }
0x2111   :  { %v4137_v38 = vpop.permute.xlu2 %4136 }
0x2112   :  { %v4139_v35 = vsel %vm287_vm5, %v4134_v32, %v4137_v38  ;;  %v4487_v32 = vand.u32 4294901760, %v4486_v12 }
0x2113   :  { %v4141_v39 = vsel %vm2158_vm1, %v4139_v35, 0 }
0x2114   :  { %v4167_v54 = vand.u32 4294901760, %v4141_v39  ;;  %4488 = vmatpush.msrb.mxu1 %v4487_v32 }
0x2116   :  { %v4168_v20 = vsub.f32 %v4141_v39, %v4167_v54  ;;  %4233 = vmatmul.f32.vlgmr.msra.gmra.mxu3 %v4167_v54 }
0x2117   :  { %4543 = vmatpush.msra.mxu3 %v4442_v34 }
0x2118   :  { %v4169_v47 = vand.u32 4294901760, %v4168_v20  ;;  %4271 = vmatmul.f32.vlgmr.msra.gmra.mxu0 %v4168_v20 }
0x2119   :  { %4545 = vmatpush.msra.mxu3 %v4444_v33 }
0x211a   :  { %v4170_v50 = vsub.f32 %v4168_v20, %v4169_v47  ;;  %4302 = vmatmul.f32.vlgmr.msra.gmra.mxu1 %v4169_v47 }
0x211b   :  { %4547 = vmatpush.msra.mxu3 %v4446_v46 }
0x211c   :  { %v4171_v51 = vand.u32 4294901760, %v4170_v50 }
0x211e   :  { %4172 = vmatmul.f32.vlgmr.msra.gmra.mxu2 %v4171_v51  ;;  %4376 = vmatmul.f32.vlgmr.msrb.gmra.mxu3 %v4167_v54 }
0x211f   :  { %4514 = vmatpush.msra.mxu2 %v4472_v22 }
0x2121   :  { %4517 = vmatpush.msra.mxu2 %v4478_v30 }
0x2123   :  { %4520 = vmatpush.msra.mxu2 %v4484_v49 }
0x2126   :  { %4347 = vmatmul.f32.vlgmr.msrb.gmra.mxu2 %v4167_v54 }
0x2195   :  { %v4272_v4 = vpop.f32.mrf.mxu0 }
0x2197   :  { %v4303_v7 = vpop.f32.mrf.mxu1 }
0x2199   :  { %v4234_v55 = vpop.f32.mrf.mxu3 }
0x21a1   :  { %v4173_v17 = vpop.f32.mrf.mxu2  ;;  %v4377_v14 = vpop.f32.mrf.mxu3 }
0x21a2   :  { %v4174_v53 = vadd.f32 %v5837_v15, %v4173_v17  ;;  %v4662_v17 = vld [vmem:[#allocation9] ss:$0 sm:$0xff] }
0x21a4   :  { %v4235_v60 = vadd.f32 %v4234_v55, %v4174_v53 }
0x21a6   :  { %v4273_v6 = vadd.f32 %v4272_v4, %v4235_v60 }
0x21a8   :  { %v4304_v8 = vadd.f32 %v4303_v7, %v4273_v6 }
0x21a9   :  { %v4348_v27 = vpop.f32.mrf.mxu2 }
0x21aa   :  { %v4349_v26 = vadd.f32 %v4348_v27, %v4304_v8 }
0x21ac   :  { %v4378_v19 = vadd.f32 %v4377_v14, %v4349_v26 }
0x21ae   :  { %4783 = vtanh.f32 %v4378_v19  ;;  %v4650_v56 = vmul.f32 -1.442695, %v4378_v19 }
0x21b0   :  { %4785 = vpow2.f32 %v4650_v56 }
0x21b4   :  { %v4784_v23 = vpop.eup %4783 }
0x21b5   :  { %4402 = vrot.lane.b32.xlu0 %v4784_v23, %s4900_s3 }
0x21b6   :  { %v4786_v57 = vpop.eup %4785 }
0x21b7   :  { %v4383_v58 = vadd.f32 1.0, %v4786_v57 }
0x21b9   :  { %4787 = vrcp.f32 %v4383_v58  ;;  %v4395_v0 = vand.u32 2147483648, %v4383_v58  ;;  %vm4389_vm1 = vweird.f32 %v4383_v58  ;;  %v4393_v1 = vand.u32 2147483647, %v4383_v58 }
0x21bb   :  { %v4396_v3 = vor.u32 1.1754944e-38, %v4395_v0  ;;  %vm4394_vm11 = vcmp.eq.f32.partialorder %v4393_v1, 8.507059e+37 }
0x21bf   :  { %v4788_v61 = vpop.eup %4787 }
0x21c0   :  { %v4385_v15 = vmul.f32 %v4788_v61, %v4383_v58  ;;  %vm4390_vm6 = vweird.f32 %v4788_v61 }
0x21c1   :  { %vm4391_vm10 = vmor %vm4389_vm1, %vm4390_vm6 }
0x21c2   :  { %v4386_v59 = vsub.f32 1.0, %v4385_v15 }
0x21c4   :  { %v4387_v62 = vmul.f32 %v4788_v61, %v4386_v59 }
0x21c6   :  { %v4388_v63 = vadd.f32 %v4788_v61, %v4387_v62 }
0x21c8   :  { %v4392_v2 = vsel %vm4391_vm10, %v4788_v61, %v4388_v63 }
0x21c9   :  { %v4397_v13 = vsel %vm4394_vm11, %v4396_v3, %v4392_v2 }
0x21ca   :  { %v4400_v25 = vmul.f32 %v4397_v13, %v4127_v21  ;;  %v4448_v21 = vand.u32 4294901760, %v4417_v48 }
0x21cc   :  { %v4490_v9 = vsub.f32 %v4417_v48, %v4448_v21  ;;  %4549 = vmatpush.msra.mxu3 %v4448_v21  ;;  %4449 = vmatpush.msrb.mxu0 %v4448_v21 }
0x21ce   :  { %v4491_v16 = vand.u32 4294901760, %v4490_v9  ;;  %4523 = vmatpush.msra.mxu2 %v4490_v9  ;;  %4572 = vmatpush.msra.mxu0 %v4473_v10 }
0x21d0   :  { %v4492_v38 = vsub.f32 %v4490_v9, %v4491_v16  ;;  %4576 = vmatpush.msra.mxu0 %v4479_v52 }
0x21d2   :  { %v4493_v35 = vand.u32 4294901760, %v4492_v38  ;;  %4580 = vmatpush.msra.mxu0 %v4485_v45 }
0x21d4   :  { %4494 = vmatpush.msrb.mxu1 %v4493_v35  ;;  %4584 = vmatpush.msra.mxu0 %v4491_v16 }
0x21d6   :  { %4603 = vmatpush.msra.mxu1 %v4442_v34 }
0x21d8   :  { %4605 = vmatpush.msra.mxu1 %v4444_v33 }
0x21da   :  { %4607 = vmatpush.msra.mxu1 %v4446_v46 }
0x21dc   :  { %4609 = vmatpush.msra.mxu1 %v4448_v21 }
0x2227   :  { %v4403_v5 = vpop.permute.xlu0 %4402 }
0x2228   :  { %v4405_v24 = vmul.f32 %v4403_v5, %v4397_v13 }
0x222a   :  { %4407 = vrot.lane.b32.xlu1 %v4405_v24, %s4901_s24 }
0x229c   :  { %v4408_v11 = vpop.permute.xlu1 %4407 }
0x229d   :  { %v4410_v28 = vadd.f32 %v4408_v11, %v4400_v25 }
0x229f   :  { %4789 = vtanh.f32 %v4410_v28 }
0x22a5   :  { %v4790_v29 = vpop.eup %4789 }
0x22a6   :  { %4413 = vrot.lane.b32.xlu2 %v4790_v29, %s4900_s3 }
0x2300   :  { %v4414_v43 = vpop.permute.xlu2 %4413 }
0x2301   :  { %v4416_v42 = vmul.f32 %v4414_v43, %v4397_v13 }
0x2303   :  { %4426 = vrot.lane.b32.xlu0 %v4416_v42, %s4901_s24  ;;  %s4622_s24 = sshll.u32 %s4902_s6, 4  ;;  %s4623_s24 = int_to_ptr.vmem [resolvable:$true] %s4622_s24 }
0x2375   :  { %v4427_v39 = vpop.permute.xlu0 %4426 }
0x2376   :  { %v4428_v54 = vsel %vm287_vm5, %v4427_v39, 0  ;;  %vm4615_vm5 = vcmask 74752  }
0x2377   :  { %v4450_v20 = vand.u32 4294901760, %v4428_v54 }
0x2379   :  { %v4451_v47 = vsub.f32 %v4428_v54, %v4450_v20  ;;  %4496 = vmatmul.f32.vlgmr.msrb.gmra.mxu1 %v4450_v20 }
0x237b   :  { %v4452_v50 = vand.u32 4294901760, %v4451_v47  ;;  %4526 = vmatmul.f32.vlgmr.msra.gmra.mxu2 %v4451_v47 }
0x237d   :  { %v4453_v51 = vsub.f32 %v4451_v47, %v4452_v50  ;;  %4553 = vmatmul.f32.vlgmr.msra.gmra.mxu3 %v4452_v50 }
0x237f   :  { %v4454_v55 = vand.u32 4294901760, %v4453_v51 }
0x2381   :  { %4455 = vmatmul.f32.vlgmr.msrb.gmra.mxu0 %v4454_v55  ;;  %4611 = vmatmul.f32.vlgmr.msra.gmra.mxu1 %v4450_v20 }
0x2389   :  { %4586 = vmatmul.f32.vlgmr.msra.gmra.mxu0 %v4450_v20 }
0x23f6   :  { %v4497_v53 = vpop.f32.mrf.mxu1 }
0x23fe   :  { %v4456_v60 = vpop.f32.mrf.mxu0  ;;  %v4527_v7 = vpop.f32.mrf.mxu2 }
0x23ff   :  { %v4457_v4 = vadd.f32 %v4662_v17, %v4456_v60  ;;  %v4612_v23 = vpop.f32.mrf.mxu1 }
0x2400   :  { %v4554_v27 = vpop.f32.mrf.mxu3 }
0x2401   :  { %v4498_v6 = vadd.f32 %v4497_v53, %v4457_v4 }
0x2403   :  { %v4528_v8 = vadd.f32 %v4527_v7, %v4498_v6 }
0x2405   :  { %v4555_v26 = vadd.f32 %v4554_v27, %v4528_v8 }
0x2406   :  { %v4587_v14 = vpop.f32.mrf.mxu0 }
0x2407   :  { %v4588_v19 = vadd.f32 %v4587_v14, %v4555_v26 }
0x2409   :  { %v4613_v56 = vadd.f32 %v4612_v23, %v4588_v19 }
0x240b   :  { %4616 = vst.msk [vmem:[#allocation10] sm:$0x3] %vm4615_vm5, %v4613_v56 }
0x240c   :  { %4627 = dma.vmem_to_hbm [thread:$0]  %s4623_s24, 32, %s4625_s27, [#allocation6]  }
0x240d   :  { %4892 = dma.done.wait [#allocation6], 32  }
0x240e   :  { %4893 = vsyncadd [#allocation6], 4294967264 }
0x240f   :  { %4632 = vsyncpa [#allocation5], 1 }
0x2410   :  { %4633 = vsyncpa [#allocation8], 1 }
0x2411   :  { %4634 = vsyncpa [#allocation6], 1 }

</bundles_post_ra>
